<compile_context>
chip_gen: v6e
topology: v6e:2x2x1
jax: 0.10.0
libtpu: 0.0.40
codegen_flags: <defaults>
</compile_context>

<pallas_src>
import functools

import jax
import jax.numpy as jnp
from jax.experimental import pallas as pl
from jax.experimental.pallas import tpu as pltpu

C_IN_SE = 18     # conv2d66 input channels  (x205)
C_MID   = 432    # conv2d66 output / conv2d67 input channels (x202)
C_OUT   = 72     # conv2d67 output channels
BN_EPS  = 1e-3   # BatchNorm2d eps

MAX_TILE_M = 8192   # upper bound on a single M tile (amortizes ~0.35us/grid-step overhead)


# ----------------------------------------------------------------------------- kernels
def fused_single_step_kernel(se_ref, w1_ref, b1_ref, w2_ref, gamma_ref, beta_ref,
                             x_ref, o_ref, *, true_m):
    """Everything in one grid step (used when the whole padded M fits in one tile)."""
    # conv2d66 (1x1 + bias) on the [18, 1] squeeze vector -> sigmoid gate per C_MID.
    gate_lin = jnp.sum(se_ref[...] * w1_ref[...], axis=0, keepdims=True) + b1_ref[...]
    gate = jax.nn.sigmoid(gate_lin)                                   # [1, 432] f32
    w2s = (w2_ref[...] * gate).astype(x_ref.dtype)                    # fold gate into weight
    # conv2d67 as a single MXU matmul on the native [C, M] layout.
    y = jnp.dot(w2s, x_ref[...], preferred_element_type=jnp.float32)  # [72, m_pad] f32
    # Training-mode (biased) batch statistics over the TRUE M (padded columns are zero).
    inv_m = 1.0 / float(true_m)
    mean = jnp.sum(y, axis=1, keepdims=True) * inv_m
    var = jnp.sum(y * y, axis=1, keepdims=True) * inv_m - mean * mean
    scale = gamma_ref[...] * jax.lax.rsqrt(var + BN_EPS)
    shift = beta_ref[...] - mean * scale
    o_ref[...] = (y * scale + shift).astype(o_ref.dtype)


def fused_two_phase_kernel(se_ref, w1_ref, b1_ref, w2_ref, gamma_ref, beta_ref, x_ref,
                           o_ref,
                           w2s_ref, ybuf_ref, sum_ref, sumsq_ref, scale_ref, shift_ref,
                           *, true_m, cache_y):
    """grid = (2, nt): phase 0 = matmul + stats, phase 1 = normalize + lane-dense store."""
    p = pl.program_id(0)   # phase
    t = pl.program_id(1)   # M-tile index

    # --- one-time prologue: SE gate folded into the conv2d67 weight (tiny 72x432) ---
    @pl.when(jnp.logical_and(p == 0, t == 0))
    def _init():
        gate_lin = jnp.sum(se_ref[...] * w1_ref[...], axis=0, keepdims=True) + b1_ref[...]
        gate = jax.nn.sigmoid(gate_lin)                               # [1, 432] f32
        w2s_ref[...] = (w2_ref[...] * gate).astype(w2s_ref.dtype)     # [72, 432]
        sum_ref[...] = jnp.zeros_like(sum_ref)
        sumsq_ref[...] = jnp.zeros_like(sumsq_ref)

    # --- phase 0: MXU matmul on the native [C, tile_m] layout + f32 BN stats ---
    @pl.when(p == 0)
    def _compute():
        y = jnp.dot(w2s_ref[...], x_ref[...],
                    preferred_element_type=jnp.float32)               # [72, tile_m] f32
        if cache_y:
            ybuf_ref[t] = y.astype(ybuf_ref.dtype)                    # cache for phase 1
        sum_ref[...] += jnp.sum(y, axis=1, keepdims=True)
        sumsq_ref[...] += jnp.sum(y * y, axis=1, keepdims=True)

    # --- phase 1, first step: finalize training-mode (biased) batch statistics ---
    @pl.when(jnp.logical_and(p == 1, t == 0))
    def _stats():
        inv_m = 1.0 / float(true_m)        # TRUE element count (padded columns are zero)
        mean = sum_ref[...] * inv_m
        var = sumsq_ref[...] * inv_m - mean * mean
        scl = gamma_ref[...] * jax.lax.rsqrt(var + BN_EPS)
        scale_ref[...] = scl
        shift_ref[...] = beta_ref[...] - mean * scl

    # --- phase 1: stream normalized, lane-dense output tiles ---
    @pl.when(p == 1)
    def _normalize():
        if cache_y:
            y = ybuf_ref[t].astype(jnp.float32)
        else:
            # 2-pass fallback (VMEM-bounded): re-read x tile, recompute the matmul.
            y = jnp.dot(w2s_ref[...], x_ref[...], preferred_element_type=jnp.float32)
        o_ref[...] = (y * scale_ref[...] + shift_ref[...]).astype(o_ref.dtype)
    # Note: the out block index is pinned to (0, 0) through all of phase 0, so the
    # (never-written) block is not flushed until it has been written in phase 1.


# ----------------------------------------------------------------------------- planning
def _vmem_budget_bytes():
    """Usable VMEM budget with headroom; falls back to a v7x-sized 64 MiB physical."""
    cap = None
    try:
        cap = getattr(pltpu.get_tpu_info(), "vmem_capacity_bytes", None)
    except Exception:
        cap = None
    if not cap:
        cap = 64 * 1024 * 1024
    return int(cap * 0.70)


def _plan(m_pad, x_itemsize, out_itemsize, max_tile_m=None, ybuf_dtype=None, cache_y=None):
    """Pick tile_m / nt / y-cache dtype / cache-vs-recompute under the VMEM budget."""
    budget = _vmem_budget_bytes()
    fixed = 2 * 1024 * 1024          # params, w2s, stats scratches, compiler headroom

    # The y cache is resident (72 * m_pad elements), not per-tile.
    if ybuf_dtype is None:
        ybuf_dtype = jnp.float32
        if C_OUT * m_pad * 4 > budget // 2:
            ybuf_dtype = jnp.bfloat16            # halve the dominant resident term (v7x)
    if cache_y is None:
        cache_y = C_OUT * m_pad * jnp.dtype(ybuf_dtype).itemsize <= budget // 2
    ybuf_bytes = C_OUT * m_pad * jnp.dtype(ybuf_dtype).itemsize if cache_y else 0

    # Per-column cost: x / out double buffers + two f32 [72, tile_m] temporaries (y, y*y).
    per_col = 2 * (C_MID * x_itemsize + C_OUT * out_itemsize) + 8 * C_OUT
    cap_cols = (budget - fixed - ybuf_bytes) // per_col
    tile_cap = max(128, (cap_cols // 128) * 128)
    tile_cap = min(tile_cap, MAX_TILE_M)
    if max_tile_m is not None:
        tile_cap = min(tile_cap, max(128, (max_tile_m // 128) * 128))

    # Largest multiple-of-128 divisor of m_pad that fits the cap (m_pad % 128 == 0).
    tile_m, t = 128, 128
    while t <= min(tile_cap, m_pad):
        if m_pad % t == 0:
            tile_m = t
        t += 128
    nt = m_pad // tile_m
    return tile_m, nt, ybuf_dtype, cache_y, budget


# ----------------------------------------------------------------------------- wrapper
def module_forward(x205, x202, params, *, out_dtype=jnp.float32,
                   max_tile_m=None, ybuf_dtype=None, cache_y=None):
    """x205: [1, 18, 1, 1] f32;  x202: [1, 432, H, W] NCHW (feed bf16 when possible —
    the x read dominates HBM traffic).  Returns [1, 72, H, W] in `out_dtype`."""
    w1, b1, w2, gamma, beta = params
    n, c_mid, h, w_sp = x202.shape
    assert n == 1 and c_mid == C_MID, "per-sample SE gate; this kernel handles N=1"
    m = h * w_sp
    m_pad = ((m + 127) // 128) * 128

    x = x202.reshape(C_MID, m)                      # free reshape: native NCHW layout
    if m_pad != m:
        # Zero columns keep sum/sumsq exact; only inv_m (true m) and the final slice change.
        x = jnp.pad(x, ((0, 0), (0, m_pad - m)))
    se = x205.reshape(C_IN_SE, 1).astype(jnp.float32)

    x_itemsize = jnp.dtype(x.dtype).itemsize
    out_itemsize = jnp.dtype(out_dtype).itemsize
    tile_m, nt, ybuf_dt, do_cache, budget = _plan(
        m_pad, x_itemsize, out_itemsize, max_tile_m, ybuf_dtype, cache_y)

    recompute = 2 if (nt > 1 and not do_cache) else 1
    cost = pl.CostEstimate(
        flops=int(2 * C_OUT * C_MID * m_pad * recompute + 2 * C_MID * C_IN_SE
                  + 8 * C_OUT * m_pad),
        transcendentals=int(C_MID),
        bytes_accessed=int(C_MID * m_pad * x_itemsize * recompute
                           + C_OUT * m_pad * out_itemsize
                           + 4 * (C_IN_SE + C_IN_SE * C_MID + C_MID
                                  + C_OUT * C_MID + 2 * C_OUT)),
    )

    if nt == 1:
        # ---- single grid step: matmul + stats + normalize + store (no phase overhead) ----
        out2d = pl.pallas_call(
            functools.partial(fused_single_step_kernel, true_m=m),
            out_shape=jax.ShapeDtypeStruct((C_OUT, m_pad), out_dtype),
            grid=(1,),
            in_specs=[
                pl.BlockSpec((C_IN_SE, 1), lambda i: (0, 0)),        # se vector
                pl.BlockSpec((C_IN_SE, C_MID), lambda i: (0, 0)),    # conv2d66 weight [in,out]
                pl.BlockSpec((1, C_MID), lambda i: (0, 0)),          # conv2d66 bias
                pl.BlockSpec((C_OUT, C_MID), lambda i: (0, 0)),      # conv2d67 weight [out,in]
                pl.BlockSpec((C_OUT, 1), lambda i: (0, 0)),          # BN gamma
                pl.BlockSpec((C_OUT, 1), lambda i: (0, 0)),          # BN beta
                pl.BlockSpec((C_MID, m_pad), lambda i: (0, 0)),      # whole (padded) x
            ],
            out_specs=pl.BlockSpec((C_OUT, m_pad), lambda i: (0, 0)),
            compiler_params=pltpu.CompilerParams(
                dimension_semantics=("arbitrary",),
                vmem_limit_bytes=budget),
            cost_estimate=cost,
        )(se, w1, b1, w2, gamma, beta, x)
    else:
        # ---- two-phase pipelined path ----
        if do_cache:
            # x tiles walked in phase 0; pinned to the resident last block in phase 1
            # so x is never re-fetched from HBM.
            x_index = lambda p, t, _nt=nt: (0, t * (1 - p) + (_nt - 1) * p)
            ybuf_shape = (nt, C_OUT, tile_m)
        else:
            # 2-pass fallback: re-walk x in phase 1 (extra x read, bounded VMEM).
            x_index = lambda p, t: (0, t)
            ybuf_shape = (1, C_OUT, 128)           # unused dummy
        # TODO(synk): on v7x, split the M axis across the two TensorCores (core_map +
        # shared-stats combine) for very large M; single-core is fine at these sizes.
        out2d = pl.pallas_call(
            functools.partial(fused_two_phase_kernel, true_m=m, cache_y=do_cache),
            out_shape=jax.ShapeDtypeStruct((C_OUT, m_pad), out_dtype),
            grid=(2, nt),
            in_specs=[
                pl.BlockSpec((C_IN_SE, 1), lambda p, t: (0, 0)),
                pl.BlockSpec((C_IN_SE, C_MID), lambda p, t: (0, 0)),
                pl.BlockSpec((1, C_MID), lambda p, t: (0, 0)),
                pl.BlockSpec((C_OUT, C_MID), lambda p, t: (0, 0)),
                pl.BlockSpec((C_OUT, 1), lambda p, t: (0, 0)),
                pl.BlockSpec((C_OUT, 1), lambda p, t: (0, 0)),
                pl.BlockSpec((C_MID, tile_m), x_index),
            ],
            # lane-dense [72, tile_m] output blocks; only written (and flushed) in phase 1.
            out_specs=pl.BlockSpec((C_OUT, tile_m), lambda p, t: (0, p * t)),
            scratch_shapes=[
                pltpu.VMEM((C_OUT, C_MID), x.dtype),     # gate-folded conv2d67 weight
                pltpu.VMEM(ybuf_shape, ybuf_dt),         # cached un-normalized y tiles
                pltpu.VMEM((C_OUT, 1), jnp.float32),     # per-channel sum
                pltpu.VMEM((C_OUT, 1), jnp.float32),     # per-channel sum of squares
                pltpu.VMEM((C_OUT, 1), jnp.float32),     # BN scale
                pltpu.VMEM((C_OUT, 1), jnp.float32),     # BN shift
            ],
            compiler_params=pltpu.CompilerParams(
                dimension_semantics=("arbitrary", "arbitrary"),
                vmem_limit_bytes=budget),
            cost_estimate=cost,
        )(se, w1, b1, w2, gamma, beta, x)

    if m_pad != m:
        out2d = out2d[:, :m]                       # drop padded columns
    return out2d.reshape(1, C_OUT, h, w_sp)        # free reshape back to NCHW


# ----------------------------------------------------------------------------- reference
def reference_forward(x205, x202, params):
    """Pure-JAX reference mirroring the PyTorch forward (training-mode BN), in f32."""
    w1, b1, w2, gamma, beta = params
    x = x202.astype(jnp.float32)
    gate_lin = jnp.matmul(x205.reshape(1, C_IN_SE).astype(jnp.float32), w1,
                          precision=jax.lax.Precision.HIGHEST) + b1
    gate = jax.nn.sigmoid(gate_lin)                                     # [1, 432]
    x208 = x * gate.reshape(1, C_MID, 1, 1)
    x209 = jnp.einsum("nchw,oc->nohw", x208, w2,
                      precision=jax.lax.Precision.HIGHEST)              # [1, 72, H, W]
    mean = x209.mean(axis=(0, 2, 3), keepdims=True)
    var = ((x209 - mean) ** 2).mean(axis=(0, 2, 3), keepdims=True)
    return ((x209 - mean) * jax.lax.rsqrt(var + BN_EPS)
            * gamma.reshape(1, C_OUT, 1, 1) + beta.reshape(1, C_OUT, 1, 1))


def init_params(key):
    k1, k2, k3, k4, k5 = jax.random.split(key, 5)
    # conv2d66: PyTorch weight [432, 18, 1, 1] -> stored as [18, 432] ([in, out]).
    w1 = 0.1 * jax.random.normal(k1, (C_IN_SE, C_MID), jnp.float32)
    b1 = 0.1 * jax.random.normal(k2, (1, C_MID), jnp.float32)
    # conv2d67: PyTorch weight [72, 432, 1, 1] -> stored natively as [72, 432] ([out, in]).
    w2 = 0.05 * jax.random.normal(k3, (C_OUT, C_MID), jnp.float32)
    gamma = 1.0 + 0.1 * jax.random.normal(k4, (C_OUT, 1), jnp.float32)
    beta = 0.1 * jax.random.normal(k5, (C_OUT, 1), jnp.float32)
    return (w1, b1, w2, gamma, beta)


if __name__ == "__main__":
    key = jax.random.PRNGKey(0)
    kp, kx1, kx2 = jax.random.split(key, 3)
    params = init_params(kp)
    x205 = jax.random.normal(kx1, (1, C_IN_SE, 1, 1), jnp.float32)

    # (h, w, x dtype, out dtype, kwargs): covers the module's native 28x28 (padded to
    # 896, single grid step) in f32 and bf16 (bf16 output), a multi-tile cached path,
    # a bf16-y-cache path (v7x budget), and the 2-pass (no y cache) fallback.
    cases = [
        (28, 28, jnp.float32, jnp.float32, {}),
        (28, 28, jnp.bfloat16, jnp.bfloat16, {}),
        (48, 48, jnp.bfloat16, jnp.float32, dict(max_tile_m=1152)),
        (48, 48, jnp.bfloat16, jnp.float32, dict(max_tile_m=1152, ybuf_dtype=jnp.bfloat16)),
        (40, 40, jnp.float32, jnp.float32, dict(max_tile_m=512, cache_y=False)),
    ]
    tol = 2e-2
    for (h, w, xdt, odt, kw) in cases:
        kx2, sub = jax.random.split(kx2)
        x202 = jax.random.normal(sub, (1, C_MID, h, w), jnp.float32).astype(xdt)
        out = jax.block_until_ready(module_forward(x205, x202, params, out_dtype=odt, **kw))
        assert out.shape == (1, C_OUT, h, w), out.shape
        out_f32 = out.astype(jnp.float32)
        ref = reference_forward(x205, x202, params)
        err = float(jnp.max(jnp.abs(out_f32 - ref)))
        assert jnp.allclose(out_f32, ref, atol=tol, rtol=tol), (h, w, str(xdt), str(odt), err)

    print("KERNEL_OK")
</pallas_src>

<mosaic_0001>
module attributes {stable_mosaic.version = 11 : i64} {
  func.func @fused_single_step_kernel(%arg0: i32, %arg1: memref<18x1xf32, #tpu.memory_space<vmem>>, %arg2: memref<18x432xf32, #tpu.memory_space<vmem>>, %arg3: memref<1x432xf32, #tpu.memory_space<vmem>>, %arg4: memref<72x432xf32, #tpu.memory_space<vmem>>, %arg5: memref<72x1xf32, #tpu.memory_space<vmem>>, %arg6: memref<72x1xf32, #tpu.memory_space<vmem>>, %arg7: memref<432x896xf32, #tpu.memory_space<vmem>>, %arg8: memref<72x896xf32, #tpu.memory_space<vmem>>) attributes {dimension_semantics = [#tpu.dimension_semantics<arbitrary>], iteration_bounds = array<i64: 1>, scalar_prefetch = 0 : i64, scratch_operands = 0 : i64, tpu.core_type = #tpu.core_type<tc>, window_params = [{pipeline_mode = #tpu.pipeline_mode<synchronous>, transform_indices = @transform_0, window_bounds = array<i64: 18, 1>}, {pipeline_mode = #tpu.pipeline_mode<synchronous>, transform_indices = @transform_1, window_bounds = array<i64: 18, 432>}, {pipeline_mode = #tpu.pipeline_mode<synchronous>, transform_indices = @transform_2, window_bounds = array<i64: 1, 432>}, {pipeline_mode = #tpu.pipeline_mode<synchronous>, transform_indices = @transform_3, window_bounds = array<i64: 72, 432>}, {pipeline_mode = #tpu.pipeline_mode<synchronous>, transform_indices = @transform_4, window_bounds = array<i64: 72, 1>}, {pipeline_mode = #tpu.pipeline_mode<synchronous>, transform_indices = @transform_5, window_bounds = array<i64: 72, 1>}, {pipeline_mode = #tpu.pipeline_mode<synchronous>, transform_indices = @transform_6, window_bounds = array<i64: 432, 896>}, {pipeline_mode = #tpu.pipeline_mode<synchronous>, transform_indices = @transform_7, window_bounds = array<i64: 72, 896>}]} {
    %c0 = arith.constant 0 : index
    %c0_0 = arith.constant 0 : index
    %0 = vector.load %arg1[%c0, %c0_0] : memref<18x1xf32, #tpu.memory_space<vmem>>, vector<18x1xf32>
    %c0_1 = arith.constant 0 : index
    %c0_2 = arith.constant 0 : index
    %1 = vector.load %arg2[%c0_1, %c0_2] : memref<18x432xf32, #tpu.memory_space<vmem>>, vector<18x432xf32>
    %2 = vector.broadcast %0 : vector<18x1xf32> to vector<18x432xf32>
    %3 = arith.mulf %2, %1 : vector<18x432xf32>
    %cst = arith.constant dense<0.000000e+00> : vector<432xf32>
    %4 = vector.multi_reduction <add>, %3, %cst [0] : vector<18x432xf32> to vector<432xf32>
    %5 = vector.shape_cast %4 : vector<432xf32> to vector<1x432xf32>
    %c0_3 = arith.constant 0 : index
    %c0_4 = arith.constant 0 : index
    %6 = vector.load %arg3[%c0_3, %c0_4] : memref<1x432xf32, #tpu.memory_space<vmem>>, vector<1x432xf32>
    %7 = arith.addf %5, %6 : vector<1x432xf32>
    %8 = arith.negf %7 : vector<1x432xf32>
    %9 = math.exp %8 : vector<1x432xf32>
    %cst_5 = arith.constant 1.000000e+00 : f32
    %10 = vector.broadcast %cst_5 : f32 to vector<1x432xf32>
    %11 = arith.addf %10, %9 : vector<1x432xf32>
    %12 = arith.divf %10, %11 : vector<1x432xf32>
    %c0_6 = arith.constant 0 : index
    %c0_7 = arith.constant 0 : index
    %13 = vector.load %arg4[%c0_6, %c0_7] : memref<72x432xf32, #tpu.memory_space<vmem>>, vector<72x432xf32>
    %14 = vector.broadcast %12 : vector<1x432xf32> to vector<72x432xf32>
    %15 = arith.mulf %13, %14 : vector<72x432xf32>
    %c0_8 = arith.constant 0 : index
    %c0_9 = arith.constant 0 : index
    %16 = vector.load %arg7[%c0_8, %c0_9] : memref<432x896xf32, #tpu.memory_space<vmem>>, vector<432x896xf32>
    %cst_10 = arith.constant dense<0.000000e+00> : vector<72x896xf32>
    %17 = tpu.matmul %15, %16, %cst_10 {dimension_numbers = #tpu.dot_dimension_numbers<[1], [0], [0], [1], [0, 0, 1, 1], [], []>} : vector<72x432xf32>, vector<432x896xf32>, vector<72x896xf32> -> vector<72x896xf32>
    %cst_11 = arith.constant dense<0.000000e+00> : vector<72xf32>
    %18 = vector.multi_reduction <add>, %17, %cst_11 [1] : vector<72x896xf32> to vector<72xf32>
    %19 = vector.shape_cast %18 : vector<72xf32> to vector<72x1xf32>
    %cst_12 = arith.constant 0.00127551018 : f32
    %20 = vector.broadcast %cst_12 : f32 to vector<72x1xf32>
    %21 = arith.mulf %19, %20 : vector<72x1xf32>
    %22 = arith.mulf %17, %17 : vector<72x896xf32>
    %cst_13 = arith.constant dense<0.000000e+00> : vector<72xf32>
    %23 = vector.multi_reduction <add>, %22, %cst_13 [1] : vector<72x896xf32> to vector<72xf32>
    %24 = vector.shape_cast %23 : vector<72xf32> to vector<72x1xf32>
    %cst_14 = arith.constant 0.00127551018 : f32
    %25 = vector.broadcast %cst_14 : f32 to vector<72x1xf32>
    %26 = arith.mulf %24, %25 : vector<72x1xf32>
    %27 = arith.mulf %21, %21 : vector<72x1xf32>
    %28 = arith.subf %26, %27 : vector<72x1xf32>
    %c0_15 = arith.constant 0 : index
    %c0_16 = arith.constant 0 : index
    %29 = vector.load %arg5[%c0_15, %c0_16] : memref<72x1xf32, #tpu.memory_space<vmem>>, vector<72x1xf32>
    %cst_17 = arith.constant 1.000000e-03 : f32
    %30 = vector.broadcast %cst_17 : f32 to vector<72x1xf32>
    %31 = arith.addf %28, %30 : vector<72x1xf32>
    %32 = math.rsqrt %31 : vector<72x1xf32>
    %33 = arith.mulf %29, %32 : vector<72x1xf32>
    %c0_18 = arith.constant 0 : index
    %c0_19 = arith.constant 0 : index
    %34 = vector.load %arg6[%c0_18, %c0_19] : memref<72x1xf32, #tpu.memory_space<vmem>>, vector<72x1xf32>
    %35 = arith.mulf %21, %33 : vector<72x1xf32>
    %36 = arith.subf %34, %35 : vector<72x1xf32>
    %37 = vector.broadcast %33 : vector<72x1xf32> to vector<72x896xf32>
    %38 = arith.mulf %17, %37 : vector<72x896xf32>
    %39 = vector.broadcast %36 : vector<72x1xf32> to vector<72x896xf32>
    %40 = arith.addf %38, %39 : vector<72x896xf32>
    %c0_20 = arith.constant 0 : index
    %c0_21 = arith.constant 0 : index
    %41 = vector.load %arg8[%c0_20, %c0_21] : memref<72x896xf32, #tpu.memory_space<vmem>>, vector<72x896xf32>
    tpu.vector_store %arg8[%c0_20, %c0_21], %40 {strides = array<i32>} : memref<72x896xf32, #tpu.memory_space<vmem>>, vector<72x896xf32>,
    return
  }
  func.func @transform_0(%arg0: i32) -> (i32, i32) {
    %c0_i32 = arith.constant 0 : i32
    %c0_i32_0 = arith.constant 0 : i32
    %c0_i32_1 = arith.constant 0 : i32
    return %c0_i32, %c0_i32_0 : i32, i32
  }
  func.func @transform_1(%arg0: i32) -> (i32, i32) {
    %c0_i32 = arith.constant 0 : i32
    %c0_i32_0 = arith.constant 0 : i32
    %c0_i32_1 = arith.constant 0 : i32
    return %c0_i32, %c0_i32_0 : i32, i32
  }
  func.func @transform_2(%arg0: i32) -> (i32, i32) {
    %c0_i32 = arith.constant 0 : i32
    %c0_i32_0 = arith.constant 0 : i32
    %c0_i32_1 = arith.constant 0 : i32
    return %c0_i32, %c0_i32_0 : i32, i32
  }
  func.func @transform_3(%arg0: i32) -> (i32, i32) {
    %c0_i32 = arith.constant 0 : i32
    %c0_i32_0 = arith.constant 0 : i32
    %c0_i32_1 = arith.constant 0 : i32
    return %c0_i32, %c0_i32_0 : i32, i32
  }
  func.func @transform_4(%arg0: i32) -> (i32, i32) {
    %c0_i32 = arith.constant 0 : i32
    %c0_i32_0 = arith.constant 0 : i32
    %c0_i32_1 = arith.constant 0 : i32
    return %c0_i32, %c0_i32_0 : i32, i32
  }
  func.func @transform_5(%arg0: i32) -> (i32, i32) {
    %c0_i32 = arith.constant 0 : i32
    %c0_i32_0 = arith.constant 0 : i32
    %c0_i32_1 = arith.constant 0 : i32
    return %c0_i32, %c0_i32_0 : i32, i32
  }
  func.func @transform_6(%arg0: i32) -> (i32, i32) {
    %c0_i32 = arith.constant 0 : i32
    %c0_i32_0 = arith.constant 0 : i32
    %c0_i32_1 = arith.constant 0 : i32
    return %c0_i32, %c0_i32_0 : i32, i32
  }
  func.func @transform_7(%arg0: i32) -> (i32, i32) {
    %c0_i32 = arith.constant 0 : i32
    %c0_i32_0 = arith.constant 0 : i32
    %c0_i32_1 = arith.constant 0 : i32
    return %c0_i32, %c0_i32_0 : i32, i32
  }
}

</mosaic_0001>

<bundles_post_ra>
// kernel: tpu_custom_call.1
= control target key start
LH: loop header
LB: loop body
LE: loop exit
PB: predicated region body
PF: predicated region fallthrough
CT: control target
= control target key end

     0   :  { %12 = vsyncpa [#allocation3], 0  ;;  %s3633_s0 = inlined_call_operand.vmem [shape: f32[18,1], index: 0, kind: input, shape index: {}]   ;;  %s3634_s1 = inlined_call_operand.hbm [shape: f32[18,432], index: 1, kind: input, shape index: {}]   ;;  %s3635_s2 = inlined_call_operand.hbm [shape: f32[1,432], index: 2, kind: input, shape index: {}]   ;;  %s3636_s3 = inlined_call_operand.hbm [shape: f32[72,432], index: 3, kind: input, shape index: {}]   ;;  %s3637_s4 = inlined_call_operand.vmem [shape: f32[72,1], index: 4, kind: input, shape index: {}]   ;;  %s3638_s5 = inlined_call_operand.vmem [shape: f32[72,1], index: 5, kind: input, shape index: {}]   ;;  %s3639_s6 = inlined_call_operand.hbm [shape: f32[432,896], index: 6, kind: input, shape index: {}]   ;;  %s3640_s7 = inlined_call_operand.hbm [shape: f32[72,896], index: 7, kind: output, shape index: {}]  }
   0x1   :  { %13 = vsyncpa [#allocation6], 0 }
   0x2   :  { %14 = vsyncpa [#allocation9], 0 }
   0x3   :  { %15 = vsyncpa [#allocation4], 0  ;;  %s2542_s24 = smov [#allocation5]   ;;  %s2543_s26 = smov [#allocation2]  }
   0x4   :  { %s36_s25 = sshll.u32 %s2542_s24, 4  ;;  %s23_s27 = sshll.u32 %s2543_s26, 4  ;;  %s37_s25 = int_to_ptr.vmem [resolvable:$true] %s36_s25  ;;  %s24_s27 = int_to_ptr.vmem [resolvable:$true] %s23_s27 }
   0x5   :  { %s2442_s28 = scalar_lea.vmem %s37_s25, 64  ;;  %p2447_p1 = scmp.lt.s32.totalorder %s37_s25, %s37_s25 }
   0x6   :  { %p2443_p0 = scmp.ne.s32.totalorder %s37_s25, %s2442_s28  ;;  %p2448_p2 = scmp.lt.s32.totalorder %s2442_s28, %s2442_s28 }
   0x8   :  { %p2449_p3 = por %p2448_p2, %p2447_p1 }
   0xa   :  { %p2450_p4 = pnand %p2449_p3, %p2443_p0 }
   0xc   :  { %2453 = shalt.err (!%p2450_p4)
}
   0xd   :  { %39 = dma.hbm_to_vmem [thread:$0]  %s3635_s2, 64, %s37_s25, [#allocation6]  }
   0xe   :  { %s2462_s8 = scalar_lea.vmem %s24_s27, 1536  ;;  %p2467_p6 = scmp.lt.s32.totalorder %s24_s27, %s24_s27 }
   0xf   :  { %p2463_p5 = scmp.ne.s32.totalorder %s24_s27, %s2462_s8  ;;  %p2468_p7 = scmp.lt.s32.totalorder %s2462_s8, %s2462_s8 }
  0x11   :  { %p2469_p8 = por %p2468_p7, %p2467_p6 }
  0x13   :  { %p2470_p9 = pnand %p2469_p8, %p2463_p5 }
  0x15   :  { %2473 = shalt.err (!%p2470_p9)
}
  0x16   :  { %s2544_s9 = smov 512   ;;  %s2545_s10 = smov 32  }
  0x17   :  { %29 = dma.hbm_to_vmem [thread:$0]  %s3634_s1, 1536, %s24_s27, [#allocation3], %s2544_s9, %s2544_s9, %s2545_s10  }
  0x18   :  { %s2546_s13 = smov [#allocation7]   ;;  %s2547_s15 = smov [#allocation8]  }
  0x19   :  { %s45_s14 = sshll.u32 %s2546_s13, 4  ;;  %s61_s16 = sshll.u32 %s2547_s15, 4  ;;  %s46_s14 = int_to_ptr.vmem [resolvable:$true] %s45_s14  ;;  %s62_s16 = int_to_ptr.vmem [resolvable:$true] %s61_s16 }
  0x1a   :  { %s2482_s2 = scalar_lea.vmem %s46_s14, 4608  ;;  %p2487_p11 = scmp.lt.s32.totalorder %s46_s14, %s46_s14 }
  0x1b   :  { %p2483_p10 = scmp.ne.s32.totalorder %s46_s14, %s2482_s2  ;;  %p2488_p12 = scmp.lt.s32.totalorder %s2482_s2, %s2482_s2 }
  0x1d   :  { %p2489_p13 = por %p2488_p12, %p2487_p11 }
  0x1f   :  { %p2490_p0 = pnand %p2489_p13, %p2483_p10 }
  0x21   :  { %2493 = shalt.err (!%p2490_p0)
}
  0x22   :  { %51 = dma.hbm_to_vmem [thread:$0]  %s3636_s3, 4608, %s46_s14, [#allocation6], %s2544_s9, %s2544_s9, %s2545_s10  }
  0x23   :  { %s2502_s19 = scalar_lea.vmem %s62_s16, 48384  ;;  %p2507_p2 = scmp.lt.s32.totalorder %s62_s16, %s62_s16 }
  0x24   :  { %p2503_p1 = scmp.ne.s32.totalorder %s62_s16, %s2502_s19  ;;  %p2508_p3 = scmp.lt.s32.totalorder %s2502_s19, %s2502_s19 }
  0x26   :  { %p2509_p4 = por %p2508_p3, %p2507_p2 }
  0x28   :  { %p2510_p5 = pnand %p2509_p4, %p2503_p1 }
  0x2a   :  { %2513 = shalt.err (!%p2510_p5)
}
  0x2b   :  { %s2548_s1 = smov 896   ;;  %s2549_s20 = smov 56  }
  0x2c   :  { %67 = dma.hbm_to_vmem [thread:$0]  %s3639_s6, 48384, %s62_s16, [#allocation9], %s2548_s1, %s2548_s1, %s2549_s20  }
  0x2d   :  { %2534 = dma.done.wait [#allocation3], 1536  }
  0x2e   :  { %2535 = vsyncadd [#allocation3], 4294965760 }
  0x2f   :  { %2536 = dma.done.wait [#allocation6], 4672  }
  0x30   :  { %2537 = vsyncadd [#allocation6], 4294962624 }
  0x31   :  { %2538 = dma.done.wait [#allocation9], 48384  }
  0x32   :  { %2539 = vsyncadd [#allocation9], 4294918912  ;;  %v2550_v0 = vmov 0   ;;  %v80_v1 = vld [vmem:[%s3633_s0] sm:$0xff]  ;;  %v82_v2 = vld [vmem:[%s3633_s0 + $0x10] sm:$0x3] }
  0x33   :  { %2398 = vset.pattern.permute.xlu0 %v2550_v0  ;;  %2399 = vset.pattern.permute.xlu1 %v2550_v0  ;;  %v407_v3 = vld [vmem:[#allocation8 + $0x350] sm:$0xff]  ;;  %v406_v4 = vld [vmem:[#allocation8 + $0x348] sm:$0xff]  ;;  %v400_v5 = vld [vmem:[#allocation8 + $0x318] sm:$0xff]  ;;  %vm150_vm0 = vcmask 392192   ;;  %vm123_vm1 = vcmask 1041408   ;;  %vm154_vm2 = vcmask 386048  }
  0x34   :  { %97 = vperm.xlu0 %2398, %v80_v1   ;;  %107 = vperm.xlu1 %2399, %v82_v2   ;;  %v81_v6 = vld [vmem:[%s3633_s0 + $0x8] sm:$0xff]  ;;  %v399_v7 = vld [vmem:[#allocation8 + $0x310] sm:$0xff]  ;;  %v392_v9 = vld [vmem:[#allocation8 + $0x2d8] sm:$0xff] }
  0x35   :  { %706 = vmatprep.subr.mxu0 %v407_v3  ;;  %v393_v8 = vld [vmem:[#allocation8 + $0x2e0] sm:$0xff]  ;;  %v386_v10 = vld [vmem:[#allocation8 + $0x2a8] sm:$0xff]  ;;  %v379_v12 = vld [vmem:[#allocation8 + $0x270] sm:$0xff] }
  0x36   :  { %707 = vmatpush1.msra.mxu0 %v406_v4  ;;  %v385_v11 = vld [vmem:[#allocation8 + $0x2a0] sm:$0xff]  ;;  %v378_v13 = vld [vmem:[#allocation8 + $0x268] sm:$0xff]  ;;  %v372_v14 = vld [vmem:[#allocation8 + $0x238] sm:$0xff] }
  0x37   :  { %708 = vmatprep.subr.mxu0 %v400_v5  ;;  %v371_v15 = vld [vmem:[#allocation8 + $0x230] sm:$0xff]  ;;  %v365_v16 = vld [vmem:[#allocation8 + $0x200] sm:$0xff]  ;;  %v364_v17 = vld [vmem:[#allocation8 + $0x1f8] sm:$0xff] }
  0x38   :  { %102 = vperm.xlu0 %2398, %v81_v6   ;;  %709 = vmatpush1.msra.mxu0 %v399_v7  ;;  %v358_v18 = vld [vmem:[#allocation8 + $0x1c8] sm:$0xff]  ;;  %v357_v19 = vld [vmem:[#allocation8 + $0x1c0] sm:$0xff]  ;;  %v351_v20 = vld [vmem:[#allocation8 + $0x190] sm:$0xff] }
  0x39   :  { %710 = vmatprep.subr.mxu0 %v393_v8  ;;  %v631_v21 = vld [vmem:[#allocation8 + $0xa50] sm:$0xff]  ;;  %v350_v22 = vld [vmem:[#allocation8 + $0x188] sm:$0xff]  ;;  %v344_v24 = vld [vmem:[#allocation8 + $0x158] sm:$0xff] }
  0x3a   :  { %711 = vmatpush1.msra.mxu0 %v392_v9  ;;  %825 = vmatprep.subr.mxu1 %v631_v21  ;;  %v630_v23 = vld [vmem:[#allocation8 + $0xa48] sm:$0xff]  ;;  %v624_v25 = vld [vmem:[#allocation8 + $0xa18] sm:$0xff]  ;;  %v343_v26 = vld [vmem:[#allocation8 + $0x150] sm:$0xff] }
  0x3b   :  { %712 = vmatprep.subr.mxu0 %v386_v10  ;;  %826 = vmatpush1.msra.mxu1 %v630_v23  ;;  %v623_v27 = vld [vmem:[#allocation8 + $0xa10] sm:$0xff]  ;;  %v337_v28 = vld [vmem:[#allocation8 + $0x120] sm:$0xff]  ;;  %v336_v30 = vld [vmem:[#allocation8 + $0x118] sm:$0xff] }
  0x3c   :  { %713 = vmatpush1.msra.mxu0 %v385_v11  ;;  %827 = vmatprep.subr.mxu1 %v624_v25  ;;  %v617_v29 = vld [vmem:[#allocation8 + $0x9e0] sm:$0xff]  ;;  %v616_v31 = vld [vmem:[#allocation8 + $0x9d8] sm:$0xff]  ;;  %v330_v32 = vld [vmem:[#allocation8 + $0xe8] sm:$0xff] }
  0x3d   :  { %714 = vmatprep.subr.mxu0 %v379_v12  ;;  %828 = vmatpush1.msra.mxu1 %v623_v27  ;;  %v610_v33 = vld [vmem:[#allocation8 + $0x9a8] sm:$0xff]  ;;  %v329_v34 = vld [vmem:[#allocation8 + $0xe0] sm:$0xff]  ;;  %v323_v36 = vld [vmem:[#allocation8 + $0xb0] sm:$0xff] }
  0x3e   :  { %715 = vmatpush1.msra.mxu0 %v378_v13  ;;  %829 = vmatprep.subr.mxu1 %v617_v29  ;;  %v609_v35 = vld [vmem:[#allocation8 + $0x9a0] sm:$0xff]  ;;  %v603_v37 = vld [vmem:[#allocation8 + $0x970] sm:$0xff]  ;;  %v322_v38 = vld [vmem:[#allocation8 + $0xa8] sm:$0xff] }
  0x3f   :  { %716 = vmatprep.subr.mxu0 %v372_v14  ;;  %830 = vmatpush1.msra.mxu1 %v616_v31  ;;  %v602_v39 = vld [vmem:[#allocation8 + $0x968] sm:$0xff]  ;;  %v316_v40 = vld [vmem:[#allocation8 + $0x78] sm:$0xff]  ;;  %v315_v42 = vld [vmem:[#allocation8 + $0x70] sm:$0xff] }
  0x40   :  { %717 = vmatpush1.msra.mxu0 %v371_v15  ;;  %831 = vmatprep.subr.mxu1 %v610_v33  ;;  %v596_v41 = vld [vmem:[#allocation8 + $0x938] sm:$0xff]  ;;  %v595_v43 = vld [vmem:[#allocation8 + $0x930] sm:$0xff]  ;;  %v309_v44 = vld [vmem:[#allocation8 + $0x40] sm:$0xff] }
  0x41   :  { %718 = vmatprep.subr.mxu0 %v365_v16  ;;  %832 = vmatpush1.msra.mxu1 %v609_v35  ;;  %v589_v45 = vld [vmem:[#allocation8 + $0x900] sm:$0xff]  ;;  %v308_v46 = vld [vmem:[#allocation8 + $0x38] sm:$0xff]  ;;  %v302_v48 = vld [vmem:[#allocation8 + $0x8] sm:$0xff] }
  0x42   :  { %719 = vmatpush1.msra.mxu0 %v364_v17  ;;  %833 = vmatprep.subr.mxu1 %v603_v37  ;;  %v588_v47 = vld [vmem:[#allocation8 + $0x8f8] sm:$0xff]  ;;  %v582_v49 = vld [vmem:[#allocation8 + $0x8c8] sm:$0xff]  ;;  %v301_v50 = vld [vmem:[#allocation8] sm:$0xff] }
  0x43   :  { %720 = vmatprep.subr.mxu0 %v358_v18  ;;  %834 = vmatpush1.msra.mxu1 %v602_v39  ;;  %v581_v51 = vld [vmem:[#allocation8 + $0x8c0] sm:$0xff]  ;;  %v519_v52 = vld [vmem:[#allocation8 + $0x6d0] sm:$0xff]  ;;  %v518_v54 = vld [vmem:[#allocation8 + $0x6c8] sm:$0xff] }
  0x44   :  { %721 = vmatpush1.msra.mxu0 %v357_v19  ;;  %835 = vmatprep.subr.mxu1 %v596_v41  ;;  %v575_v53 = vld [vmem:[#allocation8 + $0x890] sm:$0xff]  ;;  %v574_v55 = vld [vmem:[#allocation8 + $0x888] sm:$0xff]  ;;  %v512_v56 = vld [vmem:[#allocation8 + $0x698] sm:$0xff] }
  0x45   :  { %722 = vmatprep.subr.mxu0 %v351_v20  ;;  %836 = vmatpush1.msra.mxu1 %v595_v43  ;;  %v568_v57 = vld [vmem:[#allocation8 + $0x858] sm:$0xff]  ;;  %v511_v58 = vld [vmem:[#allocation8 + $0x690] sm:$0xff]  ;;  %v505_v60 = vld [vmem:[#allocation8 + $0x660] sm:$0xff] }
  0x46   :  { %723 = vmatpush1.msra.mxu0 %v350_v22  ;;  %837 = vmatprep.subr.mxu1 %v589_v45  ;;  %v567_v59 = vld [vmem:[#allocation8 + $0x850] sm:$0xff]  ;;  %v561_v61 = vld [vmem:[#allocation8 + $0x820] sm:$0xff]  ;;  %v504_v62 = vld [vmem:[#allocation8 + $0x658] sm:$0xff] }
  0x47   :  { %724 = vmatprep.subr.mxu0 %v344_v24  ;;  %838 = vmatpush1.msra.mxu1 %v588_v47  ;;  %v560_v63 = vld [vmem:[#allocation8 + $0x818] sm:$0xff]  ;;  %v498_v0 = vld [vmem:[#allocation8 + $0x628] sm:$0xff]  ;;  %v497_v2 = vld [vmem:[#allocation8 + $0x620] sm:$0xff] }
  0x48   :  { %725 = vmatpush1.msra.mxu0 %v343_v26  ;;  %839 = vmatprep.subr.mxu1 %v582_v49  ;;  %v554_v1 = vld [vmem:[#allocation8 + $0x7e8] sm:$0xff]  ;;  %v553_v3 = vld [vmem:[#allocation8 + $0x7e0] sm:$0xff]  ;;  %v491_v4 = vld [vmem:[#allocation8 + $0x5f0] sm:$0xff] }
  0x49   :  { %726 = vmatprep.subr.mxu0 %v337_v28  ;;  %840 = vmatpush1.msra.mxu1 %v581_v51  ;;  %v547_v5 = vld [vmem:[#allocation8 + $0x7b0] sm:$0xff]  ;;  %v490_v6 = vld [vmem:[#allocation8 + $0x5e8] sm:$0xff]  ;;  %v484_v8 = vld [vmem:[#allocation8 + $0x5b8] sm:$0xff] }
  0x4a   :  { %727 = vmatpush1.msra.mxu0 %v336_v30  ;;  %841 = vmatprep.subr.mxu1 %v575_v53  ;;  %v546_v7 = vld [vmem:[#allocation8 + $0x7a8] sm:$0xff]  ;;  %v540_v9 = vld [vmem:[#allocation8 + $0x778] sm:$0xff]  ;;  %v483_v10 = vld [vmem:[#allocation8 + $0x5b0] sm:$0xff] }
  0x4b   :  { %728 = vmatprep.subr.mxu0 %v330_v32  ;;  %842 = vmatpush1.msra.mxu1 %v574_v55  ;;  %v539_v11 = vld [vmem:[#allocation8 + $0x770] sm:$0xff]  ;;  %v477_v12 = vld [vmem:[#allocation8 + $0x580] sm:$0xff]  ;;  %v476_v14 = vld [vmem:[#allocation8 + $0x578] sm:$0xff] }
  0x4c   :  { %729 = vmatpush1.msra.mxu0 %v329_v34  ;;  %843 = vmatprep.subr.mxu1 %v568_v57  ;;  %v533_v13 = vld [vmem:[#allocation8 + $0x740] sm:$0xff]  ;;  %v532_v15 = vld [vmem:[#allocation8 + $0x738] sm:$0xff]  ;;  %v470_v16 = vld [vmem:[#allocation8 + $0x548] sm:$0xff] }
  0x4d   :  { %730 = vmatprep.subr.mxu0 %v323_v36  ;;  %844 = vmatpush1.msra.mxu1 %v567_v59  ;;  %v526_v17 = vld [vmem:[#allocation8 + $0x708] sm:$0xff]  ;;  %v469_v18 = vld [vmem:[#allocation8 + $0x540] sm:$0xff]  ;;  %v463_v20 = vld [vmem:[#allocation8 + $0x510] sm:$0xff] }
  0x4e   :  { %731 = vmatpush1.msra.mxu0 %v322_v38  ;;  %845 = vmatprep.subr.mxu1 %v561_v61  ;;  %v525_v19 = vld [vmem:[#allocation8 + $0x700] sm:$0xff]  ;;  %v462_v22 = vld [vmem:[#allocation8 + $0x508] sm:$0xff]  ;;  %v672_v23 = vld [vmem:[#allocation8 + $0xb98] sm:$0xff] }
  0x4f   :  { %732 = vmatprep.subr.mxu0 %v316_v40  ;;  %846 = vmatpush1.msra.mxu1 %v560_v63  ;;  %v673_v21 = vld [vmem:[#allocation8 + $0xba0] sm:$0xff]  ;;  %v456_v24 = vld [vmem:[#allocation8 + $0x4d8] sm:$0xff]  ;;  %v666_v25 = vld [vmem:[#allocation8 + $0xb68] sm:$0xff] }
  0x50   :  { %733 = vmatpush1.msra.mxu0 %v315_v42  ;;  %847 = vmatprep.subr.mxu1 %v554_v1  ;;  %v455_v26 = vld [vmem:[#allocation8 + $0x4d0] sm:$0xff]  ;;  %v665_v27 = vld [vmem:[#allocation8 + $0xb60] sm:$0xff]  ;;  %v448_v30 = vld [vmem:[#allocation8 + $0x498] sm:$0xff] }
  0x51   :  { %734 = vmatprep.subr.mxu0 %v309_v44  ;;  %848 = vmatpush1.msra.mxu1 %v553_v3  ;;  %v449_v28 = vld [vmem:[#allocation8 + $0x4a0] sm:$0xff]  ;;  %v659_v29 = vld [vmem:[#allocation8 + $0xb30] sm:$0xff]  ;;  %v658_v31 = vld [vmem:[#allocation8 + $0xb28] sm:$0xff] }
  0x52   :  { %735 = vmatpush1.msra.mxu0 %v308_v46  ;;  %849 = vmatprep.subr.mxu1 %v547_v5  ;;  %v442_v32 = vld [vmem:[#allocation8 + $0x468] sm:$0xff]  ;;  %v652_v33 = vld [vmem:[#allocation8 + $0xaf8] sm:$0xff]  ;;  %v441_v34 = vld [vmem:[#allocation8 + $0x460] sm:$0xff]  ;;  %v165_v5 = vlaneseq }
  0x53   :  { %736 = vmatprep.subr.mxu0 %v302_v48  ;;  %850 = vmatpush1.msra.mxu1 %v546_v7  ;;  %v651_v35 = vld [vmem:[#allocation8 + $0xaf0] sm:$0xff]  ;;  %v645_v37 = vld [vmem:[#allocation8 + $0xac0] sm:$0xff]  ;;  %v434_v38 = vld [vmem:[#allocation8 + $0x428] sm:$0xff] }
  0x54   :  { %737 = vmatpush1.msra.mxu0 %v301_v50  ;;  %851 = vmatprep.subr.mxu1 %v540_v9  ;;  %v435_v36 = vld [vmem:[#allocation8 + $0x430] sm:$0xff]  ;;  %v644_v39 = vld [vmem:[#allocation8 + $0xab8] sm:$0xff]  ;;  %v638_v41 = vld [vmem:[#allocation8 + $0xa88] sm:$0xff] }
  0x55   :  { %738 = vmatprep.subr.mxu0 %v519_v52  ;;  %852 = vmatpush1.msra.mxu1 %v539_v11  ;;  %v428_v40 = vld [vmem:[#allocation8 + $0x3f8] sm:$0xff]  ;;  %v427_v42 = vld [vmem:[#allocation8 + $0x3f0] sm:$0xff]  ;;  %v637_v43 = vld [vmem:[#allocation8 + $0xa80] sm:$0xff] }
  0x56   :  { %739 = vmatpush2.msra.mxu0 %v518_v54  ;;  %853 = vmatprep.subr.mxu1 %v533_v13  ;;  %v421_v44 = vld [vmem:[#allocation8 + $0x3c0] sm:$0xff]  ;;  %v420_v46 = vld [vmem:[#allocation8 + $0x3b8] sm:$0xff]  ;;  %v414_v47 = vld [vmem:[#allocation8 + $0x388] sm:$0xff] }
  0x57   :  { %740 = vmatprep.subr.mxu0 %v512_v56  ;;  %854 = vmatpush1.msra.mxu1 %v532_v15  ;;  %v409_v45 = vld [vmem:[#allocation8 + $0x360] sm:$0xff]  ;;  %v86_v50 = vld [vmem:[#allocation2 + $0x18] sm:$0xff]  ;;  %v91_v51 = vld [vmem:[#allocation2 + $0x40] sm:$0x3] }
  0x58   :  { %741 = vmatpush2.msra.mxu0 %v511_v58  ;;  %855 = vmatprep.subr.mxu1 %v526_v17  ;;  %v413_v48 = vld [vmem:[#allocation8 + $0x380] sm:$0xff]  ;;  %v93_v53 = vld [vmem:[#allocation2 + $0x50] sm:$0x3]  ;;  %v94_v54 = vld [vmem:[#allocation2 + $0x58] sm:$0x3] }
  0x59   :  { %742 = vmatprep.subr.mxu0 %v505_v60  ;;  %856 = vmatpush1.msra.mxu1 %v525_v19  ;;  %v633_v49 = vld [vmem:[#allocation8 + $0xa60] sm:$0xff]  ;;  %v85_v59 = vld [vmem:[#allocation2 + $0x10] sm:$0xff] }
  0x5a   :  { %743 = vmatpush2.msra.mxu0 %v504_v62  ;;  %877 = vmatprep.subr.mxu1 %v673_v21  ;;  %v92_v52 = vld [vmem:[#allocation2 + $0x48] sm:$0x3]  ;;  %v83_v55 = vld [vmem:[#allocation2] sm:$0xff]  ;;  %v89_v63 = vld [vmem:[#allocation2 + $0x30] sm:$0xff] }
  0x5b   :  { %744 = vmatprep.subr.mxu0 %v498_v0  ;;  %878 = vmatpush2.msra.mxu1 %v672_v23  ;;  %v84_v58 = vld [vmem:[#allocation2 + $0x8] sm:$0xff]  ;;  %v87_v61 = vld [vmem:[#allocation2 + $0x20] sm:$0xff]  ;;  %v90_v0 = vld [vmem:[#allocation2 + $0x38] sm:$0xff] }
  0x5c   :  { %745 = vmatpush2.msra.mxu0 %v497_v2  ;;  %879 = vmatprep.subr.mxu1 %v666_v25  ;;  %v88_v62 = vld [vmem:[#allocation2 + $0x28] sm:$0xff] }
  0x5d   :  { %746 = vmatprep.subr.mxu0 %v491_v4  ;;  %880 = vmatpush2.msra.mxu1 %v665_v27  ;;  %v166_v27 = vshrl.u32 %v165_v5, 7 }
  0x5e   :  { %747 = vmatpush2.msra.mxu0 %v490_v6  ;;  %881 = vmatprep.subr.mxu1 %v659_v29 }
  0x5f   :  { %748 = vmatprep.subr.mxu0 %v484_v8  ;;  %882 = vmatpush2.msra.mxu1 %v658_v31 }
  0x60   :  { %749 = vmatpush2.msra.mxu0 %v483_v10  ;;  %883 = vmatprep.subr.mxu1 %v652_v33 }
  0x61   :  { %750 = vmatprep.subr.mxu0 %v477_v12  ;;  %884 = vmatpush2.msra.mxu1 %v651_v35 }
  0x62   :  { %751 = vmatpush2.msra.mxu0 %v476_v14  ;;  %885 = vmatprep.subr.mxu1 %v645_v37  ;;  %v171_v37 = vsub.s32 1, %v166_v27 }
  0x63   :  { %752 = vmatprep.subr.mxu0 %v470_v16  ;;  %886 = vmatpush2.msra.mxu1 %v644_v39  ;;  %v163_v39 = vld [vmem:[#allocation5] sm:$0xf] }
  0x64   :  { %753 = vmatpush2.msra.mxu0 %v469_v18  ;;  %887 = vmatprep.subr.mxu1 %v638_v41 }
  0x65   :  { %754 = vmatprep.subr.mxu0 %v463_v20  ;;  %888 = vmatpush2.msra.mxu1 %v637_v43 }
  0x66   :  { %755 = vmatpush2.msra.mxu0 %v462_v22  ;;  %944 = vmatprep.subr.mxu1 %v409_v45 }
  0x67   :  { %756 = vmatprep.subr.mxu0 %v456_v24 }
  0x68   :  { %757 = vmatpush2.msra.mxu0 %v455_v26 }
  0x69   :  { %758 = vmatprep.subr.mxu0 %v449_v28 }
  0x6a   :  { %759 = vmatpush2.msra.mxu0 %v448_v30 }
  0x6b   :  { %760 = vmatprep.subr.mxu0 %v442_v32 }
  0x6c   :  { %761 = vmatpush2.msra.mxu0 %v441_v34 }
  0x6d   :  { %762 = vmatprep.subr.mxu0 %v435_v36  ;;  %v167_v36 = vsub.s32 0, %v166_v27 }
  0x6e   :  { %763 = vmatpush2.msra.mxu0 %v434_v38 }
  0x6f   :  { %764 = vmatprep.subr.mxu0 %v428_v40  ;;  %v175_v40 = vsub.s32 2, %v166_v27 }
  0x70   :  { %765 = vmatpush2.msra.mxu0 %v427_v42 }
  0x71   :  { %766 = vmatprep.subr.mxu0 %v421_v44  ;;  %v179_v44 = vsub.s32 3, %v166_v27  ;;  %v218_v27 = vld [vmem:[#allocation7 + $0x28] sm:$0xff] }
  0x72   :  { %767 = vmatpush2.msra.mxu0 %v420_v46 }
  0x73   :  { %768 = vmatprep.subr.mxu0 %v414_v47 }
  0x74   :  { %769 = vmatpush2.msra.mxu0 %v413_v48 }
  0x75   :  { %1063 = vmatprep.subr.mxu0 %v633_v49  ;;  %v168_v49 = vrot.slane %v163_v39, %v167_v36 }
  0xaf   :  { %v98_v56 = vpop.permute.xlu0 %97  ;;  %v108_v57 = vpop.permute.xlu1 %107 }
  0xb0   :  { %v113_v60 = vmul.f32 %v98_v56, %v86_v50  ;;  %v118_v1 = vmul.f32 %v108_v57, %v91_v51  ;;  %v119_v2 = vmul.f32 %v108_v57, %v92_v52  ;;  %v120_v3 = vmul.f32 %v108_v57, %v93_v53 }
  0xb1   :  { %v121_v4 = vmul.f32 %v108_v57, %v94_v54  ;;  %v110_v6 = vmul.f32 %v98_v56, %v83_v55  ;;  %v111_v7 = vmul.f32 %v98_v56, %v84_v58  ;;  %v112_v8 = vmul.f32 %v98_v56, %v85_v59 }
  0xb2   :  { %v151_v9 = vsel %vm150_vm0, %v113_v60, 0.0  ;;  %v124_v15 = vsel %vm123_vm1, %v118_v1, 0.0  ;;  %v133_v16 = vsel %vm123_vm1, %v119_v2, 0.0  ;;  %v142_v17 = vsel %vm123_vm1, %v120_v3, 0.0 }
  0xb3   :  { %v103_v10 = vpop.permute.xlu0 %102  ;;  %v155_v18 = vsel %vm154_vm2, %v121_v4, 0.0  ;;  %v172_v50 = vrot.slane %v163_v39, %v171_v37  ;;  %v176_v52 = vrot.slane %v163_v39, %v175_v40  ;;  %v180_v56 = vrot.slane %v163_v39, %v179_v44  ;;  %v217_v37 = vld [vmem:[#allocation7 + $0x20] sm:$0xff] }
  0xb4   :  { %v114_v11 = vmul.f32 %v103_v10, %v87_v61  ;;  %v115_v12 = vmul.f32 %v103_v10, %v88_v62  ;;  %v116_v13 = vmul.f32 %v103_v10, %v89_v63  ;;  %v117_v14 = vmul.f32 %v103_v10, %v90_v0  ;;  %v625_v39 = vld [vmem:[#allocation8 + $0xa20] sm:$0xff] }
  0xb5   :  { %v401_v40 = vld [vmem:[#allocation8 + $0x320] sm:$0xff] }
  0xb6   :  { %v122_v19 = vadd.f32 %v114_v11, %v110_v6  ;;  %v132_v20 = vadd.f32 %v115_v12, %v111_v7  ;;  %v141_v21 = vadd.f32 %v116_v13, %v112_v8  ;;  %v152_v22 = vsel %vm150_vm0, %v117_v14, 0.0 }
  0xb7   :  { %v153_v23 = vadd.f32 %v152_v22, %v151_v9 }
  0xb8   :  { %v125_v24 = vadd.f32 %v124_v15, %v122_v19  ;;  %v134_v25 = vadd.f32 %v133_v16, %v132_v20  ;;  %v143_v26 = vadd.f32 %v142_v17, %v141_v21  ;;  %v213_v15 = vld [vmem:[#allocation7] sm:$0xff] }
  0xb9   :  { %v156_v28 = vadd.f32 %v155_v18, %v153_v23  ;;  %v214_v18 = vld [vmem:[#allocation7 + $0x8] sm:$0xff] }
  0xba   :  { %v126_v29 = vrot.slane %v125_v24, 4  ;;  %v135_v30 = vrot.slane %v134_v25, 4  ;;  %v144_v31 = vrot.slane %v143_v26, 4 }
  0xbb   :  { %v157_v32 = vrot.slane %v156_v28, 4 }
  0xbc   :  { %v127_v33 = vadd.f32 %v126_v29, %v125_v24  ;;  %v136_v34 = vadd.f32 %v135_v30, %v134_v25  ;;  %v145_v35 = vadd.f32 %v144_v31, %v143_v26  ;;  %v216_v24 = vld [vmem:[#allocation7 + $0x18] sm:$0xff] }
  0xbd   :  { %v158_v38 = vadd.f32 %v157_v32, %v156_v28  ;;  %v215_v28 = vld [vmem:[#allocation7 + $0x10] sm:$0xff]  ;;  %v632_v29 = vld [vmem:[#allocation8 + $0xa58] sm:$0xff] }
  0xbe   :  { %v128_v41 = vrot.slane %v127_v33, 2  ;;  %v137_v42 = vrot.slane %v136_v34, 2  ;;  %v146_v43 = vrot.slane %v145_v35, 2  ;;  %v220_v31 = vld [vmem:[#allocation7 + $0x38] sm:$0xff] }
  0xbf   :  { %v159_v45 = vrot.slane %v158_v38, 2 }
  0xc0   :  { %v129_v46 = vadd.f32 %v128_v41, %v127_v33  ;;  %v138_v47 = vadd.f32 %v137_v42, %v136_v34  ;;  %v147_v48 = vadd.f32 %v146_v43, %v145_v35  ;;  %v408_v34 = vld [vmem:[#allocation8 + $0x358] sm:$0xff]  ;;  %v626_v35 = vld [vmem:[#allocation8 + $0xa28] sm:$0xff]  ;;  %v619_v41 = vld [vmem:[#allocation8 + $0x9f0] sm:$0xff] }
  0xc1   :  { %v160_v51 = vadd.f32 %v159_v45, %v158_v38  ;;  %v222_v42 = vld [vmem:[#allocation7 + $0x48] sm:$0xff]  ;;  %v219_v43 = vld [vmem:[#allocation7 + $0x30] sm:$0xff] }
  0xc2   :  { %v130_v53 = vrot.slane %v129_v46, 1  ;;  %v139_v54 = vrot.slane %v138_v47, 1  ;;  %v148_v55 = vrot.slane %v147_v48, 1  ;;  %v395_v45 = vld [vmem:[#allocation8 + $0x2f0] sm:$0xff] }
  0xc3   :  { %v161_v57 = vrot.slane %v160_v51, 1 }
  0xc4   :  { %v131_v58 = vadd.f32 %v130_v53, %v129_v46  ;;  %v140_v59 = vadd.f32 %v139_v54, %v138_v47  ;;  %v149_v60 = vadd.f32 %v148_v55, %v147_v48  ;;  %v618_v46 = vld [vmem:[#allocation8 + $0x9e8] sm:$0xff]  ;;  %v224_v47 = vld [vmem:[#allocation7 + $0x58] sm:$0xff]  ;;  %v221_v53 = vld [vmem:[#allocation7 + $0x40] sm:$0xff] }
  0xc5   :  { %v162_v61 = vadd.f32 %v161_v57, %v160_v51  ;;  %v612_v51 = vld [vmem:[#allocation8 + $0x9b8] sm:$0xff]  ;;  %v611_v55 = vld [vmem:[#allocation8 + $0x9b0] sm:$0xff]  ;;  %v605_v57 = vld [vmem:[#allocation8 + $0x980] sm:$0xff] }
  0xc6   :  { %v185_v62 = vadd.f32 %v168_v49, %v131_v58  ;;  %v186_v63 = vadd.f32 %v172_v50, %v140_v59  ;;  %v187_v0 = vadd.f32 %v176_v52, %v149_v60  ;;  %v394_v50 = vld [vmem:[#allocation8 + $0x2e8] sm:$0xff]  ;;  %v388_v52 = vld [vmem:[#allocation8 + $0x2b8] sm:$0xff]  ;;  %v223_v59 = vld [vmem:[#allocation7 + $0x50] sm:$0xff] }
  0xc7   :  { %v188_v1 = vadd.f32 %v180_v56, %v162_v61  ;;  %v387_v56 = vld [vmem:[#allocation8 + $0x2b0] sm:$0xff]  ;;  %v226_v58 = vld [vmem:[#allocation7 + $0x68] sm:$0xff]  ;;  %v381_v61 = vld [vmem:[#allocation8 + $0x280] sm:$0xff] }
  0xc8   :  { %v2244_v2 = vmul.f32 -1.442695, %v185_v62  ;;  %v2245_v3 = vmul.f32 -1.442695, %v186_v63  ;;  %v2246_v4 = vmul.f32 -1.442695, %v187_v0 }
  0xc9   :  { %v2247_v5 = vmul.f32 -1.442695, %v188_v1  ;;  %v604_v62 = vld [vmem:[#allocation8 + $0x978] sm:$0xff] }
  0xca   :  { %2400 = vpow2.f32 %v2244_v2  ;;  %v228_v63 = vld [vmem:[#allocation7 + $0x78] sm:$0xff] }
  0xcb   :  { %2402 = vpow2.f32 %v2245_v3  ;;  %v380_v2 = vld [vmem:[#allocation8 + $0x278] sm:$0xff]  ;;  %v598_v3 = vld [vmem:[#allocation8 + $0x948] sm:$0xff] }
  0xcc   :  { %2404 = vpow2.f32 %v2246_v4  ;;  %v374_v4 = vld [vmem:[#allocation8 + $0x248] sm:$0xff] }
  0xcd   :  { %2406 = vpow2.f32 %v2247_v5  ;;  %v225_v5 = vld [vmem:[#allocation7 + $0x60] sm:$0xff] }
  0xd7   :  { %v2401_v6 = vpop.eup %2400 }
  0xd8   :  { %v2403_v7 = vpop.eup %2402  ;;  %v201_v8 = vadd.f32 1.0, %v2401_v6 }
  0xd9   :  { %v2405_v9 = vpop.eup %2404  ;;  %v202_v10 = vadd.f32 1.0, %v2403_v7  ;;  %v597_v7 = vld [vmem:[#allocation8 + $0x940] sm:$0xff] }
  0xda   :  { %v2407_v11 = vpop.eup %2406  ;;  %v203_v12 = vadd.f32 1.0, %v2405_v9  ;;  %2408 = vrcp.f32 %v201_v8  ;;  %v373_v8 = vld [vmem:[#allocation8 + $0x240] sm:$0xff]  ;;  %v591_v9 = vld [vmem:[#allocation8 + $0x910] sm:$0xff] }
  0xdb   :  { %v204_v13 = vadd.f32 1.0, %v2407_v11  ;;  %2410 = vrcp.f32 %v202_v10  ;;  %v230_v10 = vld [vmem:[#allocation7 + $0x88] sm:$0xff]  ;;  %v227_v11 = vld [vmem:[#allocation7 + $0x70] sm:$0xff] }
  0xdc   :  { %2412 = vrcp.f32 %v203_v12 }
  0xdd   :  { %2414 = vrcp.f32 %v204_v13  ;;  %v367_v13 = vld [vmem:[#allocation8 + $0x210] sm:$0xff] }
  0xe7   :  { %v2409_v14 = vpop.eup %2408 }
  0xe8   :  { %v2411_v16 = vpop.eup %2410  ;;  %v2619_v17 = vrot.slane %v2409_v14, %v167_v36  ;;  %v590_v14 = vld [vmem:[#allocation8 + $0x908] sm:$0xff] }
  0xe9   :  { %v2413_v19 = vpop.eup %2412  ;;  %v2621_v20 = vrot.slane %v2411_v16, %v167_v36 }
  0xea   :  { %v2415_v21 = vpop.eup %2414  ;;  %v2623_v22 = vrot.slane %v2413_v19, %v167_v36  ;;  %v2626_v23 = vmul.f32 %v2619_v17, %v213_v15  ;;  %v2654_v44 = vmul.f32 %v2619_v17, %v217_v37  ;;  %v2671_v60 = vmul.f32 %v2619_v17, %v221_v53  ;;  %v232_v15 = vld [vmem:[#allocation7 + $0x98] sm:$0xff]  ;;  %v366_v19 = vld [vmem:[#allocation8 + $0x208] sm:$0xff]  ;;  %v345_v53 = vld [vmem:[#allocation8 + $0x160] sm:$0xff] }
  0xeb   :  { %v2628_v25 = vrot.slane %v2415_v21, %v167_v36  ;;  %v2631_v26 = vmul.f32 %v2621_v20, %v214_v18  ;;  %v2639_v32 = vmul.f32 %v2621_v20, %v218_v27  ;;  %v402_v36 = vld [vmem:[#allocation8 + $0x328] sm:$0xff]  ;;  %v2658_v48 = vmul.f32 %v2621_v20, %v222_v42  ;;  %v584_v21 = vld [vmem:[#allocation8 + $0x8d8] sm:$0xff]  ;;  %v229_v27 = vld [vmem:[#allocation7 + $0x80] sm:$0xff] }
  0xec   :  { %v2642_v33 = vmul.f32 %v2623_v22, %v215_v28  ;;  %v2661_v49 = vmul.f32 %v2623_v22, %v219_v43  ;;  %v2675_v0 = vmul.f32 %v2621_v20, %v226_v58  ;;  %v2678_v1 = vmul.f32 %v2623_v22, %v223_v59  ;;  %v339_v59 = vld [vmem:[#allocation8 + $0x130] sm:$0xff] }
  0xed   :  { %770 = vmatprep.mubr.f32.mxu0 %v2631_v26  ;;  %v2635_v30 = vmul.f32 %v2628_v25, %v216_v24  ;;  %v2649_v38 = vmul.f32 %v2628_v25, %v220_v31  ;;  %v2666_v54 = vmul.f32 %v2628_v25, %v224_v47  ;;  %v2683_v6 = vmul.f32 %v2628_v25, %v228_v63  ;;  %v360_v24 = vld [vmem:[#allocation8 + $0x1d8] sm:$0xff]  ;;  %v359_v31 = vld [vmem:[#allocation8 + $0x1d0] sm:$0xff]  ;;  %v346_v47 = vld [vmem:[#allocation8 + $0x168] sm:$0xff] }
  0xee   :  { %771 = vmatmul.mubr.f32.vlgmr.msra.gmra.mxu0 %v2626_v23  ;;  %v2688_v12 = vmul.f32 %v2619_v17, %v225_v5  ;;  %v2692_v16 = vmul.f32 %v2621_v20, %v230_v10  ;;  %v2695_v18 = vmul.f32 %v2623_v22, %v227_v11  ;;  %v2700_v28 = vmul.f32 %v2628_v25, %v232_v15  ;;  %v332_v5 = vld [vmem:[#allocation8 + $0xf8] sm:$0xff]  ;;  %v331_v10 = vld [vmem:[#allocation8 + $0xf0] sm:$0xff]  ;;  %v549_v11 = vld [vmem:[#allocation8 + $0x7c0] sm:$0xff] }
  0xef   :  { %2248 = vmatprep.mubr.msk.f32.mxu1 %vm150_vm0, %v2635_v30  ;;  %1064 = vmatpush1.msra.mxu0 %v632_v29  ;;  %v583_v29 = vld [vmem:[#allocation8 + $0x8d0] sm:$0xff]  ;;  %v2705_v37 = vmul.f32 %v2619_v17, %v229_v27 }
  0xf0   :  { %776 = vmatprep.mubr.f32.mxu0 %v2639_v32  ;;  %890 = vmatmul.mubr.f32.vlgmr.msra.gmra.mxu1 %v2642_v33 }
  0xf1   :  { %945 = vmatpush1.msra.mxu1 %v408_v34  ;;  %1065 = vmatprep.subr.mxu0 %v626_v35  ;;  %v577_v34 = vld [vmem:[#allocation8 + $0x8a0] sm:$0xff]  ;;  %v234_v35 = vld [vmem:[#allocation7 + $0xa8] sm:$0xff] }
  0xf2   :  { %2249 = vmatprep.mubr.msk.f32.mxu1 %vm150_vm0, %v2649_v38  ;;  %946 = vmatprep.subr.mxu1 %v402_v36  ;;  %v231_v36 = vld [vmem:[#allocation7 + $0x90] sm:$0xff]  ;;  %v2709_v42 = vmul.f32 %v2621_v20, %v234_v35  ;;  %v318_v35 = vld [vmem:[#allocation8 + $0x88] sm:$0xff] }
  0xf3   :  { %1066 = vmatpush1.msra.mxu0 %v625_v39  ;;  %947 = vmatpush1.msra.mxu1 %v401_v40  ;;  %v353_v39 = vld [vmem:[#allocation8 + $0x1a0] sm:$0xff]  ;;  %v576_v40 = vld [vmem:[#allocation8 + $0x898] sm:$0xff]  ;;  %v2712_v43 = vmul.f32 %v2623_v22, %v231_v36 }
  0xf4   :  { %1067 = vmatprep.subr.mxu0 %v619_v41  ;;  %777 = vmatmul.mubr.f32.gmra.mxu0 %v2654_v44  ;;  %v236_v41 = vld [vmem:[#allocation7 + $0xb8] sm:$0xff]  ;;  %v241_v36 = vld [vmem:[#allocation7 + $0xe0] sm:$0xff] }
  0xf5   :  { %948 = vmatprep.subr.mxu1 %v395_v45  ;;  %1068 = vmatpush1.msra.mxu0 %v618_v46  ;;  %v352_v45 = vld [vmem:[#allocation8 + $0x198] sm:$0xff]  ;;  %v570_v46 = vld [vmem:[#allocation8 + $0x868] sm:$0xff] }
  0xf6   :  { %782 = vmatprep.mubr.f32.mxu0 %v2658_v48  ;;  %896 = vmatmul.mubr.f32.gmra.mxu1 %v2661_v49 }
  0xf7   :  { %949 = vmatpush1.msra.mxu1 %v394_v50  ;;  %1069 = vmatprep.subr.mxu0 %v612_v51  ;;  %v233_v50 = vld [vmem:[#allocation7 + $0xa0] sm:$0xff]  ;;  %v2717_v51 = vmul.f32 %v2628_v25, %v236_v41 }
  0xf8   :  { %2250 = vmatprep.mubr.msk.f32.mxu1 %vm150_vm0, %v2666_v54  ;;  %950 = vmatprep.subr.mxu1 %v388_v52  ;;  %v569_v52 = vld [vmem:[#allocation8 + $0x860] sm:$0xff]  ;;  %v2722_v58 = vmul.f32 %v2619_v17, %v233_v50  ;;  %v2756_v50 = vmul.f32 %v2619_v17, %v241_v36  ;;  %v654_v36 = vld [vmem:[#allocation8 + $0xb08] sm:$0xff] }
  0xf9   :  { %1070 = vmatpush1.msra.mxu0 %v611_v55  ;;  %951 = vmatpush1.msra.mxu1 %v387_v56  ;;  %v563_v55 = vld [vmem:[#allocation8 + $0x830] sm:$0xff]  ;;  %v238_v56 = vld [vmem:[#allocation7 + $0xc8] sm:$0xff]  ;;  %v317_v41 = vld [vmem:[#allocation8 + $0x80] sm:$0xff] }
  0xfa   :  { %1071 = vmatprep.subr.mxu0 %v605_v57  ;;  %783 = vmatmul.mubr.f32.gmra.mxu0 %v2671_v60  ;;  %v235_v57 = vld [vmem:[#allocation7 + $0xb0] sm:$0xff]  ;;  %v2726_v63 = vmul.f32 %v2621_v20, %v238_v56 }
  0xfb   :  { %952 = vmatprep.subr.mxu1 %v381_v61  ;;  %1072 = vmatpush1.msra.mxu0 %v604_v62  ;;  %v562_v61 = vld [vmem:[#allocation8 + $0x828] sm:$0xff]  ;;  %v240_v62 = vld [vmem:[#allocation7 + $0xd8] sm:$0xff] }
  0xfc   :  { %788 = vmatprep.mubr.f32.mxu0 %v2675_v0  ;;  %902 = vmatmul.mubr.f32.gmra.mxu1 %v2678_v1 }
  0xfd   :  { %953 = vmatpush1.msra.mxu1 %v380_v2  ;;  %1073 = vmatprep.subr.mxu0 %v598_v3  ;;  %v2729_v2 = vmul.f32 %v2623_v22, %v235_v57  ;;  %v338_v3 = vld [vmem:[#allocation8 + $0x128] sm:$0xff] }
  0xfe   :  { %2251 = vmatprep.mubr.msk.f32.mxu1 %vm150_vm0, %v2683_v6  ;;  %954 = vmatprep.subr.mxu1 %v374_v4  ;;  %v556_v4 = vld [vmem:[#allocation8 + $0x7f8] sm:$0xff] }
  0xff   :  { %1074 = vmatpush1.msra.mxu0 %v597_v7  ;;  %955 = vmatpush1.msra.mxu1 %v373_v8  ;;  %v237_v7 = vld [vmem:[#allocation7 + $0xc0] sm:$0xff]  ;;  %v2734_v8 = vmul.f32 %v2628_v25, %v240_v62  ;;  %v304_v62 = vld [vmem:[#allocation8 + $0x18] sm:$0xff] }
 0x100   :  { %1075 = vmatprep.subr.mxu0 %v591_v9  ;;  %789 = vmatmul.mubr.f32.gmra.mxu0 %v2688_v12  ;;  %v555_v9 = vld [vmem:[#allocation8 + $0x7f0] sm:$0xff]  ;;  %v2739_v15 = vmul.f32 %v2619_v17, %v237_v7 }
 0x101   :  { %956 = vmatprep.subr.mxu1 %v367_v13  ;;  %1076 = vmatpush1.msra.mxu0 %v590_v14  ;;  %v242_v13 = vld [vmem:[#allocation7 + $0xe8] sm:$0xff]  ;;  %v239_v14 = vld [vmem:[#allocation7 + $0xd0] sm:$0xff] }
 0x102   :  { %794 = vmatprep.mubr.f32.mxu0 %v2692_v16  ;;  %908 = vmatmul.mubr.f32.gmra.mxu1 %v2695_v18  ;;  %v2743_v27 = vmul.f32 %v2621_v20, %v242_v13  ;;  %v303_v7 = vld [vmem:[#allocation8 + $0x10] sm:$0xff]  ;;  %v674_v13 = vld [vmem:[#allocation8 + $0xba8] sm:$0xff] }
 0x103   :  { %957 = vmatpush1.msra.mxu1 %v366_v19  ;;  %1077 = vmatprep.subr.mxu0 %v584_v21  ;;  %v325_v19 = vld [vmem:[#allocation8 + $0xc0] sm:$0xff]  ;;  %v548_v21 = vld [vmem:[#allocation8 + $0x7b8] sm:$0xff] }
 0x104   :  { %2252 = vmatprep.mubr.msk.f32.mxu1 %vm150_vm0, %v2700_v28  ;;  %958 = vmatprep.subr.mxu1 %v360_v24  ;;  %v244_v24 = vld [vmem:[#allocation7 + $0xf8] sm:$0xff] }
 0x105   :  { %1078 = vmatpush1.msra.mxu0 %v583_v29  ;;  %959 = vmatpush1.msra.mxu1 %v359_v31  ;;  %v2746_v29 = vmul.f32 %v2623_v22, %v239_v14  ;;  %v324_v31 = vld [vmem:[#allocation8 + $0xb8] sm:$0xff] }
 0x106   :  { %1079 = vmatprep.subr.mxu0 %v577_v34  ;;  %795 = vmatmul.mubr.f32.gmra.mxu0 %v2705_v37  ;;  %v542_v34 = vld [vmem:[#allocation8 + $0x788] sm:$0xff]  ;;  %v668_v14 = vld [vmem:[#allocation8 + $0xb78] sm:$0xff] }
 0x107   :  { %960 = vmatprep.subr.mxu1 %v353_v39  ;;  %1080 = vmatpush1.msra.mxu0 %v576_v40  ;;  %v2751_v39 = vmul.f32 %v2628_v25, %v244_v24  ;;  %v541_v40 = vld [vmem:[#allocation8 + $0x780] sm:$0xff] }
 0x108   :  { %800 = vmatprep.mubr.f32.mxu0 %v2709_v42  ;;  %914 = vmatmul.mubr.f32.gmra.mxu1 %v2712_v43  ;;  %v513_v24 = vld [vmem:[#allocation8 + $0x6a0] sm:$0xff] }
 0x109   :  { %961 = vmatpush1.msra.mxu1 %v352_v45  ;;  %1081 = vmatprep.subr.mxu0 %v570_v46  ;;  %v535_v45 = vld [vmem:[#allocation8 + $0x750] sm:$0xff]  ;;  %v246_v46 = vld [vmem:[#allocation7 + $0x108] sm:$0xff] }
 0x10a   :  { %2253 = vmatprep.mubr.msk.f32.mxu1 %vm150_vm0, %v2717_v51  ;;  %962 = vmatprep.subr.mxu1 %v346_v47  ;;  %v243_v47 = vld [vmem:[#allocation7 + $0xf0] sm:$0xff]  ;;  %v2760_v56 = vmul.f32 %v2621_v20, %v246_v46 }
 0x10b   :  { %1082 = vmatpush1.msra.mxu0 %v569_v52  ;;  %963 = vmatpush1.msra.mxu1 %v345_v53  ;;  %v311_v52 = vld [vmem:[#allocation8 + $0x50] sm:$0xff]  ;;  %v534_v53 = vld [vmem:[#allocation8 + $0x748] sm:$0xff]  ;;  %v2763_v57 = vmul.f32 %v2623_v22, %v243_v47  ;;  %v493_v47 = vld [vmem:[#allocation8 + $0x600] sm:$0xff] }
 0x10c   :  { %1083 = vmatprep.subr.mxu0 %v563_v55  ;;  %801 = vmatmul.mubr.f32.gmra.mxu0 %v2722_v58  ;;  %v248_v55 = vld [vmem:[#allocation7 + $0x118] sm:$0xff]  ;;  %v675_v20 = vld [vmem:[#allocation8 + $0xbb0] sm:$0xff] }
 0x10d   :  { %964 = vmatprep.subr.mxu1 %v339_v59  ;;  %1084 = vmatpush1.msra.mxu0 %v562_v61  ;;  %v310_v59 = vld [vmem:[#allocation8 + $0x48] sm:$0xff]  ;;  %v528_v61 = vld [vmem:[#allocation8 + $0x718] sm:$0xff]  ;;  %v647_v46 = vld [vmem:[#allocation8 + $0xad0] sm:$0xff] }
 0x10e   :  { %806 = vmatprep.mubr.f32.mxu0 %v2726_v63  ;;  %920 = vmatmul.mubr.f32.gmra.mxu1 %v2729_v2 }
 0x10f   :  { %965 = vmatpush1.msra.mxu1 %v338_v3  ;;  %1085 = vmatprep.subr.mxu0 %v556_v4  ;;  %v245_v3 = vld [vmem:[#allocation7 + $0x100] sm:$0xff]  ;;  %v2768_v4 = vmul.f32 %v2628_v25, %v248_v55  ;;  %v640_v55 = vld [vmem:[#allocation8 + $0xa98] sm:$0xff] }
 0x110   :  { %2254 = vmatprep.mubr.msk.f32.mxu1 %vm150_vm0, %v2734_v8  ;;  %966 = vmatprep.subr.mxu1 %v332_v5  ;;  %v527_v5 = vld [vmem:[#allocation8 + $0x710] sm:$0xff] }
 0x111   :  { %1086 = vmatpush1.msra.mxu0 %v555_v9  ;;  %967 = vmatpush1.msra.mxu1 %v331_v10  ;;  %v247_v9 = vld [vmem:[#allocation7 + $0x110] sm:$0xff]  ;;  %v2773_v10 = vmul.f32 %v2619_v17, %v245_v3 }
 0x112   :  { %1087 = vmatprep.subr.mxu0 %v549_v11  ;;  %807 = vmatmul.mubr.f32.gmra.mxu0 %v2739_v15  ;;  %v521_v11 = vld [vmem:[#allocation8 + $0x6e0] sm:$0xff]  ;;  %v2777_v25 = vmul.f32 %v2623_v22, %v247_v9  ;;  %v667_v17 = vld [vmem:[#allocation8 + $0xb70] sm:$0xff]  ;;  %v660_v22 = vld [vmem:[#allocation8 + $0xb38] sm:$0xff] }
 0x113   :  { %968 = vmatprep.subr.mxu1 %v325_v19  ;;  %1088 = vmatpush1.msra.mxu0 %v548_v21  ;;  %v520_v19 = vld [vmem:[#allocation8 + $0x6d8] sm:$0xff]  ;;  %v514_v21 = vld [vmem:[#allocation8 + $0x6a8] sm:$0xff]  ;;  %v411_v3 = vld [vmem:[#allocation8 + $0x370] sm:$0xff] }
 0x114   :  { %812 = vmatprep.mubr.f32.mxu0 %v2743_v27  ;;  %926 = vmatmul.mubr.f32.gmra.mxu1 %v2746_v29  ;;  %v404_v9 = vld [vmem:[#allocation8 + $0x338] sm:$0xff] }
 0x115   :  { %969 = vmatpush1.msra.mxu1 %v324_v31  ;;  %1089 = vmatprep.subr.mxu0 %v542_v34  ;;  %v661_v31 = vld [vmem:[#allocation8 + $0xb40] sm:$0xff]  ;;  %v507_v34 = vld [vmem:[#allocation8 + $0x670] sm:$0xff] }
 0x116   :  { %2255 = vmatprep.mubr.msk.f32.mxu1 %vm150_vm0, %v2751_v39  ;;  %970 = vmatprep.subr.mxu1 %v318_v35  ;;  %v506_v35 = vld [vmem:[#allocation8 + $0x668] sm:$0xff] }
 0x117   :  { %1090 = vmatpush1.msra.mxu0 %v541_v40  ;;  %971 = vmatpush1.msra.mxu1 %v317_v41  ;;  %v500_v40 = vld [vmem:[#allocation8 + $0x638] sm:$0xff]  ;;  %v653_v41 = vld [vmem:[#allocation8 + $0xb00] sm:$0xff] }
 0x118   :  { %1091 = vmatprep.subr.mxu0 %v535_v45  ;;  %813 = vmatmul.mubr.f32.gmra.mxu0 %v2756_v50  ;;  %v499_v45 = vld [vmem:[#allocation8 + $0x630] sm:$0xff] }
 0x119   :  { %972 = vmatprep.subr.mxu1 %v311_v52  ;;  %1092 = vmatpush1.msra.mxu0 %v534_v53  ;;  %v646_v52 = vld [vmem:[#allocation8 + $0xac8] sm:$0xff]  ;;  %v492_v53 = vld [vmem:[#allocation8 + $0x5f8] sm:$0xff] }
 0x11a   :  { %818 = vmatprep.mubr.f32.mxu0 %v2760_v56  ;;  %932 = vmatmul.mubr.f32.gmra.mxu1 %v2763_v57 }
 0x11b   :  { %973 = vmatpush1.msra.mxu1 %v310_v59  ;;  %1093 = vmatprep.subr.mxu0 %v528_v61  ;;  %v486_v59 = vld [vmem:[#allocation8 + $0x5c8] sm:$0xff]  ;;  %v639_v61 = vld [vmem:[#allocation8 + $0xa90] sm:$0xff] }
 0x11c   :  { %2256 = vmatprep.mubr.msk.f32.mxu1 %vm150_vm0, %v2768_v4  ;;  %974 = vmatprep.subr.mxu1 %v304_v62  ;;  %v485_v62 = vld [vmem:[#allocation8 + $0x5c0] sm:$0xff] }
 0x11d   :  { %1094 = vmatpush1.msra.mxu0 %v527_v5  ;;  %975 = vmatpush1.msra.mxu1 %v303_v7  ;;  %v479_v5 = vld [vmem:[#allocation8 + $0x590] sm:$0xff]  ;;  %v410_v7 = vld [vmem:[#allocation8 + $0x368] sm:$0xff] }
 0x11e   :  { %1115 = vmatprep.subr.mxu0 %v675_v20  ;;  %819 = vmatmul.mubr.f32.gmra.mxu0 %v2773_v10  ;;  %v478_v20 = vld [vmem:[#allocation8 + $0x588] sm:$0xff] }
 0x11f   :  { %976 = vmatprep.subr.mxu1 %v521_v11  ;;  %1116 = vmatpush2.msra.mxu0 %v674_v13  ;;  %v472_v11 = vld [vmem:[#allocation8 + $0x558] sm:$0xff]  ;;  %v403_v13 = vld [vmem:[#allocation8 + $0x330] sm:$0xff] }
 0x120   :  { %938 = vmatmul.mubr.f32.gmra.mxu1 %v2777_v25  ;;  %1117 = vmatprep.subr.mxu0 %v668_v14  ;;  %v471_v14 = vld [vmem:[#allocation8 + $0x550] sm:$0xff] }
 0x121   :  { %977 = vmatpush2.msra.mxu1 %v520_v19  ;;  %2257 = vmatprep.mubr.msk.f32.mxu0 %vm150_vm0, %v2635_v30  ;;  %v397_v19 = vld [vmem:[#allocation8 + $0x300] sm:$0xff] }
 0x122   :  { %978 = vmatprep.subr.mxu1 %v514_v21  ;;  %1008 = vmatprep.mubr.f32.mxu1 %v2631_v26  ;;  %v465_v21 = vld [vmem:[#allocation8 + $0x520] sm:$0xff] }
 0x123   :  { %1118 = vmatpush2.msra.mxu0 %v667_v17  ;;  %979 = vmatpush2.msra.mxu1 %v513_v24  ;;  %v396_v17 = vld [vmem:[#allocation8 + $0x2f8] sm:$0xff] }
 0x124   :  { %1119 = vmatprep.subr.mxu0 %v661_v31  ;;  %980 = vmatprep.subr.mxu1 %v507_v34  ;;  %v464_v24 = vld [vmem:[#allocation8 + $0x518] sm:$0xff]  ;;  %v390_v31 = vld [vmem:[#allocation8 + $0x2c8] sm:$0xff] }
 0x125   :  { %1120 = vmatpush2.msra.mxu0 %v660_v22  ;;  %981 = vmatpush2.msra.mxu1 %v506_v35  ;;  %v458_v34 = vld [vmem:[#allocation8 + $0x4e8] sm:$0xff]  ;;  %v389_v22 = vld [vmem:[#allocation8 + $0x2c0] sm:$0xff] }
 0x126   :  { %1121 = vmatprep.subr.mxu0 %v654_v36  ;;  %982 = vmatprep.subr.mxu1 %v500_v40  ;;  %v457_v35 = vld [vmem:[#allocation8 + $0x4e0] sm:$0xff]  ;;  %v383_v36 = vld [vmem:[#allocation8 + $0x290] sm:$0xff] }
 0x127   :  { %1122 = vmatpush2.msra.mxu0 %v653_v41  ;;  %983 = vmatpush2.msra.mxu1 %v499_v45  ;;  %v451_v40 = vld [vmem:[#allocation8 + $0x4b0] sm:$0xff]  ;;  %v382_v41 = vld [vmem:[#allocation8 + $0x288] sm:$0xff] }
 0x128   :  { %1123 = vmatprep.subr.mxu0 %v647_v46  ;;  %984 = vmatprep.subr.mxu1 %v493_v47  ;;  %v450_v45 = vld [vmem:[#allocation8 + $0x4a8] sm:$0xff]  ;;  %v376_v46 = vld [vmem:[#allocation8 + $0x258] sm:$0xff] }
 0x129   :  { %1124 = vmatpush2.msra.mxu0 %v646_v52  ;;  %985 = vmatpush2.msra.mxu1 %v492_v53  ;;  %v444_v47 = vld [vmem:[#allocation8 + $0x478] sm:$0xff]  ;;  %v375_v52 = vld [vmem:[#allocation8 + $0x250] sm:$0xff] }
 0x12a   :  { %1125 = vmatprep.subr.mxu0 %v640_v55  ;;  %986 = vmatprep.subr.mxu1 %v486_v59  ;;  %v443_v53 = vld [vmem:[#allocation8 + $0x470] sm:$0xff]  ;;  %v369_v55 = vld [vmem:[#allocation8 + $0x220] sm:$0xff] }
 0x12b   :  { %1126 = vmatpush2.msra.mxu0 %v639_v61  ;;  %987 = vmatpush2.msra.mxu1 %v485_v62  ;;  %v437_v59 = vld [vmem:[#allocation8 + $0x440] sm:$0xff]  ;;  %v368_v61 = vld [vmem:[#allocation8 + $0x218] sm:$0xff] }
 0x12c   :  { %1128 = vmatmul.mubr.f32.vlgmr.msra.gmra.mxu0 %v2642_v33  ;;  %1182 = vmatprep.subr.mxu0 %v411_v3  ;;  %v436_v62 = vld [vmem:[#allocation8 + $0x438] sm:$0xff]  ;;  %v362_v3 = vld [vmem:[#allocation8 + $0x1e8] sm:$0xff] }
 0x12d   :  { %988 = vmatprep.subr.mxu1 %v479_v5  ;;  %2258 = vmatprep.mubr.msk.f32.mxu0 %vm150_vm0, %v2649_v38  ;;  %v430_v5 = vld [vmem:[#allocation8 + $0x408] sm:$0xff] }
 0x12e   :  { %1183 = vmatpush1.msra.mxu0 %v410_v7  ;;  %989 = vmatpush2.msra.mxu1 %v478_v20  ;;  %v361_v7 = vld [vmem:[#allocation8 + $0x1e0] sm:$0xff] }
 0x12f   :  { %1184 = vmatprep.subr.mxu0 %v404_v9  ;;  %990 = vmatprep.subr.mxu1 %v472_v11  ;;  %v429_v20 = vld [vmem:[#allocation8 + $0x400] sm:$0xff]  ;;  %v355_v9 = vld [vmem:[#allocation8 + $0x1b0] sm:$0xff] }
 0x130   :  { %1185 = vmatpush1.msra.mxu0 %v403_v13  ;;  %991 = vmatpush2.msra.mxu1 %v471_v14  ;;  %v423_v11 = vld [vmem:[#allocation8 + $0x3d0] sm:$0xff]  ;;  %v354_v13 = vld [vmem:[#allocation8 + $0x1a8] sm:$0xff] }
 0x131   :  { %1134 = vmatmul.mubr.f32.gmra.mxu0 %v2661_v49  ;;  %1186 = vmatprep.subr.mxu0 %v397_v19  ;;  %v422_v14 = vld [vmem:[#allocation8 + $0x3c8] sm:$0xff]  ;;  %v348_v19 = vld [vmem:[#allocation8 + $0x178] sm:$0xff] }
 0x132   :  { %992 = vmatprep.subr.mxu1 %v465_v21  ;;  %2259 = vmatprep.mubr.msk.f32.mxu0 %vm150_vm0, %v2666_v54  ;;  %v416_v21 = vld [vmem:[#allocation8 + $0x398] sm:$0xff] }
 0x133   :  { %1187 = vmatpush1.msra.mxu0 %v396_v17  ;;  %993 = vmatpush2.msra.mxu1 %v464_v24  ;;  %v347_v17 = vld [vmem:[#allocation8 + $0x170] sm:$0xff] }
 0x134   :  { %1188 = vmatprep.subr.mxu0 %v390_v31  ;;  %994 = vmatprep.subr.mxu1 %v458_v34  ;;  %v415_v24 = vld [vmem:[#allocation8 + $0x390] sm:$0xff]  ;;  %v341_v31 = vld [vmem:[#allocation8 + $0x140] sm:$0xff]  ;;  %v340_v34 = vld [vmem:[#allocation8 + $0x138] sm:$0xff] }
 0x135   :  { %1189 = vmatpush1.msra.mxu0 %v389_v22  ;;  %995 = vmatpush2.msra.mxu1 %v457_v35  ;;  %v635_v22 = vld [vmem:[#allocation8 + $0xa70] sm:$0xff]  ;;  %v334_v35 = vld [vmem:[#allocation8 + $0x108] sm:$0xff] }
 0x136   :  { %1140 = vmatmul.mubr.f32.gmra.mxu0 %v2678_v1  ;;  %1190 = vmatprep.subr.mxu0 %v383_v36  ;;  %v634_v36 = vld [vmem:[#allocation8 + $0xa68] sm:$0xff] }
 0x137   :  { %996 = vmatprep.subr.mxu1 %v451_v40  ;;  %2260 = vmatprep.mubr.msk.f32.mxu0 %vm150_vm0, %v2683_v6  ;;  %v333_v40 = vld [vmem:[#allocation8 + $0x100] sm:$0xff] }
 0x138   :  { %1191 = vmatpush1.msra.mxu0 %v382_v41  ;;  %997 = vmatpush2.msra.mxu1 %v450_v45  ;;  %v628_v41 = vld [vmem:[#allocation8 + $0xa38] sm:$0xff]  ;;  %v327_v45 = vld [vmem:[#allocation8 + $0xd0] sm:$0xff] }
 0x139   :  { %1192 = vmatprep.subr.mxu0 %v376_v46  ;;  %998 = vmatprep.subr.mxu1 %v444_v47  ;;  %v627_v46 = vld [vmem:[#allocation8 + $0xa30] sm:$0xff]  ;;  %v326_v47 = vld [vmem:[#allocation8 + $0xc8] sm:$0xff] }
 0x13a   :  { %1193 = vmatpush1.msra.mxu0 %v375_v52  ;;  %999 = vmatpush2.msra.mxu1 %v443_v53  ;;  %v621_v52 = vld [vmem:[#allocation8 + $0xa00] sm:$0xff]  ;;  %v320_v53 = vld [vmem:[#allocation8 + $0x98] sm:$0xff] }
 0x13b   :  { %1146 = vmatmul.mubr.f32.gmra.mxu0 %v2695_v18  ;;  %1194 = vmatprep.subr.mxu0 %v369_v55  ;;  %v620_v55 = vld [vmem:[#allocation8 + $0x9f8] sm:$0xff] }
 0x13c   :  { %1000 = vmatprep.subr.mxu1 %v437_v59  ;;  %2261 = vmatprep.mubr.msk.f32.mxu0 %vm150_vm0, %v2700_v28  ;;  %v319_v59 = vld [vmem:[#allocation8 + $0x90] sm:$0xff] }
 0x13d   :  { %1195 = vmatpush1.msra.mxu0 %v368_v61  ;;  %1001 = vmatpush2.msra.mxu1 %v436_v62  ;;  %v614_v61 = vld [vmem:[#allocation8 + $0x9c8] sm:$0xff]  ;;  %v313_v62 = vld [vmem:[#allocation8 + $0x60] sm:$0xff] }
 0x13e   :  { %1196 = vmatprep.subr.mxu0 %v362_v3  ;;  %1002 = vmatprep.subr.mxu1 %v430_v5  ;;  %v613_v3 = vld [vmem:[#allocation8 + $0x9c0] sm:$0xff]  ;;  %v312_v5 = vld [vmem:[#allocation8 + $0x58] sm:$0xff] }
 0x13f   :  { %1197 = vmatpush1.msra.mxu0 %v361_v7  ;;  %1003 = vmatpush2.msra.mxu1 %v429_v20  ;;  %v607_v7 = vld [vmem:[#allocation8 + $0x990] sm:$0xff]  ;;  %v306_v20 = vld [vmem:[#allocation8 + $0x28] sm:$0xff] }
 0x140   :  { %1152 = vmatmul.mubr.f32.gmra.mxu0 %v2712_v43  ;;  %1198 = vmatprep.subr.mxu0 %v355_v9  ;;  %v606_v9 = vld [vmem:[#allocation8 + $0x988] sm:$0xff] }
 0x141   :  { %1004 = vmatprep.subr.mxu1 %v423_v11  ;;  %2262 = vmatprep.mubr.msk.f32.mxu0 %vm150_vm0, %v2717_v51  ;;  %v305_v11 = vld [vmem:[#allocation8 + $0x20] sm:$0xff] }
 0x142   :  { %1199 = vmatpush1.msra.mxu0 %v354_v13  ;;  %1005 = vmatpush2.msra.mxu1 %v422_v14  ;;  %v600_v13 = vld [vmem:[#allocation8 + $0x958] sm:$0xff]  ;;  %v523_v14 = vld [vmem:[#allocation8 + $0x6f0] sm:$0xff] }
 0x143   :  { %1200 = vmatprep.subr.mxu0 %v348_v19  ;;  %1006 = vmatprep.subr.mxu1 %v416_v21  ;;  %v599_v19 = vld [vmem:[#allocation8 + $0x950] sm:$0xff]  ;;  %v522_v21 = vld [vmem:[#allocation8 + $0x6e8] sm:$0xff] }
 0x144   :  { %1201 = vmatpush1.msra.mxu0 %v347_v17  ;;  %1007 = vmatpush2.msra.mxu1 %v415_v24  ;;  %v593_v17 = vld [vmem:[#allocation8 + $0x920] sm:$0xff]  ;;  %v516_v24 = vld [vmem:[#allocation8 + $0x6b8] sm:$0xff] }
 0x145   :  { %1158 = vmatmul.mubr.f32.gmra.mxu0 %v2729_v2  ;;  %1202 = vmatprep.subr.mxu0 %v341_v31  ;;  %v592_v31 = vld [vmem:[#allocation8 + $0x918] sm:$0xff] }
 0x146   :  { %1009 = vmatmul.mubr.f32.vlgmr.msra.gmra.mxu1 %v2626_v23  ;;  %2263 = vmatprep.mubr.msk.f32.mxu0 %vm150_vm0, %v2734_v8 }
 0x147   :  { %1203 = vmatpush1.msra.mxu0 %v340_v34  ;;  %1301 = vmatprep.subr.mxu1 %v635_v22  ;;  %v515_v34 = vld [vmem:[#allocation8 + $0x6b0] sm:$0xff]  ;;  %v586_v22 = vld [vmem:[#allocation8 + $0x8e8] sm:$0xff] }
 0x148   :  { %1014 = vmatprep.mubr.f32.mxu1 %v2639_v32  ;;  %1204 = vmatprep.subr.mxu0 %v334_v35  ;;  %v509_v35 = vld [vmem:[#allocation8 + $0x680] sm:$0xff] }
 0x149   :  { %1302 = vmatpush1.msra.mxu1 %v634_v36  ;;  %1205 = vmatpush1.msra.mxu0 %v333_v40  ;;  %v585_v36 = vld [vmem:[#allocation8 + $0x8e0] sm:$0xff]  ;;  %v508_v40 = vld [vmem:[#allocation8 + $0x678] sm:$0xff] }
 0x14a   :  { %1303 = vmatprep.subr.mxu1 %v628_v41  ;;  %1164 = vmatmul.mubr.f32.gmra.mxu0 %v2746_v29  ;;  %v579_v41 = vld [vmem:[#allocation8 + $0x8b0] sm:$0xff] }
 0x14b   :  { %1206 = vmatprep.subr.mxu0 %v327_v45  ;;  %1304 = vmatpush1.msra.mxu1 %v627_v46  ;;  %v502_v45 = vld [vmem:[#allocation8 + $0x648] sm:$0xff] }
 0x14c   :  { %1015 = vmatmul.mubr.f32.gmra.mxu1 %v2654_v44  ;;  %2264 = vmatprep.mubr.msk.f32.mxu0 %vm150_vm0, %v2751_v39  ;;  %v578_v46 = vld [vmem:[#allocation8 + $0x8a8] sm:$0xff] }
 0x14d   :  { %1207 = vmatpush1.msra.mxu0 %v326_v47  ;;  %1305 = vmatprep.subr.mxu1 %v621_v52  ;;  %v501_v47 = vld [vmem:[#allocation8 + $0x640] sm:$0xff]  ;;  %v572_v52 = vld [vmem:[#allocation8 + $0x878] sm:$0xff] }
 0x14e   :  { %1020 = vmatprep.mubr.f32.mxu1 %v2658_v48  ;;  %1208 = vmatprep.subr.mxu0 %v320_v53  ;;  %v495_v53 = vld [vmem:[#allocation8 + $0x610] sm:$0xff] }
 0x14f   :  { %1306 = vmatpush1.msra.mxu1 %v620_v55  ;;  %1209 = vmatpush1.msra.mxu0 %v319_v59  ;;  %v571_v55 = vld [vmem:[#allocation8 + $0x870] sm:$0xff]  ;;  %v494_v59 = vld [vmem:[#allocation8 + $0x608] sm:$0xff] }
 0x150   :  { %1307 = vmatprep.subr.mxu1 %v614_v61  ;;  %1170 = vmatmul.mubr.f32.gmra.mxu0 %v2763_v57  ;;  %v565_v61 = vld [vmem:[#allocation8 + $0x840] sm:$0xff] }
 0x151   :  { %1210 = vmatprep.subr.mxu0 %v313_v62  ;;  %1308 = vmatpush1.msra.mxu1 %v613_v3  ;;  %v488_v62 = vld [vmem:[#allocation8 + $0x5d8] sm:$0xff] }
 0x152   :  { %1021 = vmatmul.mubr.f32.gmra.mxu1 %v2671_v60  ;;  %2265 = vmatprep.mubr.msk.f32.mxu0 %vm150_vm0, %v2768_v4  ;;  %v564_v3 = vld [vmem:[#allocation8 + $0x838] sm:$0xff] }
 0x153   :  { %1211 = vmatpush1.msra.mxu0 %v312_v5  ;;  %1309 = vmatprep.subr.mxu1 %v607_v7  ;;  %v487_v5 = vld [vmem:[#allocation8 + $0x5d0] sm:$0xff]  ;;  %v558_v7 = vld [vmem:[#allocation8 + $0x808] sm:$0xff] }
 0x154   :  { %1026 = vmatprep.mubr.f32.mxu1 %v2675_v0  ;;  %1212 = vmatprep.subr.mxu0 %v306_v20  ;;  %v481_v20 = vld [vmem:[#allocation8 + $0x5a0] sm:$0xff] }
 0x155   :  { %1310 = vmatpush1.msra.mxu1 %v606_v9  ;;  %1213 = vmatpush1.msra.mxu0 %v305_v11  ;;  %v557_v9 = vld [vmem:[#allocation8 + $0x800] sm:$0xff]  ;;  %v480_v11 = vld [vmem:[#allocation8 + $0x598] sm:$0xff] }
 0x156   :  { %1311 = vmatprep.subr.mxu1 %v600_v13  ;;  %1176 = vmatmul.mubr.f32.gmra.mxu0 %v2777_v25  ;;  %v551_v13 = vld [vmem:[#allocation8 + $0x7d0] sm:$0xff] }
 0x157   :  { %1214 = vmatprep.subr.mxu0 %v523_v14  ;;  %1312 = vmatpush1.msra.mxu1 %v599_v19  ;;  %v474_v14 = vld [vmem:[#allocation8 + $0x568] sm:$0xff] }
 0x158   :  { %1027 = vmatmul.mubr.f32.gmra.mxu1 %v2688_v12  ;;  %1215 = vmatpush2.msra.mxu0 %v522_v21  ;;  %v550_v19 = vld [vmem:[#allocation8 + $0x7c8] sm:$0xff]  ;;  %v473_v21 = vld [vmem:[#allocation8 + $0x560] sm:$0xff] }
 0x159   :  { %1246 = vmatprep.mubr.f32.mxu0 %v2631_v26  ;;  %1313 = vmatprep.subr.mxu1 %v593_v17  ;;  %v544_v17 = vld [vmem:[#allocation8 + $0x798] sm:$0xff] }
 0x15a   :  { %1032 = vmatprep.mubr.f32.mxu1 %v2692_v16  ;;  %1216 = vmatprep.subr.mxu0 %v516_v24  ;;  %v467_v24 = vld [vmem:[#allocation8 + $0x530] sm:$0xff] }
 0x15b   :  { %1314 = vmatpush1.msra.mxu1 %v592_v31  ;;  %1217 = vmatpush2.msra.mxu0 %v515_v34  ;;  %v543_v31 = vld [vmem:[#allocation8 + $0x790] sm:$0xff]  ;;  %v466_v34 = vld [vmem:[#allocation8 + $0x528] sm:$0xff] }
 0x15c   :  { %1315 = vmatprep.subr.mxu1 %v586_v22  ;;  %1218 = vmatprep.subr.mxu0 %v509_v35  ;;  %v537_v22 = vld [vmem:[#allocation8 + $0x760] sm:$0xff]  ;;  %v460_v35 = vld [vmem:[#allocation8 + $0x4f8] sm:$0xff] }
 0x15d   :  { %1316 = vmatpush1.msra.mxu1 %v585_v36  ;;  %1219 = vmatpush2.msra.mxu0 %v508_v40  ;;  %v536_v36 = vld [vmem:[#allocation8 + $0x758] sm:$0xff]  ;;  %v459_v40 = vld [vmem:[#allocation8 + $0x4f0] sm:$0xff] }
 0x15e   :  { %1033 = vmatmul.mubr.f32.gmra.mxu1 %v2705_v37  ;;  %1317 = vmatprep.subr.mxu1 %v579_v41  ;;  %v530_v41 = vld [vmem:[#allocation8 + $0x728] sm:$0xff] }
 0x15f   :  { %1038 = vmatprep.mubr.f32.mxu1 %v2709_v42  ;;  %1220 = vmatprep.subr.mxu0 %v502_v45  ;;  %v453_v45 = vld [vmem:[#allocation8 + $0x4c0] sm:$0xff] }
 0x160   :  { %1318 = vmatpush1.msra.mxu1 %v578_v46  ;;  %1221 = vmatpush2.msra.mxu0 %v501_v47  ;;  %v529_v46 = vld [vmem:[#allocation8 + $0x720] sm:$0xff]  ;;  %v452_v47 = vld [vmem:[#allocation8 + $0x4b8] sm:$0xff] }
 0x161   :  { %1319 = vmatprep.subr.mxu1 %v572_v52  ;;  %1222 = vmatprep.subr.mxu0 %v495_v53  ;;  %v677_v52 = vld [vmem:[#allocation8 + $0xbc0] sm:$0xff]  ;;  %v446_v53 = vld [vmem:[#allocation8 + $0x488] sm:$0xff] }
 0x162   :  { %1320 = vmatpush1.msra.mxu1 %v571_v55  ;;  %1223 = vmatpush2.msra.mxu0 %v494_v59  ;;  %v676_v55 = vld [vmem:[#allocation8 + $0xbb8] sm:$0xff]  ;;  %v445_v59 = vld [vmem:[#allocation8 + $0x480] sm:$0xff] }
 0x163   :  { %1039 = vmatmul.mubr.f32.gmra.mxu1 %v2722_v58  ;;  %1321 = vmatprep.subr.mxu1 %v565_v61  ;;  %v670_v61 = vld [vmem:[#allocation8 + $0xb88] sm:$0xff] }
 0x164   :  { %1044 = vmatprep.mubr.f32.mxu1 %v2726_v63  ;;  %1224 = vmatprep.subr.mxu0 %v488_v62  ;;  %v439_v62 = vld [vmem:[#allocation8 + $0x450] sm:$0xff] }
 0x165   :  { %1322 = vmatpush1.msra.mxu1 %v564_v3  ;;  %1225 = vmatpush2.msra.mxu0 %v487_v5  ;;  %v669_v3 = vld [vmem:[#allocation8 + $0xb80] sm:$0xff]  ;;  %v438_v5 = vld [vmem:[#allocation8 + $0x448] sm:$0xff] }
 0x166   :  { %1323 = vmatprep.subr.mxu1 %v558_v7  ;;  %1226 = vmatprep.subr.mxu0 %v481_v20  ;;  %v663_v7 = vld [vmem:[#allocation8 + $0xb50] sm:$0xff]  ;;  %v432_v20 = vld [vmem:[#allocation8 + $0x418] sm:$0xff] }
 0x167   :  { %1324 = vmatpush1.msra.mxu1 %v557_v9  ;;  %1227 = vmatpush2.msra.mxu0 %v480_v11  ;;  %v662_v9 = vld [vmem:[#allocation8 + $0xb48] sm:$0xff]  ;;  %v431_v11 = vld [vmem:[#allocation8 + $0x410] sm:$0xff] }
 0x168   :  { %1045 = vmatmul.mubr.f32.gmra.mxu1 %v2739_v15  ;;  %1325 = vmatprep.subr.mxu1 %v551_v13  ;;  %v656_v13 = vld [vmem:[#allocation8 + $0xb18] sm:$0xff] }
 0x169   :  { %1050 = vmatprep.mubr.f32.mxu1 %v2743_v27  ;;  %1228 = vmatprep.subr.mxu0 %v474_v14  ;;  %v425_v14 = vld [vmem:[#allocation8 + $0x3e0] sm:$0xff] }
 0x16a   :  { %1326 = vmatpush1.msra.mxu1 %v550_v19  ;;  %1229 = vmatpush2.msra.mxu0 %v473_v21  ;;  %v655_v19 = vld [vmem:[#allocation8 + $0xb10] sm:$0xff]  ;;  %v424_v21 = vld [vmem:[#allocation8 + $0x3d8] sm:$0xff] }
 0x16b   :  { %1327 = vmatprep.subr.mxu1 %v544_v17  ;;  %1230 = vmatprep.subr.mxu0 %v467_v24  ;;  %v649_v17 = vld [vmem:[#allocation8 + $0xae0] sm:$0xff]  ;;  %v418_v24 = vld [vmem:[#allocation8 + $0x3a8] sm:$0xff] }
 0x16c   :  { %1328 = vmatpush1.msra.mxu1 %v543_v31  ;;  %1231 = vmatpush2.msra.mxu0 %v466_v34  ;;  %v648_v31 = vld [vmem:[#allocation8 + $0xad8] sm:$0xff]  ;;  %v417_v34 = vld [vmem:[#allocation8 + $0x3a0] sm:$0xff] }
 0x16d   :  { %1051 = vmatmul.mubr.f32.gmra.mxu1 %v2756_v50  ;;  %1329 = vmatprep.subr.mxu1 %v537_v22  ;;  %v642_v22 = vld [vmem:[#allocation8 + $0xaa8] sm:$0xff] }
 0x16e   :  { %1056 = vmatprep.mubr.f32.mxu1 %v2760_v56  ;;  %1232 = vmatprep.subr.mxu0 %v460_v35  ;;  %v641_v35 = vld [vmem:[#allocation8 + $0xaa0] sm:$0xff] }
 0x16f   :  { %1330 = vmatpush1.msra.mxu1 %v536_v36  ;;  %1233 = vmatpush2.msra.mxu0 %v459_v40  ;;  %v524_v36 = vld [vmem:[#allocation8 + $0x6f8] sm:$0xff] }
 0x170   :  { %1331 = vmatprep.subr.mxu1 %v530_v41  ;;  %1234 = vmatprep.subr.mxu0 %v453_v45  ;;  %v2829_v40 = vld [vmem:[#allocation8 + $0xa78] sm:$0xff]  ;;  %v2551_v41 = vmov 0.0  }
 0x171   :  { %1332 = vmatpush1.msra.mxu1 %v529_v46  ;;  %1235 = vmatpush2.msra.mxu0 %v452_v47  ;;  %v412_v45 = vld [vmem:[#allocation8 + $0x378] sm:$0xff]  ;;  %v2835_v46 = vld [vmem:[#allocation8 + $0xa40] sm:$0xff] }
 0x172   :  { %1057 = vmatmul.mubr.f32.gmra.mxu1 %v2773_v10  ;;  %1353 = vmatprep.subr.mxu1 %v677_v52  ;;  %v517_v47 = vld [vmem:[#allocation8 + $0x6c0] sm:$0xff]  ;;  %v2841_v52 = vld [vmem:[#allocation8 + $0xa08] sm:$0xff] }
 0x173   :  { %1236 = vmatprep.subr.mxu0 %v446_v53  ;;  %1354 = vmatpush2.msra.mxu1 %v676_v55  ;;  %v405_v53 = vld [vmem:[#allocation8 + $0x340] sm:$0xff]  ;;  %v510_v55 = vld [vmem:[#allocation8 + $0x688] sm:$0xff] }
 0x174   :  { %2266 = vmatprep.mubr.msk.f32.mxu1 %vm150_vm0, %v2635_v30  ;;  %1237 = vmatpush2.msra.mxu0 %v445_v59  ;;  %v398_v59 = vld [vmem:[#allocation8 + $0x308] sm:$0xff] }
 0x175   :  { %1355 = vmatprep.subr.mxu1 %v670_v61  ;;  %1238 = vmatprep.subr.mxu0 %v439_v62  ;;  %v2848_v61 = vld [vmem:[#allocation8 + $0x9d0] sm:$0xff] }
 0x176   :  { %1356 = vmatpush2.msra.mxu1 %v669_v3  ;;  %1239 = vmatpush2.msra.mxu0 %v438_v5  ;;  %v503_v62 = vld [vmem:[#allocation8 + $0x650] sm:$0xff]  ;;  %v2854_v3 = vld [vmem:[#allocation8 + $0x998] sm:$0xff] }
 0x177   :  { %1357 = vmatprep.subr.mxu1 %v663_v7  ;;  %1240 = vmatprep.subr.mxu0 %v432_v20  ;;  %v391_v5 = vld [vmem:[#allocation8 + $0x2d0] sm:$0xff]  ;;  %v496_v7 = vld [vmem:[#allocation8 + $0x618] sm:$0xff] }
 0x178   :  { %1358 = vmatpush2.msra.mxu1 %v662_v9  ;;  %1241 = vmatpush2.msra.mxu0 %v431_v11  ;;  %v384_v20 = vld [vmem:[#allocation8 + $0x298] sm:$0xff]  ;;  %v2861_v9 = vld [vmem:[#allocation8 + $0x960] sm:$0xff] }
 0x179   :  { %1359 = vmatprep.subr.mxu1 %v656_v13  ;;  %1242 = vmatprep.subr.mxu0 %v425_v14  ;;  %v489_v11 = vld [vmem:[#allocation8 + $0x5e0] sm:$0xff]  ;;  %v2867_v13 = vld [vmem:[#allocation8 + $0x928] sm:$0xff] }
 0x17a   :  { %1360 = vmatpush2.msra.mxu1 %v655_v19  ;;  %1243 = vmatpush2.msra.mxu0 %v424_v21  ;;  %v377_v14 = vld [vmem:[#allocation8 + $0x260] sm:$0xff]  ;;  %v482_v19 = vld [vmem:[#allocation8 + $0x5a8] sm:$0xff]  ;;  %v2874_v21 = vld [vmem:[#allocation8 + $0x8f0] sm:$0xff] }
 0x17b   :  { %1361 = vmatprep.subr.mxu1 %v649_v17  ;;  %1244 = vmatprep.subr.mxu0 %v418_v24  ;;  %v370_v17 = vld [vmem:[#allocation8 + $0x228] sm:$0xff]  ;;  %v475_v24 = vld [vmem:[#allocation8 + $0x570] sm:$0xff] }
 0x17c   :  { %1362 = vmatpush2.msra.mxu1 %v648_v31  ;;  %1245 = vmatpush2.msra.mxu0 %v417_v34  ;;  %v2880_v31 = vld [vmem:[#allocation8 + $0x8b8] sm:$0xff]  ;;  %v363_v34 = vld [vmem:[#allocation8 + $0x1f0] sm:$0xff] }
 0x17d   :  { %1363 = vmatprep.subr.mxu1 %v642_v22  ;;  %1247 = vmatmul.mubr.f32.vlgmr.msra.gmra.mxu0 %v2626_v23  ;;  %v468_v22 = vld [vmem:[#allocation8 + $0x538] sm:$0xff] }
 0x17e   :  { %1364 = vmatpush2.msra.mxu1 %v641_v35  ;;  %1530 = vmatprep.subr.mxu0 %v2551_v41  ;;  %v2887_v35 = vld [vmem:[#allocation8 + $0x880] sm:$0xff] }
 0x17f   :  { %1252 = vmatprep.mubr.f32.mxu0 %v2639_v32  ;;  %1366 = vmatmul.mubr.f32.vlgmr.msra.gmra.mxu1 %v2642_v33 }
 0x180   :  { %2284 = vmatprep.subr.mxu1 %v524_v36  ;;  %1531 = vmatpush1.msra.mxu0 %v2829_v40  ;;  %v356_v36 = vld [vmem:[#allocation8 + $0x1b8] sm:$0xff] }
 0x181   :  { %2267 = vmatprep.mubr.msk.f32.mxu1 %vm150_vm0, %v2649_v38  ;;  %2285 = vmatpush3.msra.mxu1 %v412_v45  ;;  %v2893_v45 = vld [vmem:[#allocation8 + $0x848] sm:$0xff] }
 0x182   :  { %1532 = vmatprep.subr.mxu0 %v2551_v41  ;;  %1253 = vmatmul.mubr.f32.gmra.mxu0 %v2654_v44 }
 0x183   :  { %1533 = vmatpush1.msra.mxu0 %v2835_v46  ;;  %2286 = vmatprep.subr.mxu1 %v517_v47  ;;  %v461_v47 = vld [vmem:[#allocation8 + $0x500] sm:$0xff] }
 0x184   :  { %1534 = vmatprep.subr.mxu0 %v2551_v41  ;;  %1258 = vmatprep.mubr.f32.mxu0 %v2658_v48 }
 0x185   :  { %1372 = vmatmul.mubr.f32.gmra.mxu1 %v2661_v49  ;;  %1535 = vmatpush1.msra.mxu0 %v2841_v52 }
 0x186   :  { %2287 = vmatpush3.msra.mxu1 %v405_v53  ;;  %2268 = vmatprep.mubr.msk.f32.mxu1 %vm150_vm0, %v2666_v54  ;;  %v349_v53 = vld [vmem:[#allocation8 + $0x180] sm:$0xff] }
 0x187   :  { %2288 = vmatprep.subr.mxu1 %v510_v55  ;;  %1536 = vmatprep.subr.mxu0 %v2551_v41  ;;  %v2899_v55 = vld [vmem:[#allocation8 + $0x810] sm:$0xff] }
 0x188   :  { %2289 = vmatpush3.msra.mxu1 %v398_v59  ;;  %1537 = vmatpush1.msra.mxu0 %v2848_v61  ;;  %v454_v59 = vld [vmem:[#allocation8 + $0x4c8] sm:$0xff] }
 0x189   :  { %1259 = vmatmul.mubr.f32.gmra.mxu0 %v2671_v60  ;;  %2290 = vmatprep.subr.mxu1 %v503_v62  ;;  %v2906_v62 = vld [vmem:[#allocation8 + $0x7d8] sm:$0xff] }
 0x18a   :  { %1538 = vmatprep.subr.mxu0 %v2551_v41  ;;  %1264 = vmatprep.mubr.f32.mxu0 %v2675_v0 }
 0x18b   :  { %1378 = vmatmul.mubr.f32.gmra.mxu1 %v2678_v1  ;;  %1539 = vmatpush1.msra.mxu0 %v2854_v3 }
 0x18c   :  { %2291 = vmatpush3.msra.mxu1 %v391_v5  ;;  %2269 = vmatprep.mubr.msk.f32.mxu1 %vm150_vm0, %v2683_v6  ;;  %v342_v5 = vld [vmem:[#allocation8 + $0x148] sm:$0xff] }
 0x18d   :  { %2292 = vmatprep.subr.mxu1 %v496_v7  ;;  %1540 = vmatprep.subr.mxu0 %v2551_v41  ;;  %v447_v7 = vld [vmem:[#allocation8 + $0x490] sm:$0xff] }
 0x18e   :  { %2293 = vmatpush3.msra.mxu1 %v384_v20  ;;  %1541 = vmatpush1.msra.mxu0 %v2861_v9  ;;  %v335_v20 = vld [vmem:[#allocation8 + $0x110] sm:$0xff] }
 0x18f   :  { %1265 = vmatmul.mubr.f32.gmra.mxu0 %v2688_v12  ;;  %1542 = vmatprep.subr.mxu0 %v2551_v41 }
 0x190   :  { %1270 = vmatprep.mubr.f32.mxu0 %v2692_v16  ;;  %1384 = vmatmul.mubr.f32.gmra.mxu1 %v2695_v18 }
 0x191   :  { %2294 = vmatprep.subr.mxu1 %v489_v11  ;;  %1543 = vmatpush1.msra.mxu0 %v2867_v13  ;;  %v2913_v11 = vld [vmem:[#allocation8 + $0x7a0] sm:$0xff] }
 0x192   :  { %2270 = vmatprep.mubr.msk.f32.mxu1 %vm150_vm0, %v2700_v28  ;;  %2295 = vmatpush3.msra.mxu1 %v377_v14  ;;  %v440_v14 = vld [vmem:[#allocation8 + $0x458] sm:$0xff] }
 0x193   :  { %1544 = vmatprep.subr.mxu0 %v2551_v41  ;;  %2296 = vmatprep.subr.mxu1 %v482_v19  ;;  %v2919_v19 = vld [vmem:[#allocation8 + $0x768] sm:$0xff] }
 0x194   :  { %1545 = vmatpush1.msra.mxu0 %v2874_v21  ;;  %2297 = vmatpush3.msra.mxu1 %v370_v17  ;;  %v328_v17 = vld [vmem:[#allocation8 + $0xd8] sm:$0xff] }
 0x195   :  { %1271 = vmatmul.mubr.f32.gmra.mxu0 %v2705_v37  ;;  %1546 = vmatprep.subr.mxu0 %v2551_v41 }
 0x196   :  { %1276 = vmatprep.mubr.f32.mxu0 %v2709_v42  ;;  %1390 = vmatmul.mubr.f32.gmra.mxu1 %v2712_v43 }
 0x197   :  { %2298 = vmatprep.subr.mxu1 %v475_v24  ;;  %1547 = vmatpush1.msra.mxu0 %v2880_v31  ;;  %v433_v24 = vld [vmem:[#allocation8 + $0x420] sm:$0xff] }
 0x198   :  { %2271 = vmatprep.mubr.msk.f32.mxu1 %vm150_vm0, %v2717_v51  ;;  %2299 = vmatpush3.msra.mxu1 %v363_v34  ;;  %v321_v34 = vld [vmem:[#allocation8 + $0xa0] sm:$0xff] }
 0x199   :  { %1548 = vmatprep.subr.mxu0 %v2551_v41  ;;  %2300 = vmatprep.subr.mxu1 %v468_v22  ;;  %v2926_v22 = vld [vmem:[#allocation8 + $0x730] sm:$0xff] }
 0x19a   :  { %1549 = vmatpush1.msra.mxu0 %v2887_v35  ;;  %2301 = vmatpush3.msra.mxu1 %v356_v36  ;;  %v426_v36 = vld [vmem:[#allocation8 + $0x3e8] sm:$0xff] }
 0x19b   :  { %1277 = vmatmul.mubr.f32.gmra.mxu0 %v2722_v58  ;;  %1550 = vmatprep.subr.mxu0 %v2551_v41 }
 0x19c   :  { %1282 = vmatprep.mubr.f32.mxu0 %v2726_v63  ;;  %1396 = vmatmul.mubr.f32.gmra.mxu1 %v2729_v2 }
 0x19d   :  { %1551 = vmatpush1.msra.mxu0 %v2893_v45  ;;  %2272 = vmatprep.mubr.msk.f32.mxu1 %vm150_vm0, %v2734_v8 }
 0x19e   :  { %2302 = vmatprep.subr.mxu1 %v461_v47  ;;  %1552 = vmatprep.subr.mxu0 %v2551_v41  ;;  %v314_v47 = vld [vmem:[#allocation8 + $0x68] sm:$0xff] }
 0x19f   :  { %2303 = vmatpush3.msra.mxu1 %v349_v53  ;;  %1553 = vmatpush1.msra.mxu0 %v2899_v55  ;;  %v2932_v53 = vld [vmem:[#allocation8 + $0xbc8] sm:$0xff] }
 0x1a0   :  { %1283 = vmatmul.mubr.f32.gmra.mxu0 %v2739_v15  ;;  %2304 = vmatprep.subr.mxu1 %v454_v59  ;;  %v419_v59 = vld [vmem:[#allocation8 + $0x3b0] sm:$0xff] }
 0x1a1   :  { %1554 = vmatprep.subr.mxu0 %v2551_v41  ;;  %1288 = vmatprep.mubr.f32.mxu0 %v2743_v27 }
 0x1a2   :  { %1402 = vmatmul.mubr.f32.gmra.mxu1 %v2746_v29  ;;  %1555 = vmatpush1.msra.mxu0 %v2906_v62 }
 0x1a3   :  { %2305 = vmatpush3.msra.mxu1 %v342_v5  ;;  %2273 = vmatprep.mubr.msk.f32.mxu1 %vm150_vm0, %v2751_v39  ;;  %v307_v5 = vld [vmem:[#allocation8 + $0x30] sm:$0xff] }
 0x1a4   :  { %2306 = vmatprep.subr.mxu1 %v447_v7  ;;  %1556 = vmatprep.subr.mxu0 %v2551_v41  ;;  %v2938_v7 = vld [vmem:[#allocation8 + $0xb90] sm:$0xff] }
 0x1a5   :  { %2307 = vmatpush3.msra.mxu1 %v335_v20  ;;  %1557 = vmatpush1.msra.mxu0 %v2913_v11 }
 0x1a6   :  { %1289 = vmatmul.mubr.f32.gmra.mxu0 %v2756_v50  ;;  %2308 = vmatprep.subr.mxu1 %v440_v14  ;;  %v2944_v14 = vld [vmem:[#allocation8 + $0xb58] sm:$0xff] }
 0x1a7   :  { %1558 = vmatprep.subr.mxu0 %v2551_v41  ;;  %1294 = vmatprep.mubr.f32.mxu0 %v2760_v56 }
 0x1a8   :  { %1408 = vmatmul.mubr.f32.gmra.mxu1 %v2763_v57  ;;  %1559 = vmatpush1.msra.mxu0 %v2919_v19 }
 0x1a9   :  { %2309 = vmatpush3.msra.mxu1 %v328_v17  ;;  %2274 = vmatprep.mubr.msk.f32.mxu1 %vm150_vm0, %v2768_v4 }
 0x1aa   :  { %2310 = vmatprep.subr.mxu1 %v433_v24  ;;  %1560 = vmatprep.subr.mxu0 %v2551_v41 }
 0x1ab   :  { %2311 = vmatpush3.msra.mxu1 %v321_v34  ;;  %1561 = vmatpush1.msra.mxu0 %v2926_v22 }
 0x1ac   :  { %1295 = vmatmul.mubr.f32.gmra.mxu0 %v2773_v10  ;;  %2312 = vmatprep.subr.mxu1 %v426_v36 }
 0x1ad   :  { %1582 = vmatprep.subr.mxu0 %v2551_v41  ;;  %1414 = vmatmul.mubr.f32.gmra.mxu1 %v2777_v25 }
 0x1ae   :  { %2313 = vmatpush3.msra.mxu1 %v314_v47  ;;  %1583 = vmatpush2.msra.mxu0 %v2932_v53  ;;  %v772_v20 = vpop.f32.mrf.mxu0 }
 0x1af   :  { %2275 = vmatprep.mubr.msk.f32.mxu0 %vm150_vm0, %v2635_v30  ;;  %2314 = vmatprep.subr.mxu1 %v419_v59  ;;  %v2961_v59 = vld [vmem:[#allocation8 + $0xae8] sm:$0xff] }
 0x1b0   :  { %1484 = vmatprep.mubr.f32.mxu1 %v2631_v26  ;;  %1584 = vmatprep.subr.mxu0 %v2551_v41  ;;  %v891_v17 = vpop.f32.mrf.mxu1  ;;  %v774_v24 = vpop.f32.mrf.mxu0  ;;  %v2953_v26 = vld [vmem:[#allocation8 + $0xb20] sm:$0xff] }
 0x1b1   :  { %2315 = vmatpush3.msra.mxu1 %v307_v5  ;;  %1585 = vmatpush2.msra.mxu0 %v2938_v7  ;;  %v2947_v34 = vadd.f32 %v891_v17, %v772_v20 }
 0x1b2   :  { %2343 = vmatprep.subr.mxu1 %v2551_v41  ;;  %1586 = vmatprep.subr.mxu0 %v2551_v41  ;;  %v893_v36 = vpop.f32.mrf.mxu1 }
 0x1b3   :  { %3673 = vst [vmem:[#allocation15_spill] sm:$0xff] %v2947_v34  ;;  %1485 = vmatmul.mubr.f32.vlgmr.msra.gmra.mxu1 %v2626_v23  ;;  %1587 = vmatpush2.msra.mxu0 %v2944_v14  ;;  %v2955_v30 = vadd.f32 %v893_v36, %v774_v24 }
 0x1b4   :  { %2365 = vmatpush1.msra.mxu1 %v2829_v40  ;;  %1489 = vmatprep.mubr.f32.mxu1 %v2639_v32  ;;  %v778_v47 = vpop.f32.mrf.mxu0  ;;  %v2971_v32 = vld [vmem:[#allocation8 + $0xab0] sm:$0xff] }
 0x1b5   :  { %3674 = vst [vmem:[#allocation16_spill] sm:$0xff] %v2955_v30  ;;  %2344 = vmatprep.subr.mxu1 %v2551_v41  ;;  %1588 = vmatprep.subr.mxu0 %v2551_v41 }
 0x1b6   :  { %2366 = vmatpush1.msra.mxu1 %v2835_v46  ;;  %1589 = vmatpush2.msra.mxu0 %v2953_v26  ;;  %v897_v23 = vpop.f32.mrf.mxu1  ;;  %v780_v5 = vpop.f32.mrf.mxu0 }
 0x1b7   :  { %2345 = vmatprep.subr.mxu1 %v2551_v41  ;;  %1590 = vmatprep.subr.mxu0 %v2551_v41  ;;  %v2967_v40 = vadd.f32 %v897_v23, %v778_v47 }
 0x1b8   :  { %1490 = vmatmul.mubr.f32.gmra.mxu1 %v2654_v44  ;;  %1591 = vmatpush2.msra.mxu0 %v2961_v59  ;;  %v899_v20 = vpop.f32.mrf.mxu1 }
 0x1b9   :  { %3675 = vst [vmem:[#allocation17_spill] sm:$0xff] %v2967_v40  ;;  %2367 = vmatpush1.msra.mxu1 %v2841_v52  ;;  %1494 = vmatprep.mubr.f32.mxu1 %v2658_v48  ;;  %v2975_v46 = vadd.f32 %v899_v20, %v780_v5 }
 0x1ba   :  { %2346 = vmatprep.subr.mxu1 %v2551_v41  ;;  %1592 = vmatprep.subr.mxu0 %v2551_v41  ;;  %v784_v17 = vpop.f32.mrf.mxu0 }
 0x1bb   :  { %3676 = vst [vmem:[#allocation18_spill] sm:$0xff] %v2975_v46  ;;  %2368 = vmatpush1.msra.mxu1 %v2848_v61  ;;  %1593 = vmatpush2.msra.mxu0 %v2971_v32 }
 0x1bc   :  { %2347 = vmatprep.subr.mxu1 %v2551_v41  ;;  %1595 = vmatmul.mubr.f32.vlgmr.msra.gmra.mxu0 %v2642_v33  ;;  %v903_v44 = vpop.f32.mrf.mxu1  ;;  %v786_v24 = vpop.f32.mrf.mxu0 }
 0x1bd   :  { %1495 = vmatmul.mubr.f32.gmra.mxu1 %v2671_v60  ;;  %2276 = vmatprep.mubr.msk.f32.mxu0 %vm150_vm0, %v2649_v38  ;;  %v2986_v48 = vadd.f32 %v903_v44, %v784_v17 }
 0x1be   :  { %2369 = vmatpush1.msra.mxu1 %v2854_v3  ;;  %1499 = vmatprep.mubr.f32.mxu1 %v2675_v0  ;;  %v905_v52 = vpop.f32.mrf.mxu1 }
 0x1bf   :  { %3677 = vst [vmem:[#allocation19_spill] sm:$0xff] %v2986_v48  ;;  %2348 = vmatprep.subr.mxu1 %v2551_v41  ;;  %v2991_v61 = vadd.f32 %v905_v52, %v786_v24 }
 0x1c0   :  { %2370 = vmatpush1.msra.mxu1 %v2861_v9  ;;  %1600 = vmatmul.mubr.f32.gmra.mxu0 %v2661_v49  ;;  %v790_v33 = vpop.f32.mrf.mxu0 }
 0x1c1   :  { %3678 = vst [vmem:[#allocation20_spill] sm:$0xff] %v2991_v61  ;;  %2349 = vmatprep.subr.mxu1 %v2551_v41  ;;  %1500 = vmatmul.mubr.f32.gmra.mxu1 %v2688_v12 }
 0x1c2   :  { %2371 = vmatpush1.msra.mxu1 %v2867_v13  ;;  %2277 = vmatprep.mubr.msk.f32.mxu0 %vm150_vm0, %v2666_v54  ;;  %v909_v38 = vpop.f32.mrf.mxu1  ;;  %v792_v60 = vpop.f32.mrf.mxu0 }
 0x1c3   :  { %1504 = vmatprep.mubr.f32.mxu1 %v2692_v16  ;;  %2350 = vmatprep.subr.mxu1 %v2551_v41  ;;  %v3002_v0 = vadd.f32 %v909_v38, %v790_v33 }
 0x1c4   :  { %2372 = vmatpush1.msra.mxu1 %v2874_v21  ;;  %1605 = vmatmul.mubr.f32.gmra.mxu0 %v2678_v1  ;;  %v911_v49 = vpop.f32.mrf.mxu1 }
 0x1c5   :  { %3679 = vst [vmem:[#allocation21_spill] sm:$0xff] %v3002_v0  ;;  %2351 = vmatprep.subr.mxu1 %v2551_v41  ;;  %1505 = vmatmul.mubr.f32.gmra.mxu1 %v2705_v37  ;;  %v3008_v12 = vadd.f32 %v911_v49, %v792_v60 }
 0x1c6   :  { %2373 = vmatpush1.msra.mxu1 %v2880_v31  ;;  %2278 = vmatprep.mubr.msk.f32.mxu0 %vm150_vm0, %v2683_v6  ;;  %v796_v54 = vpop.f32.mrf.mxu0 }
 0x1c7   :  { %3680 = vst [vmem:[#allocation22_spill] sm:$0xff] %v3008_v12  ;;  %1509 = vmatprep.mubr.f32.mxu1 %v2709_v42  ;;  %2352 = vmatprep.subr.mxu1 %v2551_v41 }
 0x1c8   :  { %2374 = vmatpush1.msra.mxu1 %v2887_v35  ;;  %1610 = vmatmul.mubr.f32.gmra.mxu0 %v2695_v18  ;;  %v915_v1 = vpop.f32.mrf.mxu1  ;;  %v798_v16 = vpop.f32.mrf.mxu0 }
 0x1c9   :  { %2353 = vmatprep.subr.mxu1 %v2551_v41  ;;  %1510 = vmatmul.mubr.f32.gmra.mxu1 %v2722_v58  ;;  %v3019_v37 = vadd.f32 %v915_v1, %v796_v54 }
 0x1ca   :  { %2375 = vmatpush1.msra.mxu1 %v2893_v45  ;;  %2279 = vmatprep.mubr.msk.f32.mxu0 %vm150_vm0, %v2700_v28  ;;  %v917_v6 = vpop.f32.mrf.mxu1 }
 0x1cb   :  { %3681 = vst [vmem:[#allocation23_spill] sm:$0xff] %v3019_v37  ;;  %1514 = vmatprep.mubr.f32.mxu1 %v2726_v63  ;;  %2354 = vmatprep.subr.mxu1 %v2551_v41  ;;  %v3026_v42 = vadd.f32 %v917_v6, %v798_v16 }
 0x1cc   :  { %2376 = vmatpush1.msra.mxu1 %v2899_v55  ;;  %1615 = vmatmul.mubr.f32.gmra.mxu0 %v2712_v43  ;;  %v802_v18 = vpop.f32.mrf.mxu0 }
 0x1cd   :  { %3682 = vst [vmem:[#allocation24_spill] sm:$0xff] %v3026_v42  ;;  %2355 = vmatprep.subr.mxu1 %v2551_v41  ;;  %1515 = vmatmul.mubr.f32.gmra.mxu1 %v2739_v15 }
 0x1ce   :  { %2377 = vmatpush1.msra.mxu1 %v2906_v62  ;;  %2280 = vmatprep.mubr.msk.f32.mxu0 %vm150_vm0, %v2717_v51  ;;  %v921_v28 = vpop.f32.mrf.mxu1  ;;  %v804_v58 = vpop.f32.mrf.mxu0 }
 0x1cf   :  { %1519 = vmatprep.mubr.f32.mxu1 %v2743_v27  ;;  %2356 = vmatprep.subr.mxu1 %v2551_v41  ;;  %v3037_v63 = vadd.f32 %v921_v28, %v802_v18 }
 0x1d0   :  { %2378 = vmatpush1.msra.mxu1 %v2913_v11  ;;  %1620 = vmatmul.mubr.f32.gmra.mxu0 %v2729_v2  ;;  %v923_v43 = vpop.f32.mrf.mxu1 }
 0x1d1   :  { %3683 = vst [vmem:[#allocation25_spill] sm:$0xff] %v3037_v63  ;;  %2357 = vmatprep.subr.mxu1 %v2551_v41  ;;  %1520 = vmatmul.mubr.f32.gmra.mxu1 %v2756_v50  ;;  %v3043_v15 = vadd.f32 %v923_v43, %v804_v58 }
 0x1d2   :  { %2379 = vmatpush1.msra.mxu1 %v2919_v19  ;;  %2281 = vmatprep.mubr.msk.f32.mxu0 %vm150_vm0, %v2734_v8  ;;  %v808_v51 = vpop.f32.mrf.mxu0 }
 0x1d3   :  { %3684 = vst [vmem:[#allocation26_spill] sm:$0xff] %v3043_v15  ;;  %1524 = vmatprep.mubr.f32.mxu1 %v2760_v56  ;;  %2358 = vmatprep.subr.mxu1 %v2551_v41 }
 0x1d4   :  { %2380 = vmatpush1.msra.mxu1 %v2926_v22  ;;  %1625 = vmatmul.mubr.f32.gmra.mxu0 %v2746_v29  ;;  %v927_v2 = vpop.f32.mrf.mxu1  ;;  %v810_v27 = vpop.f32.mrf.mxu0 }
 0x1d5   :  { %2359 = vmatprep.subr.mxu1 %v2551_v41  ;;  %1525 = vmatmul.mubr.f32.gmra.mxu1 %v2773_v10  ;;  %v3054_v50 = vadd.f32 %v927_v2, %v808_v51 }
 0x1d6   :  { %2381 = vmatpush2.msra.mxu1 %v2932_v53  ;;  %2282 = vmatprep.mubr.msk.f32.mxu1 %vm150_vm0, %v2751_v39  ;;  %v929_v8 = vpop.f32.mrf.mxu1 }
 0x1d7   :  { %3685 = vst [vmem:[#allocation27_spill] sm:$0xff] %v3054_v50  ;;  %2360 = vmatprep.subr.mxu1 %v2551_v41  ;;  %v3060_v56 = vadd.f32 %v929_v8, %v810_v27 }
 0x1d8   :  { %2382 = vmatpush2.msra.mxu1 %v2938_v7  ;;  %v814_v29 = vpop.f32.mrf.mxu0 }
 0x1d9   :  { %3686 = vst [vmem:[#allocation28_spill] sm:$0xff] %v3060_v56  ;;  %2361 = vmatprep.subr.mxu1 %v2551_v41 }
 0x1da   :  { %2383 = vmatpush2.msra.mxu1 %v2944_v14  ;;  %v933_v10 = vpop.f32.mrf.mxu1  ;;  %v816_v3 = vpop.f32.mrf.mxu0 }
 0x1db   :  { %2362 = vmatprep.subr.mxu1 %v2551_v41  ;;  %v3066_v9 = vadd.f32 %v933_v10, %v814_v29 }
 0x1dc   :  { %2384 = vmatpush2.msra.mxu1 %v2953_v26  ;;  %v935_v39 = vpop.f32.mrf.mxu1 }
 0x1dd   :  { %3687 = vst [vmem:[#allocation29_spill] sm:$0xff] %v3066_v9  ;;  %2363 = vmatprep.subr.mxu1 %v2551_v41  ;;  %v3070_v13 = vadd.f32 %v935_v39, %v816_v3  ;;  %v1743_v9 = vmul.f32 %v3008_v12, %v3008_v12 }
 0x1de   :  { %2385 = vmatpush2.msra.mxu1 %v2961_v59  ;;  %v820_v21 = vpop.f32.mrf.mxu0 }
 0x1df   :  { %3688 = vst [vmem:[#allocation30_spill] sm:$0xff] %v3070_v13  ;;  %2364 = vmatprep.subr.mxu1 %v2551_v41 }
 0x1e0   :  { %2386 = vmatpush2.msra.mxu1 %v2971_v32  ;;  %v939_v31 = vpop.f32.mrf.mxu1  ;;  %v822_v35 = vpop.f32.mrf.mxu0 }
 0x1e1   :  { %1630 = vmatmul.mubr.f32.vlgmr.msra.gmra.mxu1 %v2763_v57  ;;  %v3076_v45 = vadd.f32 %v939_v31, %v820_v21 }
 0x1e2   :  { %2283 = vmatprep.mubr.msk.f32.mxu1 %vm150_vm0, %v2768_v4  ;;  %v941_v55 = vpop.f32.mrf.mxu1 }
 0x1e3   :  { %3689 = vst [vmem:[#allocation31_spill] sm:$0xff] %v3076_v45  ;;  %v3080_v62 = vadd.f32 %v941_v55, %v822_v35  ;;  %v1729_v45 = vmul.f32 %v2975_v46, %v2975_v46 }
 0x1e5   :  { %3690 = vst [vmem:[#allocation32_spill] sm:$0xff] %v3080_v62  ;;  %1635 = vmatmul.mubr.f32.gmra.mxu1 %v2777_v25  ;;  %v1736_v62 = vmul.f32 %v2991_v61, %v2991_v61 }
 0x1ec   :  { %v1129_v11 = vpop.f32.mrf.mxu0 }
 0x1ee   :  { %v1131_v19 = vpop.f32.mrf.mxu0 }
 0x1f1   :  { %v1135_v22 = vpop.f32.mrf.mxu0 }
 0x1f3   :  { %v1137_v41 = vpop.f32.mrf.mxu0 }
 0x1f6   :  { %v1141_v53 = vpop.f32.mrf.mxu0 }
 0x1f8   :  { %v1143_v7 = vpop.f32.mrf.mxu0 }
 0x1fb   :  { %v1147_v57 = vpop.f32.mrf.mxu0 }
 0x1fd   :  { %v1149_v59 = vpop.f32.mrf.mxu0 }
 0x200   :  { %v1153_v25 = vpop.f32.mrf.mxu0 }
 0x202   :  { %v1155_v44 = vpop.f32.mrf.mxu0 }
 0x205   :  { %v1159_v33 = vpop.f32.mrf.mxu0 }
 0x206   :  { %v1010_v14 = vpop.f32.mrf.mxu1 }
 0x207   :  { %v3083_v36 = vadd.f32 %v1129_v11, %v1010_v14  ;;  %v1161_v1 = vpop.f32.mrf.mxu0 }
 0x208   :  { %v1012_v26 = vpop.f32.mrf.mxu1 }
 0x209   :  { %3691 = vst [vmem:[#allocation33_spill] sm:$0xff] %v3083_v36  ;;  %v3085_v47 = vadd.f32 %v1131_v19, %v1012_v26 }
 0x20a   :  { %v1165_v18 = vpop.f32.mrf.mxu0 }
 0x20c   :  { %v1016_v4 = vpop.f32.mrf.mxu1  ;;  %v1167_v51 = vpop.f32.mrf.mxu0 }
 0x20d   :  { %v3087_v23 = vadd.f32 %v1135_v22, %v1016_v4 }
 0x20e   :  { %v1018_v5 = vpop.f32.mrf.mxu1 }
 0x20f   :  { %v3089_v32 = vadd.f32 %v1137_v41, %v1018_v5 }
 0x210   :  { %v1171_v29 = vpop.f32.mrf.mxu0 }
 0x212   :  { %v1022_v20 = vpop.f32.mrf.mxu1  ;;  %v1173_v31 = vpop.f32.mrf.mxu0 }
 0x213   :  { %v3091_v17 = vadd.f32 %v1141_v53, %v1022_v20 }
 0x214   :  { %v1024_v24 = vpop.f32.mrf.mxu1 }
 0x215   :  { %v3093_v52 = vadd.f32 %v1143_v7, %v1024_v24 }
 0x216   :  { %v1177_v19 = vpop.f32.mrf.mxu0 }
 0x218   :  { %v1028_v38 = vpop.f32.mrf.mxu1  ;;  %v1179_v7 = vpop.f32.mrf.mxu0 }
 0x219   :  { %v3095_v60 = vadd.f32 %v1147_v57, %v1028_v38 }
 0x21a   :  { %v1030_v49 = vpop.f32.mrf.mxu1 }
 0x21b   :  { %v3097_v54 = vadd.f32 %v1149_v59, %v1030_v49 }
 0x21e   :  { %v1034_v16 = vpop.f32.mrf.mxu1 }
 0x21f   :  { %v3099_v6 = vadd.f32 %v1153_v25, %v1034_v16 }
 0x220   :  { %v1036_v28 = vpop.f32.mrf.mxu1 }
 0x221   :  { %v3101_v58 = vadd.f32 %v1155_v44, %v1036_v28 }
 0x223   :  { %v1040_v43 = vpop.f32.mrf.mxu1 }
 0x224   :  { %v3103_v2 = vadd.f32 %v1159_v33, %v1040_v43 }
 0x225   :  { %v1042_v27 = vpop.f32.mrf.mxu1 }
 0x226   :  { %v3105_v8 = vadd.f32 %v1161_v1, %v1042_v27 }
 0x228   :  { %v1046_v10 = vpop.f32.mrf.mxu1 }
 0x229   :  { %v3107_v3 = vadd.f32 %v1165_v18, %v1046_v10 }
 0x22a   :  { %v1048_v39 = vpop.f32.mrf.mxu1 }
 0x22b   :  { %v3109_v21 = vadd.f32 %v1167_v51, %v1048_v39 }
 0x22d   :  { %3692 = vst [vmem:[#allocation34_spill] sm:$0xff] %v3109_v21  ;;  %v1052_v35 = vpop.f32.mrf.mxu1 }
 0x22e   :  { %v3111_v55 = vadd.f32 %v1171_v29, %v1052_v35 }
 0x22f   :  { %v1054_v11 = vpop.f32.mrf.mxu1 }
 0x230   :  { %3693 = vst [vmem:[#allocation35_spill] sm:$0xff] %v3111_v55  ;;  %v3113_v22 = vadd.f32 %v1173_v31, %v1054_v11  ;;  %v1721_v55 = vmul.f32 %v2947_v34, %v2947_v34 }
 0x232   :  { %3694 = vst [vmem:[#allocation36_spill] sm:$0xff] %v3113_v22  ;;  %v1058_v41 = vpop.f32.mrf.mxu1 }
 0x233   :  { %v3115_v53 = vadd.f32 %v1177_v19, %v1058_v41 }
 0x234   :  { %v1060_v14 = vpop.f32.mrf.mxu1 }
 0x235   :  { %3695 = vst [vmem:[#allocation37_spill] sm:$0xff] %v3115_v53  ;;  %v3117_v57 = vadd.f32 %v1179_v7, %v1060_v14  ;;  %v1722_v53 = vmul.f32 %v2955_v30, %v2955_v30 }
 0x237   :  { %3696 = vst [vmem:[#allocation38_spill] sm:$0xff] %v3117_v57 }
 0x23d   :  { %v3119_v26 = vpop.f32.mrf.mxu0 }
 0x23f   :  { %v3121_v59 = vpop.f32.mrf.mxu1  ;;  %v3123_v4 = vpop.f32.mrf.mxu0 }
 0x241   :  { %v3125_v5 = vpop.f32.mrf.mxu1 }
 0x242   :  { %v3127_v25 = vpop.f32.mrf.mxu0 }
 0x244   :  { %v3131_v44 = vpop.f32.mrf.mxu0 }
 0x245   :  { %v3129_v20 = vpop.f32.mrf.mxu1 }
 0x247   :  { %v3133_v24 = vpop.f32.mrf.mxu1 }
 0x249   :  { %v3135_v33 = vpop.f32.mrf.mxu0 }
 0x24b   :  { %v3137_v38 = vpop.f32.mrf.mxu1  ;;  %v3139_v49 = vpop.f32.mrf.mxu0 }
 0x24d   :  { %v3141_v1 = vpop.f32.mrf.mxu1 }
 0x24f   :  { %v3143_v16 = vpop.f32.mrf.mxu0 }
 0x250   :  { %v3145_v18 = vpop.f32.mrf.mxu1 }
 0x251   :  { %v3147_v28 = vpop.f32.mrf.mxu0 }
 0x252   :  { %v3149_v43 = vpop.f32.mrf.mxu1 }
 0x255   :  { %v3151_v51 = vpop.f32.mrf.mxu0 }
 0x256   :  { %v3153_v27 = vpop.f32.mrf.mxu1 }
 0x257   :  { %v3157_v10 = vpop.f32.mrf.mxu0 }
 0x258   :  { %v3155_v29 = vpop.f32.mrf.mxu1 }
 0x25b   :  { %v3161_v31 = vpop.f32.mrf.mxu0 }
 0x25c   :  { %v3159_v39 = vpop.f32.mrf.mxu1 }
 0x25d   :  { %3697 = vst [vmem:[#allocation39_spill] sm:$0xff] %v3159_v39  ;;  %v3165_v11 = vpop.f32.mrf.mxu0 }
 0x25e   :  { %v3163_v35 = vpop.f32.mrf.mxu1  ;;  %3699 = vst [vmem:[#allocation41_spill] sm:$0xff] %v3165_v11  ;;  %v1735_v11 = vmul.f32 %v2986_v48, %v2986_v48 }
 0x25f   :  { %3698 = vst [vmem:[#allocation40_spill] sm:$0xff] %v3163_v35  ;;  %v1648_v35 = vadd.f32 %v2975_v46, %v2967_v40  ;;  %v1664_v46 = vadd.f32 %v3008_v12, %v3002_v0  ;;  %v3228_v12 = vadd.f32 %v3043_v15, %v3037_v63 }
 0x260   :  { %v3171_v7 = vpop.f32.mrf.mxu0 }
 0x261   :  { %3702 = vst [vmem:[#allocation44_spill] sm:$0xff] %v3171_v7 }
 0x262   :  { %v3167_v19 = vpop.f32.mrf.mxu1  ;;  %v3175_v57 = vpop.f32.mrf.mxu0 }
 0x263   :  { %3700 = vst [vmem:[#allocation42_spill] sm:$0xff] %v3167_v19  ;;  %3704 = vst [vmem:[#allocation46_spill] sm:$0xff] %v3175_v57  ;;  %v1784_v57 = vadd.f32 %v1722_v53, %v1721_v55  ;;  %v1742_v19 = vmul.f32 %v3002_v0, %v3002_v0  ;;  %v1723_v55 = vmul.f32 %v3083_v36, %v3083_v36 }
 0x264   :  { %v3169_v41 = vpop.f32.mrf.mxu1  ;;  %v1800_v53 = vadd.f32 %v1736_v62, %v1735_v11  ;;  %v1756_v11 = vmul.f32 %v3037_v63, %v3037_v63  ;;  %v1649_v63 = vadd.f32 %v1648_v35, %v3087_v23  ;;  %v3255_v35 = vadd.f32 %v3060_v56, %v3054_v50 }
 0x265   :  { %3701 = vst [vmem:[#allocation43_spill] sm:$0xff] %v3169_v41 }
 0x266   :  { %v3195_v41 = vpop.f32.mrf.mxu0 }
 0x267   :  { %3707 = vst [vmem:[#allocation49_spill] sm:$0xff] %v3195_v41 }
 0x268   :  { %v3173_v14 = vpop.f32.mrf.mxu1  ;;  %v3222_v41 = vpop.f32.mrf.mxu0 }
 0x269   :  { %3703 = vst [vmem:[#allocation45_spill] sm:$0xff] %v3173_v14  ;;  %v1640_v14 = vadd.f32 %v2955_v30, %v2947_v34  ;;  %v1656_v34 = vadd.f32 %v2991_v61, %v2986_v48  ;;  %v1737_v48 = vmul.f32 %v3091_v17, %v3091_v17  ;;  %3709 = vst [vmem:[#allocation51_spill] sm:$0xff] %v3222_v41 }
 0x26a   :  { %v3177_v22 = vpop.f32.mrf.mxu1 }
 0x26b   :  { %3705 = vst [vmem:[#allocation47_spill] sm:$0xff] %v3177_v22  ;;  %v1728_v22 = vmul.f32 %v2967_v40, %v2967_v40  ;;  %v1749_v40 = vmul.f32 %v3019_v37, %v3019_v37  ;;  %v1641_v61 = vadd.f32 %v1640_v14, %v3083_v36  ;;  %v1763_v14 = vmul.f32 %v3054_v50, %v3054_v50 }
 0x26c   :  { %v1657_v7 = vadd.f32 %v1656_v34, %v3091_v17  ;;  %v1801_v39 = vadd.f32 %v1800_v53, %v1737_v48  ;;  %v3279_v50 = vadd.f32 %v3137_v38, %v3135_v33 }
 0x26d   :  { %v3187_v13 = vpop.f32.mrf.mxu1  ;;  %v1792_v30 = vadd.f32 %v1729_v45, %v1728_v22  ;;  %v1808_v45 = vadd.f32 %v1743_v9, %v1742_v19  ;;  %v1672_v22 = vadd.f32 %v3026_v42, %v3019_v37  ;;  %v1757_v9 = vmul.f32 %v3043_v15, %v3043_v15 }
 0x26e   :  { %3706 = vst [vmem:[#allocation48_spill] sm:$0xff] %v3187_v13  ;;  %v1750_v13 = vmul.f32 %v3026_v42, %v3026_v42  ;;  %v1764_v42 = vmul.f32 %v3060_v56, %v3060_v56  ;;  %v1785_v37 = vadd.f32 %v1784_v57, %v1723_v55  ;;  %v1731_v15 = vmul.f32 %v3089_v32, %v3089_v32 }
 0x26f   :  { %v3203_v21 = vpop.f32.mrf.mxu1  ;;  %v1642_v41 = vadd.f32 %v1641_v61, %v3085_v47  ;;  %v1738_v57 = vmul.f32 %v3093_v52, %v3093_v52  ;;  %v3267_v55 = vadd.f32 %v3125_v5, %v3123_v4 }
 0x270   :  { %3708 = vst [vmem:[#allocation50_spill] sm:$0xff] %v3203_v21  ;;  %v1730_v21 = vmul.f32 %v3087_v23, %v3087_v23  ;;  %v1816_v62 = vadd.f32 %v1750_v13, %v1749_v40  ;;  %v3238_v40 = vadd.f32 %v3121_v59, %v3119_v26  ;;  %v1724_v13 = vmul.f32 %v3085_v47, %v3085_v47  ;;  %v3249_v26 = vpop.f32.mrf.mxu0 }
 0x271   :  { %v3251_v59 = vadd.f32 %v1757_v9, %v1756_v11  ;;  %v3260_v61 = vadd.f32 %v1764_v42, %v1763_v14  ;;  %v1650_v9 = vadd.f32 %v1649_v63, %v3089_v32  ;;  %v1658_v42 = vadd.f32 %v1657_v7, %v3093_v52 }
 0x272   :  { %v1793_v0 = vadd.f32 %v1792_v30, %v1730_v21  ;;  %v1665_v30 = vadd.f32 %v1664_v46, %v3095_v60  ;;  %v1744_v21 = vmul.f32 %v3095_v60, %v3095_v60  ;;  %v1643_v34 = vadd.f32 %v1642_v41, %v3238_v40  ;;  %v3281_v4 = vpop.f32.mrf.mxu0 }
 0x273   :  { %v2316_v19 = vpop.f32.mrf.mxu1  ;;  %v1725_v48 = vmul.f32 %v3238_v40, %v3238_v40  ;;  %v1786_v11 = vadd.f32 %v1785_v37, %v1724_v13  ;;  %v3272_v46 = vadd.f32 %v3129_v20, %v3127_v25  ;;  %v1802_v14 = vadd.f32 %v1801_v39, %v1738_v57 }
 0x274   :  { %v1794_v56 = vadd.f32 %v1793_v0, %v1731_v15  ;;  %v1751_v41 = vmul.f32 %v3099_v6, %v3099_v6  ;;  %v1809_v5 = vadd.f32 %v1808_v45, %v1744_v21  ;;  %v1666_v0 = vadd.f32 %v1665_v30, %v3097_v54 }
 0x275   :  { %v2317_v36 = vpop.f32.mrf.mxu1  ;;  %v1745_v63 = vmul.f32 %v3097_v54, %v3097_v54  ;;  %v1673_v25 = vadd.f32 %v1672_v22, %v3099_v6  ;;  %v1726_v20 = vmul.f32 %v3267_v55, %v3267_v55  ;;  %v1644_v7 = vadd.f32 %v1643_v34, %v3267_v55 }
 0x276   :  { %v2318_v15 = vadd.f32 %v2317_v36, %v2316_v19  ;;  %v1787_v33 = vadd.f32 %v1786_v11, %v1725_v48  ;;  %v1651_v38 = vadd.f32 %v1650_v9, %v3272_v46  ;;  %v1732_v45 = vmul.f32 %v3272_v46, %v3272_v46 }
 0x277   :  { %v3295_v13 = vadd.f32 %v3133_v24, %v3131_v44  ;;  %v1817_v22 = vadd.f32 %v1816_v62, %v1751_v41  ;;  %v1752_v19 = vmul.f32 %v3101_v58, %v3101_v58  ;;  %v1739_v30 = vmul.f32 %v3279_v50, %v3279_v50 }
 0x278   :  { %v2319_v53 = vpop.f32.mrf.mxu1  ;;  %v3305_v21 = vadd.f32 %v3141_v1, %v3139_v49  ;;  %v1810_v48 = vadd.f32 %v1809_v5, %v1745_v63  ;;  %v3311_v62 = vadd.f32 %v1673_v25, %v3101_v58  ;;  %v1758_v41 = vmul.f32 %v3103_v2, %v3103_v2 }
 0x279   :  { %v1788_v1 = vadd.f32 %v1787_v33, %v1726_v20  ;;  %v1652_v63 = vadd.f32 %v1651_v38, %v3295_v13  ;;  %v1795_v25 = vadd.f32 %v1794_v56, %v1732_v45  ;;  %v1803_v20 = vadd.f32 %v1802_v14, %v1739_v30 }
 0x27a   :  { %v2320_v37 = vpop.f32.mrf.mxu1  ;;  %v1681_v56 = vadd.f32 %v3228_v12, %v3103_v2  ;;  %v1825_v38 = vadd.f32 %v3251_v59, %v1758_v41  ;;  %v1659_v14 = vadd.f32 %v1658_v42, %v3279_v50  ;;  %v1759_v12 = vmul.f32 %v3105_v8, %v3105_v8 }
 0x27b   :  { %v2321_v11 = vadd.f32 %v2320_v37, %v2319_v53  ;;  %v1733_v53 = vmul.f32 %v3295_v13, %v3295_v13 }
 0x27c   :  { %v1596_v39 = vpop.f32.mrf.mxu0 }
 0x27d   :  { %v3297_v57 = vadd.f32 %v2318_v15, %v1596_v39  ;;  %v2322_v36 = vpop.f32.mrf.mxu1  ;;  %v3317_v15 = vadd.f32 %v3145_v18, %v3143_v16  ;;  %v1818_v39 = vadd.f32 %v1817_v22, %v1752_v19  ;;  %v3328_v16 = vadd.f32 %v3153_v27, %v3151_v51 }
 0x27e   :  { %v1598_v34 = vpop.f32.mrf.mxu0  ;;  %v3340_v51 = vadd.f32 %v3149_v43, %v3147_v28  ;;  %v1796_v19 = vadd.f32 %v1795_v25, %v1733_v53  ;;  %v3352_v28 = vadd.f32 %v3155_v29, %v3157_v10  ;;  %v1682_v53 = vadd.f32 %v1681_v56, %v3105_v8  ;;  %v3710_v29 = vld [vmem:[#allocation39_spill] sm:$0xff] }
 0x27f   :  { %v2323_v9 = vpop.f32.mrf.mxu1  ;;  %v1645_v44 = vadd.f32 %v1644_v7, %v3297_v57  ;;  %v1727_v24 = vmul.f32 %v3297_v57, %v3297_v57  ;;  %v1740_v7 = vmul.f32 %v3305_v21, %v3305_v21  ;;  %v1746_v45 = vmul.f32 %v3317_v15, %v3317_v15 }
 0x280   :  { %v1601_v49 = vpop.f32.mrf.mxu0  ;;  %v2324_v33 = vadd.f32 %v2323_v9, %v2322_v36  ;;  %v1667_v59 = vadd.f32 %v1666_v0, %v3317_v15  ;;  %v1753_v30 = vmul.f32 %v3328_v16, %v3328_v16  ;;  %v1765_v0 = vmul.f32 %v3107_v3, %v3107_v3 }
 0x281   :  { %v3321_v37 = vadd.f32 %v2321_v11, %v1601_v49  ;;  %v2325_v5 = vpop.f32.mrf.mxu1  ;;  %1646 = vadd.xlane.f32.xlu1 %v1645_v44  ;;  %v1789_v49 = vadd.f32 %v1788_v1, %v1727_v24  ;;  %v1804_v1 = vadd.f32 %v1803_v20, %v1740_v7  ;;  %v3363_v10 = vadd.f32 %v3710_v29, %v3161_v31  ;;  %v3716_v29 = vld [vmem:[#allocation46_spill] sm:$0xff] }
 0x282   :  { %v1603_v18 = vpop.f32.mrf.mxu0  ;;  %v1660_v7 = vadd.f32 %v1659_v14, %v3305_v21  ;;  %v1826_v20 = vadd.f32 %v1825_v38, %v1759_v12  ;;  %v1819_v56 = vadd.f32 %v1818_v39, %v1753_v30  ;;  %v1833_v38 = vadd.f32 %v3260_v61, %v1765_v0  ;;  %v3713_v12 = vld [vmem:[#allocation34_spill] sm:$0xff] }
 0x283   :  { %v2326_v34 = vpop.f32.mrf.mxu1  ;;  %v1653_v11 = vadd.f32 %v1652_v63, %v3321_v37  ;;  %v1734_v44 = vmul.f32 %v3321_v37, %v3321_v37  ;;  %v1747_v63 = vmul.f32 %v3340_v51, %v3340_v51  ;;  %v1811_v18 = vadd.f32 %v1810_v48, %v1746_v45  ;;  %v3711_v48 = vld [vmem:[#allocation44_spill] sm:$0xff]  ;;  %v3712_v45 = vld [vmem:[#allocation42_spill] sm:$0xff] }
 0x284   :  { %v1606_v27 = vpop.f32.mrf.mxu0  ;;  %v2327_v42 = vadd.f32 %v2326_v34, %v2325_v5  ;;  %v1675_v39 = vadd.f32 %v3311_v62, %v3328_v16  ;;  %v1689_v0 = vadd.f32 %v3255_v35, %v3107_v3  ;;  %v1683_v62 = vadd.f32 %v1682_v53, %v3363_v10 }
 0x285   :  { %v3343_v36 = vadd.f32 %v2324_v33, %v1606_v27  ;;  %v2328_v22 = vpop.f32.mrf.mxu1  ;;  %1654 = vadd.xlane.f32.xlu0 %v1653_v11  ;;  %1790 = vadd.xlane.f32.xlu1 %v1789_v49  ;;  %v1797_v24 = vadd.f32 %v1796_v19, %v1734_v44  ;;  %v1754_v11 = vmul.f32 %v3352_v28, %v3352_v28 }
 0x286   :  { %v1608_v43 = vpop.f32.mrf.mxu0  ;;  %v1668_v44 = vadd.f32 %v1667_v59, %v3340_v51  ;;  %v3373_v27 = vadd.f32 %v3712_v45, %v3711_v48  ;;  %v1812_v30 = vadd.f32 %v1811_v18, %v1747_v63  ;;  %v3717_v63 = vld [vmem:[#allocation43_spill] sm:$0xff]  ;;  %v1676_v53 = vadd.f32 %v1675_v39, %v3352_v28 }
 0x287   :  { %v2329_v9 = vpop.f32.mrf.mxu1  ;;  %v1741_v41 = vmul.f32 %v3343_v36, %v3343_v36  ;;  %v1661_v43 = vadd.f32 %v1660_v7, %v3343_v36  ;;  %v3397_v18 = vadd.f32 %v3717_v63, %v3716_v29  ;;  %v1820_v7 = vadd.f32 %v1819_v56, %v1754_v11 }
 0x288   :  { %v1611_v25 = vpop.f32.mrf.mxu0  ;;  %v2330_v31 = vadd.f32 %v2329_v9, %v2328_v22  ;;  %v1760_v22 = vmul.f32 %v3363_v10, %v3363_v10  ;;  %v3714_v9 = vld [vmem:[#allocation41_spill] sm:$0xff] }
 0x289   :  { %v3365_v5 = vadd.f32 %v2327_v42, %v1611_v25  ;;  %v2331_v33 = vpop.f32.mrf.mxu1  ;;  %1798 = vadd.xlane.f32.xlu0 %v1797_v24  ;;  %v1805_v34 = vadd.f32 %v1804_v1, %v1741_v41  ;;  %v1766_v42 = vmul.f32 %v3713_v12, %v3713_v12  ;;  %v3715_v24 = vld [vmem:[#allocation40_spill] sm:$0xff] }
 0x28a   :  { %v1613_v49 = vpop.f32.mrf.mxu0  ;;  %v3387_v41 = vadd.f32 %v3715_v24, %v3714_v9  ;;  %v1827_v56 = vadd.f32 %v1826_v20, %v1760_v22 }
 0x28b   :  { %v2332_v19 = vpop.f32.mrf.mxu1  ;;  %1806 = vadd.xlane.f32.xlu1 %v1805_v34  ;;  %v1748_v14 = vmul.f32 %v3365_v5, %v3365_v5  ;;  %v1669_v61 = vadd.f32 %v1668_v44, %v3365_v5  ;;  %v1767_v49 = vmul.f32 %v3373_v27, %v3373_v27 }
 0x28c   :  { %v1616_v59 = vpop.f32.mrf.mxu0  ;;  %v2333_v48 = vadd.f32 %v2332_v19, %v2331_v33  ;;  %v1690_v33 = vadd.f32 %v1689_v0, %v3713_v12  ;;  %v1768_v19 = vmul.f32 %v3397_v18, %v3397_v18 }
 0x28d   :  { %v3389_v1 = vadd.f32 %v2330_v31, %v1616_v59  ;;  %v2334_v25 = vpop.f32.mrf.mxu1  ;;  %1662 = vadd.xlane.f32.xlu0 %v1661_v43  ;;  %v1813_v31 = vadd.f32 %v1812_v30, %v1748_v14  ;;  %v1834_v43 = vadd.f32 %v1833_v38, %v1766_v42  ;;  %v1761_v59 = vmul.f32 %v3387_v41, %v3387_v41 }
 0x28e   :  { %v1618_v34 = vpop.f32.mrf.mxu0  ;;  %v1684_v30 = vadd.f32 %v1683_v62, %v3387_v41  ;;  %v1691_v20 = vadd.f32 %v1690_v33, %v3373_v27  ;;  %v3719_v62 = vld [vmem:[#allocation30_spill] sm:$0xff]  ;;  %v3723_v33 = vld [vmem:[#allocation37_spill] sm:$0xff] }
 0x28f   :  { %v2335_v45 = vpop.f32.mrf.mxu1  ;;  %1670 = vadd.xlane.f32.xlu1 %v1669_v61  ;;  %v1755_v44 = vmul.f32 %v3389_v1, %v3389_v1  ;;  %v1677_v39 = vadd.f32 %v1676_v53, %v3389_v1  ;;  %v1835_v61 = vadd.f32 %v1834_v43, %v1767_v49  ;;  %v1828_v63 = vadd.f32 %v1827_v56, %v1761_v59  ;;  %v3718_v34 = vld [vmem:[#allocation29_spill] sm:$0xff]  ;;  %v3721_v53 = vld [vmem:[#allocation35_spill] sm:$0xff] }
 0x290   :  { %v1621_v35 = vpop.f32.mrf.mxu0  ;;  %v2336_v38 = vadd.f32 %v2335_v45, %v2334_v25  ;;  %v1696_v25 = vadd.f32 %v3719_v62, %v3718_v34  ;;  %v3722_v59 = vld [vmem:[#allocation31_spill] sm:$0xff] }
 0x291   :  { %v3406_v9 = vadd.f32 %v2333_v48, %v1621_v35  ;;  %1814 = vadd.xlane.f32.xlu0 %v1813_v31  ;;  %v1821_v11 = vadd.f32 %v1820_v7, %v1755_v44  ;;  %v2337_v42 = vpop.f32.mrf.mxu1  ;;  %v3720_v48 = vld [vmem:[#allocation32_spill] sm:$0xff]  ;;  %v1836_v43 = vadd.f32 %v1835_v61, %v1768_v19  ;;  %v1771_v35 = vmul.f32 %v3719_v62, %v3719_v62  ;;  %v3725_v19 = vld [vmem:[#allocation45_spill] sm:$0xff] }
 0x292   :  { %v1623_v14 = vpop.f32.mrf.mxu0  ;;  %v1778_v45 = vmul.f32 %v3720_v48, %v3720_v48  ;;  %v1777_v56 = vmul.f32 %v3722_v59, %v3722_v59 }
 0x293   :  { %1822 = vadd.xlane.f32.xlu1 %v1821_v11  ;;  %v1762_v24 = vmul.f32 %v3406_v9, %v3406_v9  ;;  %v1685_v0 = vadd.f32 %v1684_v30, %v3406_v9  ;;  %v2338_v31 = vpop.f32.mrf.mxu1  ;;  %v1697_v11 = vadd.f32 %v1696_v25, %v3721_v53  ;;  %v1779_v14 = vmul.f32 %v3723_v33, %v3723_v33 }
 0x294   :  { %v1626_v29 = vpop.f32.mrf.mxu0 }
 0x295   :  { %v3416_v22 = vadd.f32 %v2336_v38, %v1626_v29  ;;  %1678 = vadd.xlane.f32.xlu0 %v1677_v39  ;;  %v1829_v44 = vadd.f32 %v1828_v63, %v1762_v24  ;;  %v1692_v38 = vadd.f32 %v1691_v20, %v3397_v18  ;;  %v1704_v39 = vadd.f32 %v3720_v48, %v3722_v59  ;;  %v3724_v24 = vld [vmem:[#allocation49_spill] sm:$0xff]  ;;  %v2340_v25 = vpop.f32.mrf.mxu1  ;;  %v3728_v48 = vld [vmem:[#allocation38_spill] sm:$0xff] }
 0x296   :  { %v1628_v7 = vpop.f32.mrf.mxu0  ;;  %v3437_v61 = vadd.f32 %v3725_v19, %v3724_v24  ;;  %v1770_v29 = vmul.f32 %v3718_v34, %v3718_v34  ;;  %v1772_v63 = vmul.f32 %v3721_v53, %v3721_v53  ;;  %v3729_v53 = vld [vmem:[#allocation51_spill] sm:$0xff] }
 0x297   :  { %1686 = vadd.xlane.f32.xlu1 %v1685_v0  ;;  %v1769_v49 = vmul.f32 %v3416_v22, %v3416_v22  ;;  %v1848_v0 = vadd.f32 %v1778_v45, %v1777_v56  ;;  %v1693_v7 = vadd.f32 %v1692_v38, %v3416_v22  ;;  %v1780_v45 = vmul.f32 %v3728_v48, %v3728_v48 }
 0x298   :  { %v1840_v24 = vadd.f32 %v1771_v35, %v1770_v29 }
 0x299   :  { %1830 = vadd.xlane.f32.xlu0 %v1829_v44  ;;  %v1837_v30 = vadd.f32 %v1836_v43, %v1769_v49  ;;  %v3726_v44 = vld [vmem:[#allocation36_spill] sm:$0xff]  ;;  %v1705_v49 = vadd.f32 %v1704_v39, %v3723_v33  ;;  %v1849_v19 = vadd.f32 %v1848_v0, %v1779_v14  ;;  %v2341_v39 = vpop.f32.mrf.mxu1  ;;  %v3731_v14 = vld [vmem:[#allocation50_spill] sm:$0xff]  ;;  %v2339_v0 = vadd.f32 %v2338_v31, %v2337_v42 }
 0x29a   :  { %v1698_v20 = vadd.f32 %v1697_v11, %v3726_v44  ;;  %v3727_v43 = vld [vmem:[#allocation48_spill] sm:$0xff]  ;;  %v1841_v38 = vadd.f32 %v1840_v24, %v1772_v63  ;;  %v1773_v11 = vmul.f32 %v3726_v44, %v3726_v44  ;;  %v3464_v29 = vadd.f32 %v3731_v14, %v3281_v4 }
 0x29b   :  { %1838 = vadd.xlane.f32.xlu1 %v1837_v30  ;;  %v3448_v62 = vadd.f32 %v3727_v43, %v3249_v26  ;;  %v3730_v30 = vld [vmem:[#allocation47_spill] sm:$0xff]  ;;  %v1706_v26 = vadd.f32 %v1705_v49, %v3728_v48  ;;  %v2342_v48 = vadd.f32 %v2341_v39, %v2340_v25 }
 0x29c   :  { %v1699_v56 = vadd.f32 %v1698_v20, %v3437_v61  ;;  %v3455_v34 = vadd.f32 %v3730_v30, %v3729_v53  ;;  %v1774_v53 = vmul.f32 %v3437_v61, %v3437_v61  ;;  %v1842_v49 = vadd.f32 %v1841_v38, %v1773_v11 }
 0x29d   :  { %1694 = vadd.xlane.f32.xlu0 %v1693_v7  ;;  %v1781_v35 = vmul.f32 %v3448_v62, %v3448_v62  ;;  %v1850_v7 = vadd.f32 %v1849_v19, %v1780_v45  ;;  %v1707_v63 = vadd.f32 %v1706_v26, %v3448_v62  ;;  %v1782_v44 = vmul.f32 %v3464_v29, %v3464_v29 }
 0x29e   :  { %v1700_v24 = vadd.f32 %v1699_v56, %v3455_v34  ;;  %v1775_v19 = vmul.f32 %v3455_v34, %v3455_v34  ;;  %v1843_v14 = vadd.f32 %v1842_v49, %v1774_v53 }
 0x29f   :  { %v1851_v42 = vadd.f32 %v1850_v7, %v1781_v35  ;;  %v1708_v26 = vadd.f32 %v1707_v63, %v3464_v29 }
 0x2a1   :  { %v1631_v20 = vpop.f32.mrf.mxu1  ;;  %v1852_v25 = vadd.f32 %v1851_v42, %v1782_v44 }
 0x2a2   :  { %v3469_v43 = vadd.f32 %v2339_v0, %v1631_v20  ;;  %v1844_v0 = vadd.f32 %v1843_v14, %v1775_v19 }
 0x2a3   :  { %v1633_v30 = vpop.f32.mrf.mxu1 }
 0x2a4   :  { %3732 = vst [vmem:[#allocation39_spill] sm:$0xff] %v3469_v43  ;;  %v1701_v4 = vadd.f32 %v1700_v24, %v3469_v43  ;;  %v1776_v39 = vmul.f32 %v3469_v43, %v3469_v43 }
 0x2a5   :  { %v1636_v31 = vpop.f32.mrf.mxu1 }
 0x2a6   :  { %v3477_v45 = vadd.f32 %v2342_v48, %v1636_v31  ;;  %1702 = vadd.xlane.f32.xlu1 %v1701_v4  ;;  %v1845_v48 = vadd.f32 %v1844_v0, %v1776_v39 }
 0x2a7   :  { %v1638_v56 = vpop.f32.mrf.mxu1 }
 0x2a8   :  { %3733 = vst [vmem:[#allocation44_spill] sm:$0xff] %v3477_v45  ;;  %v1709_v38 = vadd.f32 %v1708_v26, %v3477_v45  ;;  %v1783_v11 = vmul.f32 %v3477_v45, %v3477_v45 }
 0x2aa   :  { %1710 = vadd.xlane.f32.xlu0 %v1709_v38  ;;  %v1853_v35 = vadd.f32 %v1852_v25, %v1783_v11 }
 0x2ac   :  { %1854 = vadd.xlane.f32.xlu1 %v1853_v35 }
 0x2ae   :  { %1846 = vadd.xlane.f32.xlu0 %v1845_v48 }
 0x30a   :  { %v1647_v7 = vpop.xlane.xlu1 %1646 }
 0x30b   :  { %v1712_v20 = vmul.f32 0.0012755102, %v1647_v7 }
 0x30d   :  { %v1865_v24 = vmul.f32 %v1712_v20, %v1712_v20 }
 0x30e   :  { %v1655_v63 = vpop.xlane.xlu0 %1654  ;;  %v1791_v53 = vpop.xlane.xlu1 %1790 }
 0x30f   :  { %v3485_v49 = vmul.f32 0.0012755102, %v1655_v63  ;;  %v1856_v30 = vmul.f32 0.0012755102, %v1791_v53 }
 0x311   :  { %v1874_v4 = vsub.f32 %v1856_v30, %v1865_v24  ;;  %v1866_v44 = vmul.f32 %v3485_v49, %v3485_v49 }
 0x312   :  { %v1799_v31 = vpop.xlane.xlu0 %1798 }
 0x313   :  { %v1892_v42 = vadd.f32 0.001, %v1874_v4  ;;  %v1857_v26 = vmul.f32 0.0012755102, %v1799_v31 }
 0x314   :  { %v1807_v56 = vpop.xlane.xlu1 %1806 }
 0x315   :  { %2416 = vrsqrt.f32 %v1892_v42  ;;  %v1875_v19 = vsub.f32 %v1857_v26, %v1866_v44  ;;  %v1858_v39 = vmul.f32 0.0012755102, %v1807_v56  ;;  %v1883_v56 = vld [vmem:[%s3637_s4] sm:$0xff] }
 0x316   :  { %v1663_v14 = vpop.xlane.xlu0 %1662 }
 0x317   :  { %v1893_v38 = vadd.f32 0.001, %v1875_v19  ;;  %v1714_v11 = vmul.f32 0.0012755102, %v1663_v14 }
 0x318   :  { %v1671_v25 = vpop.xlane.xlu1 %1670 }
 0x319   :  { %2418 = vrsqrt.f32 %v1893_v38  ;;  %v1867_v35 = vmul.f32 %v1714_v11, %v1714_v11  ;;  %v3489_v0 = vmul.f32 0.0012755102, %v1671_v25 }
 0x31a   :  { %v1815_v48 = vpop.xlane.xlu0 %1814 }
 0x31b   :  { %v1876_v7 = vsub.f32 %v1858_v39, %v1867_v35  ;;  %v1868_v63 = vmul.f32 %v3489_v0, %v3489_v0  ;;  %v1859_v53 = vmul.f32 0.0012755102, %v1815_v48 }
 0x31c   :  { %v1823_v24 = vpop.xlane.xlu1 %1822 }
 0x31d   :  { %v1894_v30 = vadd.f32 0.001, %v1876_v7  ;;  %v1877_v4 = vsub.f32 %v1859_v53, %v1868_v63  ;;  %v1860_v19 = vmul.f32 0.0012755102, %v1823_v24  ;;  %v1884_v53 = vld [vmem:[%s3637_s4 + $0x8] sm:$0xff]  ;;  %v1919_v24 = vld [vmem:[%s3638_s5] sm:$0xff] }
 0x31e   :  { %v1679_v31 = vpop.xlane.xlu0 %1678 }
 0x31f   :  { %2420 = vrsqrt.f32 %v1894_v30  ;;  %v1895_v44 = vadd.f32 0.001, %v1877_v4  ;;  %v3493_v42 = vmul.f32 0.0012755102, %v1679_v31 }
 0x320   :  { %v1687_v26 = vpop.xlane.xlu1 %1686 }
 0x321   :  { %2422 = vrsqrt.f32 %v1895_v44  ;;  %v1869_v14 = vmul.f32 %v3493_v42, %v3493_v42  ;;  %v3500_v38 = vmul.f32 0.0012755102, %v1687_v26 }
 0x322   :  { %v2417_v25 = vpop.eup %2416  ;;  %v1831_v39 = vpop.xlane.xlu0 %1830 }
 0x323   :  { %v1878_v35 = vsub.f32 %v1860_v19, %v1869_v14  ;;  %v1870_v48 = vmul.f32 %v3500_v38, %v3500_v38  ;;  %v1861_v7 = vmul.f32 0.0012755102, %v1831_v39  ;;  %v1910_v63 = vmul.f32 %v2417_v25, %v1883_v56 }
 0x324   :  { %v1839_v26 = vpop.xlane.xlu1 %1838 }
 0x325   :  { %v1896_v30 = vadd.f32 0.001, %v1878_v35  ;;  %v1879_v4 = vsub.f32 %v1861_v7, %v1870_v48  ;;  %1948 = vperm.xlu0 %2398, %v1910_v63   ;;  %v1928_v31 = vmul.f32 %v1910_v63, %v1712_v20  ;;  %v1862_v39 = vmul.f32 0.0012755102, %v1839_v26  ;;  %v1885_v48 = vld [vmem:[%s3637_s4 + $0x10] sm:$0xff]  ;;  %v1886_v63 = vld [vmem:[%s3637_s4 + $0x18] sm:$0xff] }
 0x326   :  { %v2419_v44 = vpop.eup %2418  ;;  %v1695_v19 = vpop.xlane.xlu0 %1694 }
 0x327   :  { %2424 = vrsqrt.f32 %v1896_v30  ;;  %v1897_v14 = vadd.f32 0.001, %v1879_v4  ;;  %v3510_v45 = vmul.f32 0.0012755102, %v1695_v19  ;;  %v1911_v56 = vmul.f32 %v2419_v44, %v1884_v53  ;;  %v1921_v19 = vld [vmem:[%s3638_s5 + $0x10] sm:$0xff] }
 0x328   :  { %v1937_v25 = vsub.f32 %v1919_v24, %v1928_v31  ;;  %v1920_v31 = vld [vmem:[%s3638_s5 + $0x8] sm:$0xff] }
 0x329   :  { %2426 = vrsqrt.f32 %v1897_v14  ;;  %v1871_v35 = vmul.f32 %v3510_v45, %v3510_v45  ;;  %1953 = vperm.xlu1 %2399, %v1911_v56   ;;  %v1929_v4 = vmul.f32 %v1911_v56, %v3485_v49  ;;  %v1887_v49 = vld [vmem:[%s3637_s4 + $0x20] sm:$0xff] }
 0x32a   :  { %2056 = vperm.xlu0 %2398, %v1937_v25  }
 0x32b   :  { %v1880_v20 = vsub.f32 %v1862_v39, %v1871_v35  ;;  %v1938_v25 = vsub.f32 %v1920_v31, %v1929_v4  ;;  %v1922_v31 = vld [vmem:[%s3638_s5 + $0x18] sm:$0xff] }
 0x32c   :  { %v2421_v7 = vpop.eup %2420 }
 0x32d   :  { %v1912_v30 = vmul.f32 %v2421_v7, %v1885_v48  ;;  %v1898_v53 = vadd.f32 0.001, %v1880_v20  ;;  %v1888_v20 = vld [vmem:[%s3637_s4 + $0x28] sm:$0xff] }
 0x32e   :  { %v2423_v24 = vpop.eup %2422 }
 0x32f   :  { %v1930_v44 = vmul.f32 %v1912_v30, %v1714_v11  ;;  %2428 = vrsqrt.f32 %v1898_v53  ;;  %1958 = vperm.xlu1 %2399, %v1912_v30   ;;  %v1913_v26 = vmul.f32 %v2423_v24, %v1886_v63  ;;  %v1703_v14 = vpop.xlane.xlu1 %1702 }
 0x330   :  { %v1719_v48 = vmul.f32 0.0012755102, %v1703_v14 }
 0x331   :  { %1963 = vperm.xlu0 %2398, %v1913_v26   ;;  %v1939_v39 = vsub.f32 %v1921_v19, %v1930_v44  ;;  %v1931_v30 = vmul.f32 %v1913_v26, %v3489_v0  ;;  %v1889_v26 = vld [vmem:[%s3637_s4 + $0x30] sm:$0xff] }
 0x333   :  { %v1711_v56 = vpop.xlane.xlu0 %1710  ;;  %2061 = vperm.xlu1 %2399, %v1938_v25   ;;  %v1872_v25 = vmul.f32 %v1719_v48, %v1719_v48  ;;  %v1940_v0 = vsub.f32 %v1922_v31, %v1931_v30  ;;  %v1924_v30 = vld [vmem:[%s3638_s5 + $0x28] sm:$0xff] }
 0x334   :  { %v2425_v35 = vpop.eup %2424  ;;  %v1720_v11 = vmul.f32 0.0012755102, %v1711_v56 }
 0x335   :  { %v1914_v7 = vmul.f32 %v2425_v35, %v1887_v49  ;;  %v1855_v63 = vpop.xlane.xlu1 %1854  ;;  %2066 = vperm.xlu0 %2398, %v1939_v39   ;;  %v1923_v49 = vld [vmem:[%s3638_s5 + $0x20] sm:$0xff] }
 0x336   :  { %v2427_v53 = vpop.eup %2426  ;;  %v1873_v4 = vmul.f32 %v1720_v11, %v1720_v11  ;;  %v1864_v24 = vmul.f32 0.0012755102, %v1855_v63 }
 0x337   :  { %v1932_v44 = vmul.f32 %v1914_v7, %v3493_v42  ;;  %v1847_v19 = vpop.xlane.xlu0 %1846  ;;  %1968 = vperm.xlu1 %2399, %v1914_v7   ;;  %v1915_v14 = vmul.f32 %v2427_v53, %v1888_v20 }
 0x338   :  { %v1882_v56 = vsub.f32 %v1864_v24, %v1873_v4  ;;  %v1863_v43 = vmul.f32 0.0012755102, %v1847_v19  ;;  %v1925_v4 = vld [vmem:[%s3638_s5 + $0x30] sm:$0xff]  ;;  %v1890_v19 = vld [vmem:[%s3637_s4 + $0x38] sm:$0xff] }
 0x339   :  { %1973 = vperm.xlu0 %2398, %v1915_v14   ;;  %v1941_v42 = vsub.f32 %v1923_v49, %v1932_v44  ;;  %v1933_v53 = vmul.f32 %v1915_v14, %v3500_v38  ;;  %v1891_v38 = vld [vmem:[%s3637_s4 + $0x40] sm:$0xff]  ;;  %s2552_s4 = smov [#allocation10]  }
 0x33a   :  { %v1900_v39 = vadd.f32 0.001, %v1882_v56  ;;  %v1881_v35 = vsub.f32 %v1863_v43, %v1872_v25 }
 0x33b   :  { %2071 = vperm.xlu1 %2399, %v1940_v0   ;;  %v1942_v24 = vsub.f32 %v1924_v30, %v1933_v53  ;;  %v1926_v0 = vld [vmem:[%s3638_s5 + $0x38] sm:$0xff] }
 0x33c   :  { %v2429_v63 = vpop.eup %2428  ;;  %2430 = vrsqrt.f32 %v1900_v39  ;;  %v1899_v20 = vadd.f32 0.001, %v1881_v35 }
 0x33d   :  { %v1916_v7 = vmul.f32 %v2429_v63, %v1889_v26  ;;  %2076 = vperm.xlu0 %2398, %v1941_v42   ;;  %v3734_v63 = vld [vmem:[#allocation15_spill] sm:$0xff] }
 0x33e   :  { %2432 = vrsqrt.f32 %v1899_v20 }
 0x33f   :  { %v1934_v43 = vmul.f32 %v1916_v7, %v3510_v45  ;;  %1978 = vperm.xlu1 %2399, %v1916_v7   ;;  %v1927_v45 = vld [vmem:[%s3638_s5 + $0x40] sm:$0xff]  ;;  %v3735_v7 = vld [vmem:[#allocation16_spill] sm:$0xff]  ;;  %s2230_s5 = sshll.u32 %s2552_s4, 4  ;;  %s2231_s5 = int_to_ptr.vmem [resolvable:$true] %s2230_s5 }
 0x340   :  { %s2514_s13 = scalar_lea.vmem %s2231_s5, 8064  ;;  %p2519_p7 = scmp.lt.s32.totalorder %s2231_s5, %s2231_s5 }
 0x341   :  { %v1943_v31 = vsub.f32 %v1925_v4, %v1934_v43  ;;  %p2515_p6 = scmp.ne.s32.totalorder %s2231_s5, %s2514_s13  ;;  %p2520_p8 = scmp.lt.s32.totalorder %s2514_s13, %s2514_s13 }
 0x343   :  { %2081 = vperm.xlu1 %2399, %v1942_v24   ;;  %2086 = vperm.xlu0 %2398, %v1943_v31   ;;  %p2521_p9 = por %p2520_p8, %p2519_p7 }
 0x345   :  { %p2522_p10 = pnand %p2521_p9, %p2515_p6 }
 0x349   :  { %v2431_v44 = vpop.eup %2430 }
 0x34a   :  { %v1918_v14 = vmul.f32 %v2431_v44, %v1891_v38 }
 0x34b   :  { %v2433_v25 = vpop.eup %2432 }
 0x34c   :  { %1988 = vperm.xlu1 %2399, %v1918_v14   ;;  %v1917_v56 = vmul.f32 %v2433_v25, %v1890_v19  ;;  %v1936_v49 = vmul.f32 %v1918_v14, %v1720_v11  ;;  %v3736_v11 = vld [vmem:[#allocation33_spill] sm:$0xff] }
 0x34e   :  { %1983 = vperm.xlu0 %2398, %v1917_v56   ;;  %v1935_v26 = vmul.f32 %v1917_v56, %v1719_v48  ;;  %v1945_v39 = vsub.f32 %v1927_v45, %v1936_v49 }
 0x350   :  { %v1944_v35 = vsub.f32 %v1926_v0, %v1935_v26  ;;  %v3738_v0 = vld [vmem:[#allocation18_spill] sm:$0xff] }
 0x352   :  { %2096 = vperm.xlu0 %2398, %v1945_v39   ;;  %2091 = vperm.xlu1 %2399, %v1944_v35  }
 0x3a0   :  { %v1949_v42 = vpop.permute.xlu0 %1948 }
 0x3a1   :  { %v1991_v20 = vmul.f32 %v1949_v42, %v3734_v63  ;;  %v1992_v53 = vmul.f32 %v1949_v42, %v3735_v7  ;;  %v1993_v30 = vmul.f32 %v1949_v42, %v3736_v11  ;;  %v1994_v4 = vmul.f32 %v1949_v42, %v3085_v47  ;;  %v3739_v7 = vld [vmem:[#allocation19_spill] sm:$0xff]  ;;  %v3740_v11 = vld [vmem:[#allocation20_spill] sm:$0xff] }
 0x3a2   :  { %v1995_v43 = vmul.f32 %v1949_v42, %v3238_v40  ;;  %v1996_v31 = vmul.f32 %v1949_v42, %v3267_v55  ;;  %v1997_v48 = vmul.f32 %v1949_v42, %v3297_v57  ;;  %v3737_v40 = vld [vmem:[#allocation17_spill] sm:$0xff] }
 0x3a4   :  { %v1954_v38 = vpop.permute.xlu1 %1953 }
 0x3a5   :  { %v2057_v24 = vpop.permute.xlu0 %2056  ;;  %v1998_v55 = vmul.f32 %v1954_v38, %v3737_v40  ;;  %v1999_v57 = vmul.f32 %v1954_v38, %v3738_v0  ;;  %v2000_v26 = vmul.f32 %v1954_v38, %v3087_v23  ;;  %v2001_v39 = vmul.f32 %v1954_v38, %v3089_v32  ;;  %v3742_v40 = vld [vmem:[#allocation22_spill] sm:$0xff] }
 0x3a6   :  { %v2099_v44 = vadd.f32 %v2057_v24, %v1991_v20  ;;  %v2100_v19 = vadd.f32 %v2057_v24, %v1992_v53  ;;  %v2101_v14 = vadd.f32 %v2057_v24, %v1993_v30  ;;  %v2102_v25 = vadd.f32 %v2057_v24, %v1994_v4 }
 0x3a7   :  { %v2103_v56 = vadd.f32 %v2057_v24, %v1995_v43  ;;  %v2104_v49 = vadd.f32 %v2057_v24, %v1996_v31  ;;  %v2105_v45 = vadd.f32 %v2057_v24, %v1997_v48  ;;  %v2002_v35 = vmul.f32 %v1954_v38, %v3272_v46 }
 0x3a8   :  { %2162 = vst [vmem:[#allocation10] sm:$0xff] %v2099_v44  ;;  %2163 = vst [vmem:[#allocation10 + $0x8] sm:$0xff] %v2100_v19  ;;  %v2003_v63 = vmul.f32 %v1954_v38, %v3295_v13  ;;  %v2004_v20 = vmul.f32 %v1954_v38, %v3321_v37 }
 0x3a9   :  { %2164 = vst [vmem:[#allocation10 + $0x10] sm:$0xff] %v2101_v14  ;;  %2165 = vst [vmem:[#allocation10 + $0x18] sm:$0xff] %v2102_v25 }
 0x3aa   :  { %2166 = vst [vmem:[#allocation10 + $0x20] sm:$0xff] %v2103_v56  ;;  %2167 = vst [vmem:[#allocation10 + $0x28] sm:$0xff] %v2104_v49  ;;  %v1959_v47 = vpop.permute.xlu1 %1958 }
 0x3ab   :  { %2168 = vst [vmem:[#allocation10 + $0x30] sm:$0xff] %v2105_v45  ;;  %v2005_v53 = vmul.f32 %v1959_v47, %v3739_v7  ;;  %v2006_v30 = vmul.f32 %v1959_v47, %v3740_v11  ;;  %v2007_v4 = vmul.f32 %v1959_v47, %v3091_v17  ;;  %v2008_v43 = vmul.f32 %v1959_v47, %v3093_v52 }
 0x3ac   :  { %v1964_v42 = vpop.permute.xlu0 %1963  ;;  %v2009_v24 = vmul.f32 %v1959_v47, %v3279_v50  ;;  %v2010_v23 = vmul.f32 %v1959_v47, %v3305_v21  ;;  %v2011_v13 = vmul.f32 %v1959_v47, %v3343_v36  ;;  %v3741_v36 = vld [vmem:[#allocation21_spill] sm:$0xff] }
 0x3ad   :  { %v2012_v47 = vmul.f32 %v1964_v42, %v3741_v36  ;;  %v2014_v0 = vmul.f32 %v1964_v42, %v3095_v60 }
 0x3ae   :  { %v2062_v32 = vpop.permute.xlu1 %2061 }
 0x3af   :  { %v2106_v31 = vadd.f32 %v2062_v32, %v1998_v55  ;;  %v2107_v46 = vadd.f32 %v2062_v32, %v1999_v57  ;;  %v2108_v48 = vadd.f32 %v2062_v32, %v2000_v26  ;;  %v2109_v44 = vadd.f32 %v2062_v32, %v2001_v39 }
 0x3b0   :  { %v2110_v37 = vadd.f32 %v2062_v32, %v2002_v35  ;;  %v2111_v38 = vadd.f32 %v2062_v32, %v2003_v63  ;;  %v2112_v19 = vadd.f32 %v2062_v32, %v2004_v20  ;;  %v2067_v14 = vpop.permute.xlu0 %2066  ;;  %v2013_v55 = vmul.f32 %v1964_v42, %v3742_v40  ;;  %v3743_v20 = vld [vmem:[#allocation23_spill] sm:$0xff] }
 0x3b1   :  { %2169 = vst [vmem:[#allocation10 + $0x38] sm:$0xff] %v2106_v31  ;;  %2170 = vst [vmem:[#allocation10 + $0x40] sm:$0xff] %v2107_v46  ;;  %v2113_v17 = vadd.f32 %v2067_v14, %v2005_v53  ;;  %v2114_v52 = vadd.f32 %v2067_v14, %v2006_v30  ;;  %v2115_v50 = vadd.f32 %v2067_v14, %v2007_v4  ;;  %v3744_v53 = vld [vmem:[#allocation24_spill] sm:$0xff] }
 0x3b2   :  { %2171 = vst [vmem:[#allocation10 + $0x48] sm:$0xff] %v2108_v48  ;;  %2172 = vst [vmem:[#allocation10 + $0x50] sm:$0xff] %v2109_v44  ;;  %v2116_v25 = vadd.f32 %v2067_v14, %v2008_v43  ;;  %v2117_v21 = vadd.f32 %v2067_v14, %v2009_v24  ;;  %v2118_v56 = vadd.f32 %v2067_v14, %v2010_v23  ;;  %v1969_v45 = vpop.permute.xlu1 %1968 }
 0x3b3   :  { %2173 = vst [vmem:[#allocation10 + $0x58] sm:$0xff] %v2110_v37  ;;  %2174 = vst [vmem:[#allocation10 + $0x60] sm:$0xff] %v2111_v38  ;;  %v2119_v49 = vadd.f32 %v2067_v14, %v2011_v13  ;;  %v2015_v57 = vmul.f32 %v1964_v42, %v3097_v54  ;;  %v2016_v26 = vmul.f32 %v1964_v42, %v3317_v15 }
 0x3b4   :  { %2175 = vst [vmem:[#allocation10 + $0x68] sm:$0xff] %v2112_v19  ;;  %2176 = vst [vmem:[#allocation10 + $0x70] sm:$0xff] %v2113_v17  ;;  %v1974_v39 = vpop.permute.xlu0 %1973  ;;  %v2017_v35 = vmul.f32 %v1964_v42, %v3340_v51  ;;  %v2018_v63 = vmul.f32 %v1964_v42, %v3365_v5  ;;  %v2019_v7 = vmul.f32 %v1969_v45, %v3743_v20  ;;  %v3746_v19 = vld [vmem:[#allocation26_spill] sm:$0xff] }
 0x3b5   :  { %2177 = vst [vmem:[#allocation10 + $0x78] sm:$0xff] %v2114_v52  ;;  %2178 = vst [vmem:[#allocation10 + $0x80] sm:$0xff] %v2115_v50  ;;  %v2020_v11 = vmul.f32 %v1969_v45, %v3744_v53  ;;  %v2021_v30 = vmul.f32 %v1969_v45, %v3099_v6  ;;  %v2022_v60 = vmul.f32 %v1969_v45, %v3101_v58 }
 0x3b6   :  { %2179 = vst [vmem:[#allocation10 + $0x88] sm:$0xff] %v2116_v25  ;;  %2180 = vst [vmem:[#allocation10 + $0x90] sm:$0xff] %v2117_v21  ;;  %v2023_v54 = vmul.f32 %v1969_v45, %v3328_v16  ;;  %v2024_v15 = vmul.f32 %v1969_v45, %v3352_v28  ;;  %v2072_v4 = vpop.permute.xlu1 %2071  ;;  %v2025_v51 = vmul.f32 %v1969_v45, %v3389_v1  ;;  %v3745_v1 = vld [vmem:[#allocation25_spill] sm:$0xff]  ;;  %v3748_v45 = vld [vmem:[#allocation28_spill] sm:$0xff] }
 0x3b7   :  { %2181 = vst [vmem:[#allocation10 + $0x98] sm:$0xff] %v2118_v56  ;;  %2182 = vst [vmem:[#allocation10 + $0xa0] sm:$0xff] %v2119_v49  ;;  %v2120_v43 = vadd.f32 %v2072_v4, %v2012_v47  ;;  %v2121_v24 = vadd.f32 %v2072_v4, %v2013_v55  ;;  %v2122_v23 = vadd.f32 %v2072_v4, %v2014_v0  ;;  %v3747_v56 = vld [vmem:[#allocation27_spill] sm:$0xff] }
 0x3b8   :  { %v2123_v32 = vadd.f32 %v2072_v4, %v2015_v57  ;;  %v2124_v5 = vadd.f32 %v2072_v4, %v2016_v26  ;;  %v2125_v42 = vadd.f32 %v2072_v4, %v2017_v35  ;;  %v2126_v31 = vadd.f32 %v2072_v4, %v2018_v63  ;;  %v2077_v46 = vpop.permute.xlu0 %2076  ;;  %v3750_v4 = vld [vmem:[#allocation38_spill] sm:$0xff] }
 0x3b9   :  { %2183 = vst [vmem:[#allocation10 + $0xa8] sm:$0xff] %v2120_v43  ;;  %2184 = vst [vmem:[#allocation10 + $0xb0] sm:$0xff] %v2121_v24  ;;  %v2127_v6 = vadd.f32 %v2077_v46, %v2019_v7  ;;  %v2128_v58 = vadd.f32 %v2077_v46, %v2020_v11  ;;  %v2129_v16 = vadd.f32 %v2077_v46, %v2021_v30 }
 0x3ba   :  { %2185 = vst [vmem:[#allocation10 + $0xb8] sm:$0xff] %v2122_v23  ;;  %2186 = vst [vmem:[#allocation10 + $0xc0] sm:$0xff] %v2123_v32  ;;  %v2130_v48 = vadd.f32 %v2077_v46, %v2022_v60  ;;  %v2131_v28 = vadd.f32 %v2077_v46, %v2023_v54  ;;  %v2132_v44 = vadd.f32 %v2077_v46, %v2024_v15  ;;  %v1979_v37 = vpop.permute.xlu1 %1978  ;;  %v3749_v60 = vld [vmem:[#allocation32_spill] sm:$0xff]  ;;  %v3751_v32 = vld [vmem:[#allocation29_spill] sm:$0xff] }
 0x3bb   :  { %2187 = vst [vmem:[#allocation10 + $0xc8] sm:$0xff] %v2124_v5  ;;  %2188 = vst [vmem:[#allocation10 + $0xd0] sm:$0xff] %v2125_v42  ;;  %v2133_v13 = vadd.f32 %v2077_v46, %v2025_v51  ;;  %v2026_v38 = vmul.f32 %v1974_v39, %v3745_v1  ;;  %v2027_v14 = vmul.f32 %v1974_v39, %v3746_v19  ;;  %v3752_v5 = vld [vmem:[#allocation30_spill] sm:$0xff] }
 0x3bc   :  { %2189 = vst [vmem:[#allocation10 + $0xd8] sm:$0xff] %v2126_v31  ;;  %2190 = vst [vmem:[#allocation10 + $0xe0] sm:$0xff] %v2127_v6  ;;  %v2028_v17 = vmul.f32 %v1974_v39, %v3103_v2  ;;  %v2029_v52 = vmul.f32 %v1974_v39, %v3105_v8  ;;  %v2030_v50 = vmul.f32 %v1974_v39, %v3363_v10  ;;  %v3753_v31 = vld [vmem:[#allocation35_spill] sm:$0xff]  ;;  %v3754_v6 = vld [vmem:[#allocation36_spill] sm:$0xff] }
 0x3bd   :  { %2191 = vst [vmem:[#allocation10 + $0xe8] sm:$0xff] %v2128_v58  ;;  %2192 = vst [vmem:[#allocation10 + $0xf0] sm:$0xff] %v2129_v16  ;;  %v2031_v25 = vmul.f32 %v1974_v39, %v3387_v41  ;;  %v2032_v21 = vmul.f32 %v1974_v39, %v3406_v9  ;;  %v2033_v49 = vmul.f32 %v1979_v37, %v3747_v56 }
 0x3be   :  { %2193 = vst [vmem:[#allocation10 + $0xf8] sm:$0xff] %v2130_v48  ;;  %2194 = vst [vmem:[#allocation10 + $0x100] sm:$0xff] %v2131_v28  ;;  %v2034_v36 = vmul.f32 %v1979_v37, %v3748_v45  ;;  %v2035_v47 = vmul.f32 %v1979_v37, %v3107_v3  ;;  %v2036_v40 = vmul.f32 %v1979_v37, %v3713_v12  ;;  %v2082_v41 = vpop.permute.xlu1 %2081  ;;  %v2087_v55 = vpop.permute.xlu0 %2086 }
 0x3bf   :  { %2195 = vst [vmem:[#allocation10 + $0x108] sm:$0xff] %v2132_v44  ;;  %2196 = vst [vmem:[#allocation10 + $0x110] sm:$0xff] %v2133_v13  ;;  %v2037_v2 = vmul.f32 %v1979_v37, %v3373_v27  ;;  %v2038_v8 = vmul.f32 %v1979_v37, %v3397_v18  ;;  %v2039_v10 = vmul.f32 %v1979_v37, %v3416_v22  ;;  %v3756_v44 = vld [vmem:[#allocation44_spill] sm:$0xff] }
 0x3c0   :  { %v2134_v0 = vadd.f32 %v2082_v41, %v2026_v38  ;;  %v2135_v57 = vadd.f32 %v2082_v41, %v2027_v14  ;;  %v2136_v26 = vadd.f32 %v2082_v41, %v2028_v17  ;;  %v2137_v9 = vadd.f32 %v2082_v41, %v2029_v52 }
 0x3c1   :  { %v2138_v39 = vadd.f32 %v2082_v41, %v2030_v50  ;;  %v2139_v35 = vadd.f32 %v2082_v41, %v2031_v25  ;;  %v2140_v63 = vadd.f32 %v2082_v41, %v2032_v21  ;;  %v2141_v20 = vadd.f32 %v2087_v55, %v2033_v49 }
 0x3c2   :  { %2197 = vst [vmem:[#allocation10 + $0x118] sm:$0xff] %v2134_v0  ;;  %2198 = vst [vmem:[#allocation10 + $0x120] sm:$0xff] %v2135_v57  ;;  %v2142_v3 = vadd.f32 %v2087_v55, %v2034_v36  ;;  %v2143_v27 = vadd.f32 %v2087_v55, %v2035_v47  ;;  %v2144_v12 = vadd.f32 %v2087_v55, %v2036_v40 }
 0x3c3   :  { %2199 = vst [vmem:[#allocation10 + $0x128] sm:$0xff] %v2136_v26  ;;  %2200 = vst [vmem:[#allocation10 + $0x130] sm:$0xff] %v2137_v9  ;;  %v2145_v18 = vadd.f32 %v2087_v55, %v2037_v2  ;;  %v2146_v22 = vadd.f32 %v2087_v55, %v2038_v8  ;;  %v2147_v7 = vadd.f32 %v2087_v55, %v2039_v10 }
 0x3c4   :  { %2201 = vst [vmem:[#allocation10 + $0x138] sm:$0xff] %v2138_v39  ;;  %2202 = vst [vmem:[#allocation10 + $0x140] sm:$0xff] %v2139_v35 }
 0x3c5   :  { %2203 = vst [vmem:[#allocation10 + $0x148] sm:$0xff] %v2140_v63  ;;  %2204 = vst [vmem:[#allocation10 + $0x150] sm:$0xff] %v2141_v20 }
 0x3c6   :  { %2205 = vst [vmem:[#allocation10 + $0x158] sm:$0xff] %v2142_v3  ;;  %2206 = vst [vmem:[#allocation10 + $0x160] sm:$0xff] %v2143_v27 }
 0x3c7   :  { %2207 = vst [vmem:[#allocation10 + $0x168] sm:$0xff] %v2144_v12  ;;  %2208 = vst [vmem:[#allocation10 + $0x170] sm:$0xff] %v2145_v18  ;;  %v1989_v53 = vpop.permute.xlu1 %1988 }
 0x3c8   :  { %2209 = vst [vmem:[#allocation10 + $0x178] sm:$0xff] %v2146_v22  ;;  %2210 = vst [vmem:[#allocation10 + $0x180] sm:$0xff] %v2147_v7  ;;  %v2047_v30 = vmul.f32 %v1989_v53, %v3722_v59  ;;  %v2048_v54 = vmul.f32 %v1989_v53, %v3749_v60  ;;  %v2049_v15 = vmul.f32 %v1989_v53, %v3723_v33  ;;  %v3755_v33 = vld [vmem:[#allocation39_spill] sm:$0xff] }
 0x3c9   :  { %v1984_v11 = vpop.permute.xlu0 %1983  ;;  %v2050_v43 = vmul.f32 %v1989_v53, %v3750_v4  ;;  %v2051_v24 = vmul.f32 %v1989_v53, %v3448_v62  ;;  %v2052_v23 = vmul.f32 %v1989_v53, %v3464_v29  ;;  %v2053_v13 = vmul.f32 %v1989_v53, %v3756_v44 }
 0x3ca   :  { %v2040_v51 = vmul.f32 %v1984_v11, %v3751_v32  ;;  %v2041_v42 = vmul.f32 %v1984_v11, %v3752_v5  ;;  %v2042_v46 = vmul.f32 %v1984_v11, %v3753_v31  ;;  %v2043_v58 = vmul.f32 %v1984_v11, %v3754_v6 }
 0x3cb   :  { %v2044_v59 = vmul.f32 %v1984_v11, %v3437_v61  ;;  %v2045_v48 = vmul.f32 %v1984_v11, %v3455_v34  ;;  %v2046_v28 = vmul.f32 %v1984_v11, %v3755_v33 }
 0x3cd   :  { %v2092_v16 = vpop.permute.xlu1 %2091  ;;  %v2097_v62 = vpop.permute.xlu0 %2096 }
 0x3ce   :  { %v2148_v37 = vadd.f32 %v2092_v16, %v2040_v51  ;;  %v2149_v29 = vadd.f32 %v2092_v16, %v2041_v42  ;;  %v2150_v1 = vadd.f32 %v2092_v16, %v2042_v46  ;;  %v2151_v38 = vadd.f32 %v2092_v16, %v2043_v58 }
 0x3cf   :  { %v2152_v19 = vadd.f32 %v2092_v16, %v2044_v59  ;;  %v2153_v14 = vadd.f32 %v2092_v16, %v2045_v48  ;;  %v2154_v17 = vadd.f32 %v2092_v16, %v2046_v28  ;;  %v2155_v52 = vadd.f32 %v2097_v62, %v2047_v30 }
 0x3d0   :  { %2211 = vst [vmem:[#allocation10 + $0x188] sm:$0xff] %v2148_v37  ;;  %2212 = vst [vmem:[#allocation10 + $0x190] sm:$0xff] %v2149_v29  ;;  %v2156_v34 = vadd.f32 %v2097_v62, %v2048_v54  ;;  %v2157_v61 = vadd.f32 %v2097_v62, %v2049_v15  ;;  %v2158_v50 = vadd.f32 %v2097_v62, %v2050_v43 }
 0x3d1   :  { %2213 = vst [vmem:[#allocation10 + $0x198] sm:$0xff] %v2150_v1  ;;  %2214 = vst [vmem:[#allocation10 + $0x1a0] sm:$0xff] %v2151_v38  ;;  %v2159_v25 = vadd.f32 %v2097_v62, %v2051_v24  ;;  %v2160_v21 = vadd.f32 %v2097_v62, %v2052_v23  ;;  %v2161_v56 = vadd.f32 %v2097_v62, %v2053_v13 }
 0x3d2   :  { %2215 = vst [vmem:[#allocation10 + $0x1a8] sm:$0xff] %v2152_v19  ;;  %2216 = vst [vmem:[#allocation10 + $0x1b0] sm:$0xff] %v2153_v14 }
 0x3d3   :  { %2217 = vst [vmem:[#allocation10 + $0x1b8] sm:$0xff] %v2154_v17  ;;  %2218 = vst [vmem:[#allocation10 + $0x1c0] sm:$0xff] %v2155_v52 }
 0x3d4   :  { %2219 = vst [vmem:[#allocation10 + $0x1c8] sm:$0xff] %v2156_v34  ;;  %2220 = vst [vmem:[#allocation10 + $0x1d0] sm:$0xff] %v2157_v61 }
 0x3d5   :  { %2221 = vst [vmem:[#allocation10 + $0x1d8] sm:$0xff] %v2158_v50  ;;  %2222 = vst [vmem:[#allocation10 + $0x1e0] sm:$0xff] %v2159_v25 }
 0x3d6   :  { %2223 = vst [vmem:[#allocation10 + $0x1e8] sm:$0xff] %v2160_v21  ;;  %2224 = vst [vmem:[#allocation10 + $0x1f0] sm:$0xff] %v2161_v56 }
 0x3d7   :  { %2525 = shalt.err (!%p2522_p10)
}
 0x3d8   :  { %2236 = dma.vmem_to_hbm [thread:$0]  %s2231_s5, 8064, %s3640_s7, [#allocation4], %s2548_s1, %s2548_s1, %s2549_s20  }
 0x3d9   :  { %2540 = dma.done.wait [#allocation4], 8064  }
 0x3da   :  { %2541 = vsyncadd [#allocation4], 4294959232 }
 0x3db   :  { %2240 = vsyncpa [#allocation3], 1 }
 0x3dc   :  { %2241 = vsyncpa [#allocation6], 1 }
 0x3dd   :  { %2242 = vsyncpa [#allocation9], 1 }
 0x3de   :  { %2243 = vsyncpa [#allocation4], 1 }

</bundles_post_ra>
